<compile_context>
chip_gen: v5e
topology: v5e:2x2
jax: 0.10.0
libtpu: 0.0.40
codegen_flags: <defaults>
</compile_context>

<pallas_src>
import numpy as np
import jax
import jax.numpy as jnp
from jax import lax
from jax.experimental import pallas as pl
from jax.experimental.pallas import tpu as pltpu


# ----------------------------------------------------------------------------
# helpers
# ----------------------------------------------------------------------------
def _round_up(x, m):
    return ((x + m - 1) // m) * m


# ----------------------------------------------------------------------------
# Pallas kernel: one invocation = one (layer, tree-level) step
# ----------------------------------------------------------------------------
def _tree_lstm_kernel(feat_ref, w_ref, b_ref, uiou_ref, uf_ref,
                      p_ref, gc_ref, gp_ref, s_ref, r_ref,
                      fh_ref, fc_ref, wx_ref, h_ref, c_ref):
    lev = pl.program_id(1)
    n_lev = pl.num_programs(1)
    Hp = uf_ref.shape[-1]          # padded hidden (multiple of 128)
    H3 = 3 * Hp

    @pl.when(lev == 0)
    def _init():
        # Per-layer dense precompute of [W_iou | W_f](features) + bias fused into
        # one lane-dense [N_pad, 4*H_pad] bf16 matmul kept resident in VMEM.
        wx = jnp.dot(feat_ref[...], w_ref[...],
                     preferred_element_type=jnp.float32) + b_ref[...]
        wx_ref[...] = wx.astype(jnp.bfloat16)
        h_ref[...] = jnp.zeros_like(h_ref)
        c_ref[...] = jnp.zeros_like(c_ref)

    wx = wx_ref[...]                     # bf16 [N_pad, 4*H_pad]
    wiou_all = wx[:, :H3]                # 128-aligned slices
    wf_all = wx[:, H3:]

    P = p_ref[...]                       # bf16 [M_max, N_pad]  level-node -> global node
    Gc = gc_ref[...]                     # bf16 [E_max, N_pad]  level-edge -> child node
    Gp = gp_ref[...]                     # bf16 [E_max, N_pad]  level-edge -> parent node
    S = s_ref[...]                       # bf16 [M_max, E_max]  edges -> level-node segsum

    h = h_ref[...]                       # bf16 [N_pad, H_pad]  resident per-layer state
    c = c_ref[...]

    # gathers as one-hot bf16 matmuls (MXU), f32 accumulation
    wiou_x = jnp.dot(P, wiou_all, preferred_element_type=jnp.float32)   # [M, 3H]
    child_h = jnp.dot(Gc, h, preferred_element_type=jnp.float32)        # [E, H]
    child_c = jnp.dot(Gc, c, preferred_element_type=jnp.float32)
    wf_p = jnp.dot(Gp, wf_all, preferred_element_type=jnp.float32)      # [E, H]

    child_h_b = child_h.astype(jnp.bfloat16)   # exact: values are already bf16 state
    h_sum = jnp.dot(S, child_h_b, preferred_element_type=jnp.float32)   # [M, H]
    f = jax.nn.sigmoid(
        wf_p + jnp.dot(child_h_b, uf_ref[...], preferred_element_type=jnp.float32))
    c_sum = jnp.dot(S, (f * child_c).astype(jnp.bfloat16),
                    preferred_element_type=jnp.float32)

    iou = wiou_x + jnp.dot(h_sum.astype(jnp.bfloat16), uiou_ref[...],
                           preferred_element_type=jnp.float32)
    # gate slices are whole 128-lane tiles (H padded to 128)
    i = jax.nn.sigmoid(iou[:, :Hp])
    o = jax.nn.sigmoid(iou[:, Hp:2 * Hp])
    u = jnp.tanh(iou[:, 2 * Hp:])

    c_new = i * u + c_sum
    h_new = o * jnp.tanh(c_new)

    # scatter back via transposed contraction of P (no materialized PT, no HBM DMA);
    # each node is produced at exactly one level -> add == set; padded rows/cols
    # have zero one-hot weight and contribute nothing.
    dn = (((0,), (0,)), ((), ()))
    scat_h = lax.dot_general(P, h_new.astype(jnp.bfloat16), dn,
                             preferred_element_type=jnp.float32)
    scat_c = lax.dot_general(P, c_new.astype(jnp.bfloat16), dn,
                             preferred_element_type=jnp.float32)
    h_ref[...] = h + scat_h.astype(jnp.bfloat16)
    c_ref[...] = c + scat_c.astype(jnp.bfloat16)

    # only the root-node states leave the kernel (no full-state HBM writeback)
    @pl.when(lev == n_lev - 1)
    def _emit():
        R = r_ref[...]                   # bf16 [T_pad, N_pad] root one-hot
        fh_ref[...] = jnp.dot(R, h_ref[...], preferred_element_type=jnp.float32)
        fc_ref[...] = jnp.dot(R, c_ref[...], preferred_element_type=jnp.float32)


# ----------------------------------------------------------------------------
# host-side one-time precompute of the level plan (mirrors the PyTorch batching)
# ----------------------------------------------------------------------------
def _build_level_plan(node_order, adjacency_list, edge_order, n_pad):
    node_order = np.asarray(node_order)
    adjacency_list = np.asarray(adjacency_list).reshape(-1, 2)
    edge_order = np.asarray(edge_order)
    L = int(node_order.max()) + 1

    m_max = max(int((node_order == it).sum()) for it in range(L))
    e_max = max([int((edge_order == it).sum()) for it in range(1, L)] + [1])
    M_max = _round_up(max(m_max, 1), 8)
    E_max = _round_up(max(e_max, 1), 128)     # lane dim of S -> 128-aligned

    P = np.zeros((L, M_max, n_pad), np.float32)
    Gc = np.zeros((L, E_max, n_pad), np.float32)
    Gp = np.zeros((L, E_max, n_pad), np.float32)
    S = np.zeros((L, M_max, E_max), np.float32)

    for it in range(L):
        nodes = np.where(node_order == it)[0]
        m = len(nodes)
        P[it, np.arange(m), nodes] = 1.0
        if it > 0:
            eidx = np.where(edge_order == it)[0]
            if len(eidx):
                adj = adjacency_list[eidx]
                parents = adj[:, 0].astype(np.int64)
                children = adj[:, 1].astype(np.int64)
                ne = len(eidx)
                # torch.unique_consecutive(parent, return_counts) -> segment ids
                change = np.concatenate([[True], parents[1:] != parents[:-1]])
                seg_ids = np.cumsum(change) - 1
                assert int(seg_ids[-1]) + 1 == m, (
                    "unique_consecutive(parent) segment count must match the number "
                    "of nodes at this level (batching assumption of the original model)")
                Gc[it, np.arange(ne), children] = 1.0
                Gp[it, np.arange(ne), parents] = 1.0
                S[it, seg_ids, np.arange(ne)] = 1.0
    return L, M_max, E_max, P, Gc, Gp, S


def _build_root_matrix(node_order, treesizes, n_pad, t_pad):
    """findStartTree — reproduces the original exactly, including the fact that
    argmax indices for trees > 0 are *relative* to the tree slice but used as
    global node indices."""
    node_order = np.asarray(node_order)
    R = np.zeros((t_pad, n_pad), np.float32)
    count = 0
    for t in range(len(treesizes)):
        seg = node_order[count:count + int(treesizes[t])]
        R[t, int(np.argmax(seg))] = 1.0
        count += int(treesizes[t])
    return R


def _pack_params(params, H, H_pad, K, K_pad):
    """Fuse + pad per-layer weights into lane-dense layouts (zero-padded rows/cols)."""
    n_layer = len(params["W_iou"])
    W_fused = np.zeros((n_layer, K_pad, 4 * H_pad), np.float32)
    b_fused = np.zeros((n_layer, 1, 4 * H_pad), np.float32)
    U_iou_p = np.zeros((n_layer, H_pad, 3 * H_pad), np.float32)
    U_f_p = np.zeros((n_layer, H_pad, H_pad), np.float32)
    for l in range(n_layer):
        wi = np.asarray(params["W_iou"][l]); bi = np.asarray(params["b_iou"][l])
        ui = np.asarray(params["U_iou"][l])
        wf = np.asarray(params["W_f"][l]); bf = np.asarray(params["b_f"][l])
        uf = np.asarray(params["U_f"][l])
        for g in range(3):
            W_fused[l, :K, g * H_pad:g * H_pad + H] = wi[:, g * H:(g + 1) * H]
            b_fused[l, 0, g * H_pad:g * H_pad + H] = bi[g * H:(g + 1) * H]
            U_iou_p[l, :H, g * H_pad:g * H_pad + H] = ui[:, g * H:(g + 1) * H]
        W_fused[l, :K, 3 * H_pad:3 * H_pad + H] = wf
        b_fused[l, 0, 3 * H_pad:3 * H_pad + H] = bf
        U_f_p[l, :H, :H] = uf
    return W_fused, b_fused, U_iou_p, U_f_p


# ----------------------------------------------------------------------------
# parameter init (matches nn.Linear default uniform init ranges)
# ----------------------------------------------------------------------------
def init_params(key, in_features, out_features, n_layer):
    params = {"W_iou": [], "b_iou": [], "U_iou": [], "W_f": [], "b_f": [], "U_f": []}
    for _ in range(n_layer):
        key, *ks = jax.random.split(key, 7)
        s_in = 1.0 / np.sqrt(in_features)
        s_out = 1.0 / np.sqrt(out_features)
        params["W_iou"].append(
            jax.random.uniform(ks[0], (in_features, 3 * out_features), jnp.float32, -s_in, s_in))
        params["b_iou"].append(
            jax.random.uniform(ks[1], (3 * out_features,), jnp.float32, -s_in, s_in))
        params["U_iou"].append(
            jax.random.uniform(ks[2], (out_features, 3 * out_features), jnp.float32, -s_out, s_out))
        params["W_f"].append(
            jax.random.uniform(ks[3], (in_features, out_features), jnp.float32, -s_in, s_in))
        params["b_f"].append(
            jax.random.uniform(ks[4], (out_features,), jnp.float32, -s_in, s_in))
        params["U_f"].append(
            jax.random.uniform(ks[5], (out_features, out_features), jnp.float32, -s_out, s_out))
    return params


# ----------------------------------------------------------------------------
# TreeLSTM forward: one fused pallas_call for all layers x levels
# ----------------------------------------------------------------------------
def tree_lstm_forward(params, features, node_order, adjacency_list, edge_order, treesizes):
    node_order = np.asarray(node_order)
    adjacency_list = np.asarray(adjacency_list).reshape(-1, 2)
    edge_order = np.asarray(edge_order)

    n_layer = len(params["W_iou"])
    N = int(node_order.shape[0])
    K = int(np.asarray(params["W_iou"][0]).shape[0])
    H = int(np.asarray(params["U_f"][0]).shape[0])
    T = len(treesizes)

    # lane dims 128-aligned, sublane dims 8-aligned
    N_pad = _round_up(N, 128)
    K_pad = _round_up(K, 128)
    H_pad = _round_up(H, 128)
    T_pad = _round_up(max(T, 1), 8)

    # one-time host precompute (layer independent)
    L, M_max, E_max, P, Gc, Gp, S = _build_level_plan(
        node_order, adjacency_list, edge_order, N_pad)
    R = _build_root_matrix(node_order, treesizes, N_pad, T_pad)
    W_fused, b_fused, U_iou_p, U_f_p = _pack_params(params, H, H_pad, K, K_pad)

    feat_np = np.zeros((N_pad, K_pad), np.float32)
    feat_np[:N, :K] = np.asarray(features, np.float32)

    bf = jnp.bfloat16
    feat_j = jnp.asarray(feat_np, dtype=bf)
    W_j = jnp.asarray(W_fused, dtype=bf)
    b_j = jnp.asarray(b_fused)                 # f32 bias (tiny, added to f32 acc)
    Ui_j = jnp.asarray(U_iou_p, dtype=bf)
    Uf_j = jnp.asarray(U_f_p, dtype=bf)
    P_j = jnp.asarray(P, dtype=bf)             # 0/1 exact in bf16
    Gc_j = jnp.asarray(Gc, dtype=bf)
    Gp_j = jnp.asarray(Gp, dtype=bf)
    S_j = jnp.asarray(S, dtype=bf)
    R_j = jnp.asarray(R, dtype=bf)

    # ---------------- VMEM budget (explicit limit; v5e/v7x default scoped limits are low)
    blk_bytes = (
        N_pad * K_pad * 2                      # features
        + K_pad * 4 * H_pad * 2                # W_fused block
        + 4 * H_pad * 4                        # bias block (f32)
        + H_pad * 3 * H_pad * 2                # U_iou
        + H_pad * H_pad * 2                    # U_f
        + M_max * N_pad * 2                    # P
        + 2 * E_max * N_pad * 2                # Gc, Gp
        + M_max * E_max * 2                    # S
        + T_pad * N_pad * 2                    # R
        + 2 * T_pad * H_pad * 4                # output blocks (f32)
    )
    scratch_bytes = N_pad * 4 * H_pad * 2 + 2 * N_pad * H_pad * 2
    vmem_needed = 2 * blk_bytes + scratch_bytes          # double-buffered blocks + scratch
    vmem_limit = int(min(max(2 * vmem_needed, 32 * 2 ** 20), 60 * 2 ** 20))

    # ---------------- advisory cost estimate for XLA's scheduler
    flops_level = (
        2 * M_max * N_pad * 3 * H_pad          # P @ wiou
        + 2 * 2 * E_max * N_pad * H_pad        # Gc @ h, Gc @ c
        + 2 * E_max * N_pad * H_pad            # Gp @ wf
        + 2 * 2 * M_max * E_max * H_pad        # S @ child_h, S @ fc
        + 2 * E_max * H_pad * H_pad            # child_h @ U_f
        + 2 * M_max * H_pad * 3 * H_pad        # h_sum @ U_iou
        + 2 * 2 * M_max * N_pad * H_pad        # scatter (P^T contraction) x2
    )
    flops = n_layer * (2 * N_pad * K_pad * 4 * H_pad + L * flops_level
                       + 2 * 2 * T_pad * N_pad * H_pad)
    transcendentals = n_layer * L * (5 * M_max * H_pad + E_max * H_pad)
    bytes_accessed = (
        feat_j.size * 2 + W_j.size * 2 + b_j.size * 4 + Ui_j.size * 2 + Uf_j.size * 2
        + n_layer * (P_j.size + Gc_j.size + Gp_j.size + S_j.size) * 2
        + R_j.size * 2 + 2 * n_layer * T_pad * H_pad * 4
    )
    cost = pl.CostEstimate(flops=int(flops), transcendentals=int(transcendentals),
                           bytes_accessed=int(bytes_accessed))

    grid_spec = pltpu.PrefetchScalarGridSpec(
        num_scalar_prefetch=0,
        grid=(n_layer, L),
        in_specs=[
            # resident across all levels (constant index maps)
            pl.BlockSpec((N_pad, K_pad), lambda lay, lev: (0, 0)),
            pl.BlockSpec((None, K_pad, 4 * H_pad), lambda lay, lev: (lay, 0, 0)),
            pl.BlockSpec((None, 1, 4 * H_pad), lambda lay, lev: (lay, 0, 0)),
            pl.BlockSpec((None, H_pad, 3 * H_pad), lambda lay, lev: (lay, 0, 0)),
            pl.BlockSpec((None, H_pad, H_pad), lambda lay, lev: (lay, 0, 0)),
            # per-level one-hot plan matrices
            pl.BlockSpec((None, M_max, N_pad), lambda lay, lev: (lev, 0, 0)),
            pl.BlockSpec((None, E_max, N_pad), lambda lay, lev: (lev, 0, 0)),
            pl.BlockSpec((None, E_max, N_pad), lambda lay, lev: (lev, 0, 0)),
            pl.BlockSpec((None, M_max, E_max), lambda lay, lev: (lev, 0, 0)),
            # root gather matrix
            pl.BlockSpec((T_pad, N_pad), lambda lay, lev: (0, 0)),
        ],
        out_specs=(
            pl.BlockSpec((None, T_pad, H_pad), lambda lay, lev: (lay, 0, 0)),
            pl.BlockSpec((None, T_pad, H_pad), lambda lay, lev: (lay, 0, 0)),
        ),
        scratch_shapes=[
            pltpu.VMEM((N_pad, 4 * H_pad), jnp.bfloat16),   # wx
            pltpu.VMEM((N_pad, H_pad), jnp.bfloat16),       # h
            pltpu.VMEM((N_pad, H_pad), jnp.bfloat16),       # c
        ],
    )

    fh_all, fc_all = pl.pallas_call(
        _tree_lstm_kernel,
        out_shape=(
            jax.ShapeDtypeStruct((n_layer, T_pad, H_pad), jnp.float32),
            jax.ShapeDtypeStruct((n_layer, T_pad, H_pad), jnp.float32),
        ),
        grid_spec=grid_spec,
        compiler_params=pltpu.CompilerParams(
            dimension_semantics=("parallel", "arbitrary"),
            vmem_limit_bytes=vmem_limit),
        cost_estimate=cost,
    )(feat_j, W_j, b_j, Ui_j, Uf_j, P_j, Gc_j, Gp_j, S_j, R_j)

    f_h = fh_all[:, :T, :H]
    f_c = fc_all[:, :T, :H]
    return f_h, f_c


# ----------------------------------------------------------------------------
# pure-numpy reference (float64) mirroring the PyTorch forward, for self-check
# ----------------------------------------------------------------------------
def _reference_forward(params, features, node_order, adjacency_list, edge_order, treesizes):
    node_order = np.asarray(node_order)
    adjacency_list = np.asarray(adjacency_list).reshape(-1, 2)
    edge_order = np.asarray(edge_order)
    n_layer = len(params["W_iou"])
    N = node_order.shape[0]
    H = np.asarray(params["U_f"][0]).shape[0]
    feats = np.asarray(features, np.float64)

    def sig(x):
        return 1.0 / (1.0 + np.exp(-x))

    f_h = np.zeros((n_layer, len(treesizes), H))
    f_c = np.zeros((n_layer, len(treesizes), H))
    for layer in range(n_layer):
        Wi = np.asarray(params["W_iou"][layer], np.float64)
        bi = np.asarray(params["b_iou"][layer], np.float64)
        Ui = np.asarray(params["U_iou"][layer], np.float64)
        Wf = np.asarray(params["W_f"][layer], np.float64)
        bf = np.asarray(params["b_f"][layer], np.float64)
        Uf = np.asarray(params["U_f"][layer], np.float64)
        h = np.zeros((N, H)); c = np.zeros((N, H))
        for it in range(int(node_order.max()) + 1):
            nmask = node_order == it
            x = feats[nmask]
            m = int(nmask.sum())
            if it == 0:
                iou = x @ Wi + bi
            else:
                emask = edge_order == it
                adj = adjacency_list[emask]
                par = adj[:, 0].astype(np.int64)
                chi = adj[:, 1].astype(np.int64)
                child_h = h[chi]; child_c = c[chi]
                change = np.concatenate([[True], par[1:] != par[:-1]])
                seg = np.cumsum(change) - 1
                h_sum = np.zeros((m, H)); np.add.at(h_sum, seg, child_h)
                iou = x @ Wi + bi + h_sum @ Ui
            i = sig(iou[:, :H]); o = sig(iou[:, H:2 * H]); u = np.tanh(iou[:, 2 * H:])
            if it == 0:
                c[nmask] = i * u
            else:
                f = sig(feats[par] @ Wf + bf + child_h @ Uf)
                fc = f * child_c
                c_sum = np.zeros((m, H)); np.add.at(c_sum, seg, fc)
                c[nmask] = i * u + c_sum
            h[nmask] = o * np.tanh(c[nmask])
        idxs = []; count = 0
        for t in range(len(treesizes)):
            idxs.append(int(np.argmax(node_order[count:count + int(treesizes[t])])))
            count += int(treesizes[t])
        f_h[layer] = h[np.asarray(idxs)]
        f_c[layer] = c[np.asarray(idxs)]
    return f_h, f_c


# ----------------------------------------------------------------------------
if __name__ == "__main__":
    in_features = 32
    out_features = 32
    n_layer = 2

    key = jax.random.PRNGKey(0)
    kp, kf = jax.random.split(key)
    params = init_params(kp, in_features, out_features, n_layer)

    # Forest of 2 trees, 9 nodes total.
    #   Tree 0 (nodes 0..4): 0 <- {1, 2}, 1 <- {3, 4}; leaves 2,3,4
    #   Tree 1 (nodes 5..8): 5 <- {6, 7, 8};          leaves 6,7,8
    node_order = np.array([2, 1, 0, 0, 0, 1, 0, 0, 0], dtype=np.int64)
    adjacency_list = np.array(
        [[0, 1], [0, 2], [1, 3], [1, 4], [5, 6], [5, 7], [5, 8]], dtype=np.int64)
    edge_order = np.array([2, 2, 1, 1, 1, 1, 1], dtype=np.int64)
    treesizes = [5, 4]

    features = jax.random.normal(kf, (node_order.shape[0], in_features), jnp.float32)

    f_h, f_c = tree_lstm_forward(
        params, features, node_order, adjacency_list, edge_order, treesizes)
    jax.block_until_ready((f_h, f_c))

    assert f_h.shape == (n_layer, len(treesizes), out_features)
    assert f_c.shape == (n_layer, len(treesizes), out_features)
    assert bool(jnp.all(jnp.isfinite(f_h))) and bool(jnp.all(jnp.isfinite(f_c)))

    ref_h, ref_c = _reference_forward(
        params, features, node_order, adjacency_list, edge_order, treesizes)
    err_h = float(np.max(np.abs(np.asarray(f_h, np.float64) - ref_h)))
    err_c = float(np.max(np.abs(np.asarray(f_c, np.float64) - ref_c)))
    assert err_h < 5e-2 and err_c < 5e-2, (err_h, err_c)

    print("KERNEL_OK")
</pallas_src>

<mosaic_0001>
module attributes {stable_mosaic.version = 11 : i64} {
  func.func @_tree_lstm_kernel(%arg0: i32, %arg1: i32, %arg2: memref<128x128xbf16, #tpu.memory_space<vmem>>, %arg3: memref<1x128x512xbf16, #tpu.memory_space<vmem>>, %arg4: memref<1x1x512xf32, #tpu.memory_space<vmem>>, %arg5: memref<1x128x384xbf16, #tpu.memory_space<vmem>>, %arg6: memref<1x128x128xbf16, #tpu.memory_space<vmem>>, %arg7: memref<1x8x128xbf16, #tpu.memory_space<vmem>>, %arg8: memref<1x128x128xbf16, #tpu.memory_space<vmem>>, %arg9: memref<1x128x128xbf16, #tpu.memory_space<vmem>>, %arg10: memref<1x8x128xbf16, #tpu.memory_space<vmem>>, %arg11: memref<8x128xbf16, #tpu.memory_space<vmem>>, %arg12: memref<1x8x128xf32, #tpu.memory_space<vmem>>, %arg13: memref<1x8x128xf32, #tpu.memory_space<vmem>>, %arg14: memref<128x512xbf16, #tpu.memory_space<vmem>>, %arg15: memref<128x128xbf16, #tpu.memory_space<vmem>>, %arg16: memref<128x128xbf16, #tpu.memory_space<vmem>>) attributes {dimension_semantics = [#tpu.dimension_semantics<parallel>, #tpu.dimension_semantics<arbitrary>], iteration_bounds = array<i64: 2, 3>, scalar_prefetch = 0 : i64, scratch_operands = 3 : i64, tpu.core_type = #tpu.core_type<tc>, window_params = [{pipeline_mode = #tpu.pipeline_mode<synchronous>, transform_indices = @transform_0, window_bounds = array<i64: 128, 128>}, {transform_indices = @transform_1, window_bounds = array<i64: 1, 128, 512>}, {transform_indices = @transform_2, window_bounds = array<i64: 1, 1, 512>}, {transform_indices = @transform_3, window_bounds = array<i64: 1, 128, 384>}, {transform_indices = @transform_4, window_bounds = array<i64: 1, 128, 128>}, {transform_indices = @transform_5, window_bounds = array<i64: 1, 8, 128>}, {transform_indices = @transform_6, window_bounds = array<i64: 1, 128, 128>}, {transform_indices = @transform_7, window_bounds = array<i64: 1, 128, 128>}, {transform_indices = @transform_8, window_bounds = array<i64: 1, 8, 128>}, {pipeline_mode = #tpu.pipeline_mode<synchronous>, transform_indices = @transform_9, window_bounds = array<i64: 8, 128>}, {transform_indices = @transform_10, window_bounds = array<i64: 1, 8, 128>}, {transform_indices = @transform_11, window_bounds = array<i64: 1, 8, 128>}]} {
    %c0_i32 = arith.constant 0 : i32
    %0 = arith.cmpi eq, %arg1, %c0_i32 : i32
    %1 = arith.extui %0 : i1 to i32
    %c0_i32_0 = arith.constant 0 : i32
    %2 = arith.cmpi ne, %1, %c0_i32_0 : i32
    scf.if %2 {
      %c0_41 = arith.constant 0 : index
      %c0_42 = arith.constant 0 : index
      %70 = vector.load %arg2[%c0_41, %c0_42] : memref<128x128xbf16, #tpu.memory_space<vmem>>, vector<128x128xbf16>
      %c0_43 = arith.constant 0 : index
      %c0_44 = arith.constant 0 : index
      %c0_45 = arith.constant 0 : index
      %71 = vector.load %arg3[%c0_43, %c0_44, %c0_45] : memref<1x128x512xbf16, #tpu.memory_space<vmem>>, vector<1x128x512xbf16>
      %72 = vector.shape_cast %71 : vector<1x128x512xbf16> to vector<128x512xbf16>
      %cst_46 = arith.constant dense<0.000000e+00> : vector<128x512xf32>
      %73 = tpu.matmul %70, %72, %cst_46 {dimension_numbers = #tpu.dot_dimension_numbers<[1], [0], [0], [1], [0, 0, 1, 1], [], []>} : vector<128x128xbf16>, vector<128x512xbf16>, vector<128x512xf32> -> vector<128x512xf32>
      %c0_47 = arith.constant 0 : index
      %c0_48 = arith.constant 0 : index
      %c0_49 = arith.constant 0 : index
      %74 = vector.load %arg4[%c0_47, %c0_48, %c0_49] : memref<1x1x512xf32, #tpu.memory_space<vmem>>, vector<1x1x512xf32>
      %75 = vector.shape_cast %74 : vector<1x1x512xf32> to vector<1x512xf32>
      %76 = vector.broadcast %75 : vector<1x512xf32> to vector<128x512xf32>
      %77 = arith.addf %73, %76 : vector<128x512xf32>
      %78 = arith.truncf %77 : vector<128x512xf32> to vector<128x512xbf16>
      %c0_50 = arith.constant 0 : index
      %c0_51 = arith.constant 0 : index
      %79 = vector.load %arg14[%c0_50, %c0_51] : memref<128x512xbf16, #tpu.memory_space<vmem>>, vector<128x512xbf16>
      tpu.vector_store %arg14[%c0_50, %c0_51], %78 {strides = array<i32>} : memref<128x512xbf16, #tpu.memory_space<vmem>>, vector<128x512xbf16>,
      %cst_52 = arith.constant 0.000000e+00 : bf16
      %80 = vector.broadcast %cst_52 : bf16 to vector<128x128xbf16>
      %c0_53 = arith.constant 0 : index
      %c0_54 = arith.constant 0 : index
      %81 = vector.load %arg15[%c0_53, %c0_54] : memref<128x128xbf16, #tpu.memory_space<vmem>>, vector<128x128xbf16>
      tpu.vector_store %arg15[%c0_53, %c0_54], %80 {strides = array<i32>} : memref<128x128xbf16, #tpu.memory_space<vmem>>, vector<128x128xbf16>,
      %cst_55 = arith.constant 0.000000e+00 : bf16
      %82 = vector.broadcast %cst_55 : bf16 to vector<128x128xbf16>
      %c0_56 = arith.constant 0 : index
      %c0_57 = arith.constant 0 : index
      %83 = vector.load %arg16[%c0_56, %c0_57] : memref<128x128xbf16, #tpu.memory_space<vmem>>, vector<128x128xbf16>
      tpu.vector_store %arg16[%c0_56, %c0_57], %82 {strides = array<i32>} : memref<128x128xbf16, #tpu.memory_space<vmem>>, vector<128x128xbf16>,
    } else {
    }
    %c0 = arith.constant 0 : index
    %c0_1 = arith.constant 0 : index
    %3 = vector.load %arg14[%c0, %c0_1] : memref<128x512xbf16, #tpu.memory_space<vmem>>, vector<128x512xbf16>
    %4 = vector.extract_strided_slice %3 {offsets = [0, 0], sizes = [128, 384], strides = [1, 1]} : vector<128x512xbf16> to vector<128x384xbf16>
    %5 = vector.extract_strided_slice %3 {offsets = [0, 384], sizes = [128, 128], strides = [1, 1]} : vector<128x512xbf16> to vector<128x128xbf16>
    %c0_2 = arith.constant 0 : index
    %c0_3 = arith.constant 0 : index
    %c0_4 = arith.constant 0 : index
    %6 = vector.load %arg7[%c0_2, %c0_3, %c0_4] : memref<1x8x128xbf16, #tpu.memory_space<vmem>>, vector<1x8x128xbf16>
    %7 = vector.shape_cast %6 : vector<1x8x128xbf16> to vector<8x128xbf16>
    %c0_5 = arith.constant 0 : index
    %c0_6 = arith.constant 0 : index
    %c0_7 = arith.constant 0 : index
    %8 = vector.load %arg8[%c0_5, %c0_6, %c0_7] : memref<1x128x128xbf16, #tpu.memory_space<vmem>>, vector<1x128x128xbf16>
    %9 = vector.shape_cast %8 : vector<1x128x128xbf16> to vector<128x128xbf16>
    %c0_8 = arith.constant 0 : index
    %c0_9 = arith.constant 0 : index
    %c0_10 = arith.constant 0 : index
    %10 = vector.load %arg9[%c0_8, %c0_9, %c0_10] : memref<1x128x128xbf16, #tpu.memory_space<vmem>>, vector<1x128x128xbf16>
    %11 = vector.shape_cast %10 : vector<1x128x128xbf16> to vector<128x128xbf16>
    %c0_11 = arith.constant 0 : index
    %c0_12 = arith.constant 0 : index
    %c0_13 = arith.constant 0 : index
    %12 = vector.load %arg10[%c0_11, %c0_12, %c0_13] : memref<1x8x128xbf16, #tpu.memory_space<vmem>>, vector<1x8x128xbf16>
    %13 = vector.shape_cast %12 : vector<1x8x128xbf16> to vector<8x128xbf16>
    %c0_14 = arith.constant 0 : index
    %c0_15 = arith.constant 0 : index
    %14 = vector.load %arg15[%c0_14, %c0_15] : memref<128x128xbf16, #tpu.memory_space<vmem>>, vector<128x128xbf16>
    %c0_16 = arith.constant 0 : index
    %c0_17 = arith.constant 0 : index
    %15 = vector.load %arg16[%c0_16, %c0_17] : memref<128x128xbf16, #tpu.memory_space<vmem>>, vector<128x128xbf16>
    %cst = arith.constant dense<0.000000e+00> : vector<8x384xf32>
    %16 = tpu.matmul %7, %4, %cst {dimension_numbers = #tpu.dot_dimension_numbers<[1], [0], [0], [1], [0, 0, 1, 1], [], []>} : vector<8x128xbf16>, vector<128x384xbf16>, vector<8x384xf32> -> vector<8x384xf32>
    %cst_18 = arith.constant dense<0.000000e+00> : vector<128x128xf32>
    %17 = tpu.matmul %9, %14, %cst_18 {dimension_numbers = #tpu.dot_dimension_numbers<[1], [0], [0], [1], [0, 0, 1, 1], [], []>} : vector<128x128xbf16>, vector<128x128xbf16>, vector<128x128xf32> -> vector<128x128xf32>
    %cst_19 = arith.constant dense<0.000000e+00> : vector<128x128xf32>
    %18 = tpu.matmul %9, %15, %cst_19 {dimension_numbers = #tpu.dot_dimension_numbers<[1], [0], [0], [1], [0, 0, 1, 1], [], []>} : vector<128x128xbf16>, vector<128x128xbf16>, vector<128x128xf32> -> vector<128x128xf32>
    %cst_20 = arith.constant dense<0.000000e+00> : vector<128x128xf32>
    %19 = tpu.matmul %11, %5, %cst_20 {dimension_numbers = #tpu.dot_dimension_numbers<[1], [0], [0], [1], [0, 0, 1, 1], [], []>} : vector<128x128xbf16>, vector<128x128xbf16>, vector<128x128xf32> -> vector<128x128xf32>
    %20 = arith.truncf %17 : vector<128x128xf32> to vector<128x128xbf16>
    %cst_21 = arith.constant dense<0.000000e+00> : vector<8x128xf32>
    %21 = tpu.matmul %13, %20, %cst_21 {dimension_numbers = #tpu.dot_dimension_numbers<[1], [0], [0], [1], [0, 0, 1, 1], [], []>} : vector<8x128xbf16>, vector<128x128xbf16>, vector<8x128xf32> -> vector<8x128xf32>
    %c0_22 = arith.constant 0 : index
    %c0_23 = arith.constant 0 : index
    %c0_24 = arith.constant 0 : index
    %22 = vector.load %arg6[%c0_22, %c0_23, %c0_24] : memref<1x128x128xbf16, #tpu.memory_space<vmem>>, vector<1x128x128xbf16>
    %23 = vector.shape_cast %22 : vector<1x128x128xbf16> to vector<128x128xbf16>
    %cst_25 = arith.constant dense<0.000000e+00> : vector<128x128xf32>
    %24 = tpu.matmul %20, %23, %cst_25 {dimension_numbers = #tpu.dot_dimension_numbers<[1], [0], [0], [1], [0, 0, 1, 1], [], []>} : vector<128x128xbf16>, vector<128x128xbf16>, vector<128x128xf32> -> vector<128x128xf32>
    %25 = arith.addf %19, %24 : vector<128x128xf32>
    %26 = arith.negf %25 : vector<128x128xf32>
    %27 = math.exp %26 : vector<128x128xf32>
    %cst_26 = arith.constant 1.000000e+00 : f32
    %28 = vector.broadcast %cst_26 : f32 to vector<128x128xf32>
    %29 = arith.addf %28, %27 : vector<128x128xf32>
    %30 = arith.divf %28, %29 : vector<128x128xf32>
    %31 = arith.mulf %30, %18 : vector<128x128xf32>
    %32 = arith.truncf %31 : vector<128x128xf32> to vector<128x128xbf16>
    %cst_27 = arith.constant dense<0.000000e+00> : vector<8x128xf32>
    %33 = tpu.matmul %13, %32, %cst_27 {dimension_numbers = #tpu.dot_dimension_numbers<[1], [0], [0], [1], [0, 0, 1, 1], [], []>} : vector<8x128xbf16>, vector<128x128xbf16>, vector<8x128xf32> -> vector<8x128xf32>
    %34 = arith.truncf %21 : vector<8x128xf32> to vector<8x128xbf16>
    %c0_28 = arith.constant 0 : index
    %c0_29 = arith.constant 0 : index
    %c0_30 = arith.constant 0 : index
    %35 = vector.load %arg5[%c0_28, %c0_29, %c0_30] : memref<1x128x384xbf16, #tpu.memory_space<vmem>>, vector<1x128x384xbf16>
    %36 = vector.shape_cast %35 : vector<1x128x384xbf16> to vector<128x384xbf16>
    %cst_31 = arith.constant dense<0.000000e+00> : vector<8x384xf32>
    %37 = tpu.matmul %34, %36, %cst_31 {dimension_numbers = #tpu.dot_dimension_numbers<[1], [0], [0], [1], [0, 0, 1, 1], [], []>} : vector<8x128xbf16>, vector<128x384xbf16>, vector<8x384xf32> -> vector<8x384xf32>
    %38 = arith.addf %16, %37 : vector<8x384xf32>
    %39 = vector.extract_strided_slice %38 {offsets = [0, 0], sizes = [8, 128], strides = [1, 1]} : vector<8x384xf32> to vector<8x128xf32>
    %40 = arith.negf %39 : vector<8x128xf32>
    %41 = math.exp %40 : vector<8x128xf32>
    %cst_32 = arith.constant 1.000000e+00 : f32
    %42 = vector.broadcast %cst_32 : f32 to vector<8x128xf32>
    %43 = arith.addf %42, %41 : vector<8x128xf32>
    %44 = arith.divf %42, %43 : vector<8x128xf32>
    %45 = vector.extract_strided_slice %38 {offsets = [0, 128], sizes = [8, 128], strides = [1, 1]} : vector<8x384xf32> to vector<8x128xf32>
    %46 = arith.negf %45 : vector<8x128xf32>
    %47 = math.exp %46 : vector<8x128xf32>
    %cst_33 = arith.constant 1.000000e+00 : f32
    %48 = vector.broadcast %cst_33 : f32 to vector<8x128xf32>
    %49 = arith.addf %48, %47 : vector<8x128xf32>
    %50 = arith.divf %48, %49 : vector<8x128xf32>
    %51 = vector.extract_strided_slice %38 {offsets = [0, 256], sizes = [8, 128], strides = [1, 1]} : vector<8x384xf32> to vector<8x128xf32>
    %52 = math.tanh %51 : vector<8x128xf32>
    %53 = arith.mulf %44, %52 : vector<8x128xf32>
    %54 = arith.addf %53, %33 : vector<8x128xf32>
    %55 = math.tanh %54 : vector<8x128xf32>
    %56 = arith.mulf %50, %55 : vector<8x128xf32>
    %57 = arith.truncf %56 : vector<8x128xf32> to vector<8x128xbf16>
    %cst_34 = arith.constant dense<0.000000e+00> : vector<128x128xf32>
    %58 = tpu.matmul %7, %57, %cst_34 {dimension_numbers = #tpu.dot_dimension_numbers<[0], [0], [1], [1], [0, 1, 1, 1], [], []>} : vector<8x128xbf16>, vector<8x128xbf16>, vector<128x128xf32> -> vector<128x128xf32>
    %59 = arith.truncf %54 : vector<8x128xf32> to vector<8x128xbf16>
    %cst_35 = arith.constant dense<0.000000e+00> : vector<128x128xf32>
    %60 = tpu.matmul %7, %59, %cst_35 {dimension_numbers = #tpu.dot_dimension_numbers<[0], [0], [1], [1], [0, 1, 1, 1], [], []>} : vector<8x128xbf16>, vector<8x128xbf16>, vector<128x128xf32> -> vector<128x128xf32>
    %61 = arith.truncf %58 : vector<128x128xf32> to vector<128x128xbf16>
    %62 = arith.addf %14, %61 : vector<128x128xbf16>
    %c0_36 = arith.constant 0 : index
    %c0_37 = arith.constant 0 : index
    %63 = vector.load %arg15[%c0_36, %c0_37] : memref<128x128xbf16, #tpu.memory_space<vmem>>, vector<128x128xbf16>
    tpu.vector_store %arg15[%c0_36, %c0_37], %62 {strides = array<i32>} : memref<128x128xbf16, #tpu.memory_space<vmem>>, vector<128x128xbf16>,
    %64 = arith.truncf %60 : vector<128x128xf32> to vector<128x128xbf16>
    %65 = arith.addf %15, %64 : vector<128x128xbf16>
    %c0_38 = arith.constant 0 : index
    %c0_39 = arith.constant 0 : index
    %66 = vector.load %arg16[%c0_38, %c0_39] : memref<128x128xbf16, #tpu.memory_space<vmem>>, vector<128x128xbf16>
    tpu.vector_store %arg16[%c0_38, %c0_39], %65 {strides = array<i32>} : memref<128x128xbf16, #tpu.memory_space<vmem>>, vector<128x128xbf16>,
    %c2_i32 = arith.constant 2 : i32
    %67 = arith.cmpi eq, %arg1, %c2_i32 : i32
    %68 = arith.extui %67 : i1 to i32
    %c0_i32_40 = arith.constant 0 : i32
    %69 = arith.cmpi ne, %68, %c0_i32_40 : i32
    scf.if %69 {
      %c0_41 = arith.constant 0 : index
      %c0_42 = arith.constant 0 : index
      %70 = vector.load %arg11[%c0_41, %c0_42] : memref<8x128xbf16, #tpu.memory_space<vmem>>, vector<8x128xbf16>
      %c0_43 = arith.constant 0 : index
      %c0_44 = arith.constant 0 : index
      %71 = vector.load %arg15[%c0_43, %c0_44] : memref<128x128xbf16, #tpu.memory_space<vmem>>, vector<128x128xbf16>
      %cst_45 = arith.constant dense<0.000000e+00> : vector<8x128xf32>
      %72 = tpu.matmul %70, %71, %cst_45 {dimension_numbers = #tpu.dot_dimension_numbers<[1], [0], [0], [1], [0, 0, 1, 1], [], []>} : vector<8x128xbf16>, vector<128x128xbf16>, vector<8x128xf32> -> vector<8x128xf32>
      %c0_46 = arith.constant 0 : index
      %c0_47 = arith.constant 0 : index
      %c0_48 = arith.constant 0 : index
      %73 = vector.load %arg12[%c0_46, %c0_47, %c0_48] : memref<1x8x128xf32, #tpu.memory_space<vmem>>, vector<1x8x128xf32>
      %74 = vector.shape_cast %73 : vector<1x8x128xf32> to vector<8x128xf32>
      %75 = vector.shape_cast %72 : vector<8x128xf32> to vector<1x8x128xf32>
      tpu.vector_store %arg12[%c0_46, %c0_47, %c0_48], %75 {strides = array<i32>} : memref<1x8x128xf32, #tpu.memory_space<vmem>>, vector<1x8x128xf32>,
      %c0_49 = arith.constant 0 : index
      %c0_50 = arith.constant 0 : index
      %76 = vector.load %arg16[%c0_49, %c0_50] : memref<128x128xbf16, #tpu.memory_space<vmem>>, vector<128x128xbf16>
      %cst_51 = arith.constant dense<0.000000e+00> : vector<8x128xf32>
      %77 = tpu.matmul %70, %76, %cst_51 {dimension_numbers = #tpu.dot_dimension_numbers<[1], [0], [0], [1], [0, 0, 1, 1], [], []>} : vector<8x128xbf16>, vector<128x128xbf16>, vector<8x128xf32> -> vector<8x128xf32>
      %c0_52 = arith.constant 0 : index
      %c0_53 = arith.constant 0 : index
      %c0_54 = arith.constant 0 : index
      %78 = vector.load %arg13[%c0_52, %c0_53, %c0_54] : memref<1x8x128xf32, #tpu.memory_space<vmem>>, vector<1x8x128xf32>
      %79 = vector.shape_cast %78 : vector<1x8x128xf32> to vector<8x128xf32>
      %80 = vector.shape_cast %77 : vector<8x128xf32> to vector<1x8x128xf32>
      tpu.vector_store %arg13[%c0_52, %c0_53, %c0_54], %80 {strides = array<i32>} : memref<1x8x128xf32, #tpu.memory_space<vmem>>, vector<1x8x128xf32>,
    } else {
    }
    return
  }
  func.func @transform_0(%arg0: i32, %arg1: i32) -> (i32, i32) {
    %c0_i32 = arith.constant 0 : i32
    %c0_i32_0 = arith.constant 0 : i32
    %c0_i32_1 = arith.constant 0 : i32
    return %c0_i32, %c0_i32_0 : i32, i32
  }
  func.func @transform_1(%arg0: i32, %arg1: i32) -> (i32, i32, i32) {
    %c0_i32 = arith.constant 0 : i32
    %c0_i32_0 = arith.constant 0 : i32
    %c0_i32_1 = arith.constant 0 : i32
    return %arg0, %c0_i32, %c0_i32_0 : i32, i32, i32
  }
  func.func @transform_2(%arg0: i32, %arg1: i32) -> (i32, i32, i32) {
    %c0_i32 = arith.constant 0 : i32
    %c0_i32_0 = arith.constant 0 : i32
    %c0_i32_1 = arith.constant 0 : i32
    return %arg0, %c0_i32, %c0_i32_0 : i32, i32, i32
  }
  func.func @transform_3(%arg0: i32, %arg1: i32) -> (i32, i32, i32) {
    %c0_i32 = arith.constant 0 : i32
    %c0_i32_0 = arith.constant 0 : i32
    %c0_i32_1 = arith.constant 0 : i32
    return %arg0, %c0_i32, %c0_i32_0 : i32, i32, i32
  }
  func.func @transform_4(%arg0: i32, %arg1: i32) -> (i32, i32, i32) {
    %c0_i32 = arith.constant 0 : i32
    %c0_i32_0 = arith.constant 0 : i32
    %c0_i32_1 = arith.constant 0 : i32
    return %arg0, %c0_i32, %c0_i32_0 : i32, i32, i32
  }
  func.func @transform_5(%arg0: i32, %arg1: i32) -> (i32, i32, i32) {
    %c0_i32 = arith.constant 0 : i32
    %c0_i32_0 = arith.constant 0 : i32
    %c0_i32_1 = arith.constant 0 : i32
    return %arg1, %c0_i32, %c0_i32_0 : i32, i32, i32
  }
  func.func @transform_6(%arg0: i32, %arg1: i32) -> (i32, i32, i32) {
    %c0_i32 = arith.constant 0 : i32
    %c0_i32_0 = arith.constant 0 : i32
    %c0_i32_1 = arith.constant 0 : i32
    return %arg1, %c0_i32, %c0_i32_0 : i32, i32, i32
  }
  func.func @transform_7(%arg0: i32, %arg1: i32) -> (i32, i32, i32) {
    %c0_i32 = arith.constant 0 : i32
    %c0_i32_0 = arith.constant 0 : i32
    %c0_i32_1 = arith.constant 0 : i32
    return %arg1, %c0_i32, %c0_i32_0 : i32, i32, i32
  }
  func.func @transform_8(%arg0: i32, %arg1: i32) -> (i32, i32, i32) {
    %c0_i32 = arith.constant 0 : i32
    %c0_i32_0 = arith.constant 0 : i32
    %c0_i32_1 = arith.constant 0 : i32
    return %arg1, %c0_i32, %c0_i32_0 : i32, i32, i32
  }
  func.func @transform_9(%arg0: i32, %arg1: i32) -> (i32, i32) {
    %c0_i32 = arith.constant 0 : i32
    %c0_i32_0 = arith.constant 0 : i32
    %c0_i32_1 = arith.constant 0 : i32
    return %c0_i32, %c0_i32_0 : i32, i32
  }
  func.func @transform_10(%arg0: i32, %arg1: i32) -> (i32, i32, i32) {
    %c0_i32 = arith.constant 0 : i32
    %c0_i32_0 = arith.constant 0 : i32
    %c0_i32_1 = arith.constant 0 : i32
    return %arg0, %c0_i32, %c0_i32_0 : i32, i32, i32
  }
  func.func @transform_11(%arg0: i32, %arg1: i32) -> (i32, i32, i32) {
    %c0_i32 = arith.constant 0 : i32
    %c0_i32_0 = arith.constant 0 : i32
    %c0_i32_1 = arith.constant 0 : i32
    return %arg0, %c0_i32, %c0_i32_0 : i32, i32, i32
  }
}

</mosaic_0001>

<bundles_post_ra>
// kernel: tpu_custom_call.1
= control target key start
LH: loop header
LB: loop body
LE: loop exit
PB: predicated region body
PF: predicated region fallthrough
CT: control target
= control target key end

     0   :  { %s6096_s0 = inlined_call_operand.hbm [shape: bf16[128,128], index: 0, kind: input, shape index: {}]   ;;  %s6097_s1 = inlined_call_operand.hbm [shape: bf16[2,128,512], index: 1, kind: input, shape index: {}]   ;;  %s6098_s2 = inlined_call_operand.hbm [shape: f32[2,1,512], index: 2, kind: input, shape index: {}]   ;;  %s6099_s3 = inlined_call_operand.hbm [shape: bf16[2,128,384], index: 3, kind: input, shape index: {}]   ;;  %s6100_s4 = inlined_call_operand.hbm [shape: bf16[2,128,128], index: 4, kind: input, shape index: {}]   ;;  %s6101_s5 = inlined_call_operand.hbm [shape: bf16[3,8,128], index: 5, kind: input, shape index: {}]   ;;  %s6102_s6 = inlined_call_operand.hbm [shape: bf16[3,128,128], index: 6, kind: input, shape index: {}]   ;;  %s6103_s7 = inlined_call_operand.hbm [shape: bf16[3,128,128], index: 7, kind: input, shape index: {}]   ;;  %s6104_s8 = inlined_call_operand.hbm [shape: bf16[3,8,128], index: 8, kind: input, shape index: {}]   ;;  %s6105_s9 = inlined_call_operand.vmem [shape: bf16[8,128], index: 9, kind: input, shape index: {}]   ;;  %s6106_s10 = inlined_call_operand.hbm [shape: f32[2,8,128], index: 10, kind: output, shape index: {0}]   ;;  %s6107_s11 = inlined_call_operand.hbm [shape: f32[2,8,128], index: 11, kind: output, shape index: {1}]  }
   0x1   :  { %6135 = sst [smem:[#allocation46_spill]] %s6096_s0 }
   0x2   :  { %6136 = sst [smem:[#allocation47_spill]] %s6097_s1 }
   0x3   :  { %6137 = sst [smem:[#allocation48_spill]] %s6098_s2 }
   0x4   :  { %6138 = sst [smem:[#allocation49_spill]] %s6099_s3 }
   0x5   :  { %6139 = sst [smem:[#allocation50_spill]] %s6100_s4 }
   0x6   :  { %6140 = sst [smem:[#allocation51_spill]] %s6101_s5 }
   0x7   :  { %6141 = sst [smem:[#allocation52_spill]] %s6102_s6 }
   0x8   :  { %6142 = sst [smem:[#allocation53_spill]] %s6103_s7 }
   0x9   :  { %6143 = sst [smem:[#allocation54_spill]] %s6104_s8 }
   0xa   :  { %6144 = sst [smem:[#allocation55_spill]] %s6105_s9 }
   0xb   :  { %6145 = sst [smem:[#allocation56_spill]] %s6106_s10 }
   0xc   :  { %6146 = sst [smem:[#allocation57_spill]] %s6107_s11 }
   0xd   :  { %17 = vsyncpa [#allocation6], 0 }
   0xe   :  { %18 = vsyncpa [#allocation9], 0 }
   0xf   :  { %20 = vsyncpa [#allocation9 + $0x1], 0 }
  0x10   :  { %21 = vsyncpa [#allocation12], 0 }
  0x11   :  { %23 = vsyncpa [#allocation12 + $0x1], 0 }
  0x12   :  { %24 = vsyncpa [#allocation15], 0 }
  0x13   :  { %26 = vsyncpa [#allocation15 + $0x1], 0 }
  0x14   :  { %27 = vsyncpa [#allocation18], 0 }
  0x15   :  { %29 = vsyncpa [#allocation18 + $0x1], 0 }
  0x16   :  { %30 = vsyncpa [#allocation7], 0 }
  0x17   :  { %32 = vsyncpa [#allocation7 + $0x1], 0 }
  0x18   :  { %33 = vsyncpa [#allocation22], 0 }
  0x19   :  { %35 = vsyncpa [#allocation22 + $0x1], 0  ;;  %s5150_s17 = smov 0   ;;  %s5152_s18 = smov 0  }
  0x1a   :  { %s5154_s19 = smov 0   ;;  %s5156_s20 = smov 0  }
  0x1b   :  { %s5158_s21 = smov 0   ;;  %s5160_s22 = smov 0  }
  0x1c   :  { %s5162_s23 = smov 0   ;;  %s5164_s24 = smov 0  }
  0x1d   :  { %s5166_s25 = smov 0   ;;  %s5168_s26 = smov 0  }
  0x1e   :  { %s5170_s27 = smov 0  }
  0x1f LB: > { %6147 = sst [smem:[#allocation30_spill]] %s5048_s19  ;;  %p88_p0 = scmp.ne.s32.totalorder %s5060_s22, %s5056_s21  ;;  %s5080_s27 = sphi %s5170_s27, %s41_s27   ;;  %s5076_s26 = sphi %s5168_s26, %s6235_s26   ;;  %s5072_s25 = sphi %s5166_s25, %s6228_s25   ;;  %s5068_s24 = sphi %s5164_s24, %s6234_s24   ;;  %s5064_s23 = sphi %s5162_s23, %s6227_s23   ;;  %s5060_s22 = sphi %s5160_s22, %s6226_s22   ;;  %s5056_s21 = sphi %s5158_s21, %s6233_s21   ;;  %s5052_s20 = sphi %s5156_s20, %s6232_s20   ;;  %s5048_s19 = sphi %s5154_s19, %s6224_s19   ;;  %s5044_s18 = sphi %s5152_s18, %s6231_s18   ;;  %s5040_s17 = sphi %s5150_s17, %s6230_s17  }
  0x20   : > { %6148 = sst [smem:[#allocation31_spill]] %s5052_s20  ;;  %p89_p1 = scmp.eq.s32.totalorder %s5080_s27, 0 }
  0x21   : > { %6149 = sst [smem:[#allocation32_spill]] %s5060_s22  ;;  %p4463_p2 = scmp.lt.s32.totalorder %s5080_s27, 6 }
  0x22   : > { %6150 = sst [smem:[#allocation33_spill]] %s5064_s23  ;;  %s5211_s29 = sand.u32 1, %s5080_s27  }
  0x23   : > { %6151 = sst [smem:[#allocation34_spill]] %s5068_s24  ;;  %p90_p3 = por %p89_p1, %p88_p0 }
  0x24   : > { %6152 = sst [smem:[#allocation35_spill]] %s5072_s25  ;;  %s5219_s30 = sand.u32 1, %s5060_s22  }
  0x25   : > { %6153 = sst [smem:[#allocation36_spill]] %s5080_s27  ;;  %s4133_s12 = sshll.u32 %s5076_s26, 8 }
  0x26   : > { %s3453_s13 = sshll.u32 %s5219_s30, 8  ;;  %s6154_s1 = sld [smem:[#allocation47_spill]] }
  0x27   : > { %s394_s11 = scalar_lea.vmem [#allocation8], %s3453_s13  ;;  %p5228_p4 = pnand %p4463_p2, %p90_p3 }
  0x28   : > { %s402_s10 = sshll.u32 %s394_s11, 4  ;;  %s6111_s9 = scalar_lea.sflag [#allocation9], %s5211_s29  ;;  %s403_s10 = int_to_ptr.vmem [resolvable:$true] %s402_s10 }
  0x29   : > { %s6155_s24 = scalar_select %p5228_p4, 1, 0 }
  0x2a   : > { %s5082_s23 = smov 256   ;;  %s5083_s14 = smov 16  }
  0x2b   : > { %6156 = sst [smem:[#allocation37_spill]] %s6155_s24  ;;  %s4400_s11 = smul.u32 192, %s5076_s26 }
  0x2c   : > { %s399_s16 = scalar_lea.hbm %s6154_s1, %s4133_s12  ;;  %s4399_s12 = smul.u32 192, %s5219_s30 }
  0x2d   : > { %s400_s28 = sshll.u32 %s399_s16, 4  ;;  %s6157_s3 = sld [smem:[#allocation49_spill]]  ;;  %s401_s28 = int_to_ptr.hbm [resolvable:$true] %s400_s28 }
  0x2e   : > { %4433 = dma.hbm_to_vmem [thread:$0]  (!%p5228_p4), %s401_s28, 4096, %s403_s10, %s6111_s9, %s5082_s23, %s5082_s23, %s5083_s14  }
  0x2f   : > { %s435_s1 = scalar_lea.vmem [#allocation11], %s4399_s12  ;;  %s6110_s10 = scalar_lea.sflag [#allocation12], %s5211_s29 }
  0x30   : > { %s443_s4 = sshll.u32 %s435_s1, 4  ;;  %s5084_s23 = smov 192   ;;  %s444_s4 = int_to_ptr.vmem [resolvable:$true] %s443_s4 }
  0x31   : > { %s5085_s28 = smov 12   ;;  %s50_s14 = sadd.s32 1, %s5072_s25 }
  0x32   : > { %s53_s13 = sadd.s32 1, %s5076_s26  ;;  %p51_p5 = scmp.ge.s32.totalorder %s50_s14, 3 }
  0x33   : > { %s440_s16 = scalar_lea.hbm %s6157_s3, %s4400_s11  ;;  %s185_s12 = sadd.s32 1, %s5048_s19 }
  0x34   : > { %s441_s2 = sshll.u32 %s440_s16, 4  ;;  %p192_p6 = scmp.ne.s32.totalorder %s5048_s19, %s5044_s18  ;;  %s442_s2 = int_to_ptr.hbm [resolvable:$true] %s441_s2 }
  0x35   : > { %4439 = dma.hbm_to_vmem [thread:$0]  (!%p5228_p4), %s442_s2, 3072, %s444_s4, %s6110_s10, %s5084_s23, %s5084_s23, %s5085_s28  }
  0x36   : > { %p198_p7 = scmp.ne.s32.totalorder %s5044_s18, %s5040_s17  ;;  %s6237_s14 = smov (%p51_p5, %s50_s14), 0 }
  0x37   : > { %6158 = sst [smem:[#allocation38_spill]] %s6237_s14  ;;  %s6239_s13 = smov (!%p51_p5, %s53_s13), %s5076_s26 }
  0x38   : > { %s182_s1 = ssub.s32 %s5072_s25, %s6237_s14  ;;  %p5261_p8 = por %p192_p6, %p89_p1 }
  0x39   : > { %p55_p9 = scmp.ge.s32.totalorder %s6239_s13, 2  ;;  %p183_p10 = scmp.eq.s32.totalorder %s182_s1, 0 }
  0x3a   : > { %s477_s2 = sand.u32 1, %s5048_s19   ;;  %s3463_s23 = sshll.u32 %s5072_s25, 2 }
  0x3b   : > { %s6241_s13 = smov (%p55_p9, %s6239_s13), 0  ;;  %s5273_s16 = sshll.u32 %s477_s2, 2 }
  0x3c   : > { %6160 = sst [smem:[#allocation39_spill]] %s6241_s13  ;;  %s78_s15 = ssub.s32 %s5076_s26, %s6241_s13 }
  0x3d   : > { %s5269_s4 = scalar_select %p183_p10, %s5048_s19, %s185_s12  }
  0x3e   : > { %p79_p11 = scmp.eq.s32.totalorder %s78_s15, 0  ;;  %s479_s28 = scalar_lea.vmem [#allocation14], %s5273_s16 }
  0x3f   : > { %6161 = sst [smem:[#allocation40_spill]] %s5269_s4  ;;  %s487_s10 = sshll.u32 %s479_s28, 4  ;;  %s488_s10 = int_to_ptr.vmem [resolvable:$true] %s487_s10 }
  0x40   : > { %s6162_s9 = sadd.s32 1, %s5060_s22  ;;  %s6164_s5 = sld [smem:[#allocation51_spill]] }
  0x41   : > { %s5280_s3 = scalar_select %p79_p11, %s5060_s22, %s6162_s9  }
  0x42   : > { %p5289_p12 = pnand %p4463_p2, %p5261_p8  ;;  %s3464_s15 = sshll.u32 %s477_s2, 6 }
  0x43   : > { %6163 = sst [smem:[#allocation41_spill]] %s5280_s3  ;;  %s6116_s28 = scalar_lea.sflag [#allocation15], %s5211_s29 }
  0x44   : > { %s498_s9 = scalar_lea.vmem [#allocation16], %s3464_s15  ;;  %s6167_s8 = sld [smem:[#allocation54_spill]] }
  0x45   : > { %s5298_s13 = sshll.u32 %s498_s9, 4  ;;  %s6168_s6 = sld [smem:[#allocation52_spill]] }
  0x46   : > { %s483_s24 = scalar_lea.hbm %s6164_s5, %s3463_s23  ;;  %6166 = sst [smem:[#allocation42_spill]] %s5298_s13 }
  0x47   : > { %s485_s0 = sshll.u32 %s483_s24, 4  ;;  %s520_s24 = scalar_lea.vmem [#allocation17], %s3464_s15  ;;  %s486_s0 = int_to_ptr.hbm [resolvable:$true] %s485_s0 }
  0x48   : > { %4445 = dma.hbm_to_vmem [thread:$0]  (!%p5289_p12), %s486_s0, 64, %s488_s10, %s6116_s28  }
  0x49   : > { %s528_s14 = sshll.u32 %s520_s24, 4  ;;  %s4135_s5 = sshll.u32 %s5072_s25, 6  ;;  %s529_s14 = int_to_ptr.vmem [resolvable:$true] %s528_s14 }
  0x4a   : > { %s5304_s2 = scalar_lea.hbm %s6167_s8, %s3463_s23  ;;  %s6169_s7 = sld [smem:[#allocation53_spill]] }
  0x4b   : > { %s503_s9 = scalar_lea.hbm %s6168_s6, %s4135_s5  ;;  %s6119_s23 = scalar_lea.sflag [#allocation18], %s5211_s29 }
  0x4c   : > { %s504_s15 = sshll.u32 %s503_s9, 4  ;;  %s6120_s24 = smov 64   ;;  %s5313_s15 = int_to_ptr.hbm [resolvable:$true] %s504_s15 }
  0x4d   : > { %s6122_s11 = smov 4   ;;  %s5324_s3 = sadd.s32 4294967295, %s5080_s27  }
  0x4e   : > { %p94_p13 = scmp.ne.s32.totalorder %s5056_s21, %s5052_s20  ;;  %p95_p1 = scmp.eq.s32.totalorder %s5324_s3, 0 }
  0x4f   : > { %p321_p2 = scmp.eq.s32.totalorder %s5324_s3, 5  ;;  %p3450_p5 = scmp.ge.s32.totalorder %s5080_s27, 1 }
  0x50   : > { %s525_s13 = scalar_lea.hbm %s6169_s7, %s4135_s5  ;;  %s3449_s5 = sadd.s32 4294967294, %s5080_s27  }
  0x51   : > { %s526_s4 = sshll.u32 %s525_s13, 4  ;;  %p327_p3 = scmp.eq.s32.totalorder %s3449_s5, 5  ;;  %s527_s4 = int_to_ptr.hbm [resolvable:$true] %s526_s4 }
  0x52   : > { %4451 = dma.hbm_to_vmem [thread:$0]  (!%p5289_p12), %s527_s4, 1024, %s529_s14, %s6119_s23, %s6120_s24, %s6120_s24, %s6122_s11  }
  0x53   : > { %p5334_p6 = por %p95_p1, %p94_p13  ;;  %p5343_p8 = por %p198_p7, %p95_p1 }
  0x54   : > { %p5350_p9 = por %p321_p2, %p88_p0  ;;  %p5354_p10 = por %p327_p3, %p94_p13 }
  0x55   : > { %s6170_s13 = scalar_select %p5334_p6, 1, 0 }
  0x56   : > { %s6171_s4 = scalar_select %p5343_p8, 1, 0 }
  0x57   : > { %s6173_s28 = scalar_select %p5350_p9, 1, 0 }
  0x58   : > { %6172 = sst [smem:[#allocation43_spill]] %s6171_s4  ;;  %p360_p11 = scmp.lt.s32.totalorder %s5080_s27, 7 }
  0x59   : > { %6174 = sst [smem:[#allocation44_spill]] %s6173_s28  ;;  %s5088_s23 = smov [#allocation5]  }
  0x5a   : > { %s6175_s14 = scalar_select %p5354_p10, 1, 0 }
  0x5b   : > { %s6177_s10 = sld [smem:[#allocation46_spill]]  ;;  %p5362_p6 = pnand %p3450_p5, %p360_p11 }
  0x5c   : > { %6176 = sst [smem:[#allocation45_spill]] %s6175_s14  ;;  %s373_s24 = sshll.u32 %s5088_s23, 4  ;;  %s374_s24 = int_to_ptr.vmem [resolvable:$true] %s373_s24 }
  0x5d   : > { %s3456_s11 = sshll.u32 %s5219_s30, 2  ;;  %p4426_p0 = pneg %p5362_p6 }
  0x5e   : > { %s3457_s6 = sshll.u32 %s5076_s26, 2  ;;  %s416_s25 = scalar_lea.vmem [#allocation10], %s3456_s11 }
  0x5f   : > { %p4427_p7 = pnand %p4426_p0, %p95_p1  ;;  %s6181_s22 = sld [smem:[#allocation42_spill]] }
  0x60   : > { %s424_s23 = sshll.u32 %s416_s25, 4  ;;  %s6182_s19 = smov 4   ;;  %s425_s23 = int_to_ptr.vmem [resolvable:$true] %s424_s23 }
  0x61   : > { %s371_s9 = sshll.u32 %s6177_s10, 4  ;;  %s6180_s10 = sld [smem:[#allocation48_spill]]  ;;  %s372_s9 = int_to_ptr.hbm [resolvable:$true] %s371_s9 }
  0x62   : > { %s6183_s14 = smov 64   ;;  %s3459_s20 = sshll.u32 %s5219_s30, 6 }
  0x63   : > { %4429 = dma.hbm_to_vmem [thread:$0]  (!%p4427_p7), %s372_s9, 1024, %s374_s24, [#allocation6], %s6183_s14, %s6183_s14, %s6182_s19  }
  0x64   : > { %s6185_s0 = sld [smem:[#allocation50_spill]]  ;;  %s457_s27 = scalar_lea.vmem [#allocation13], %s3459_s20 }
  0x65   : > { %s465_s25 = sshll.u32 %s457_s27, 4  ;;  %s548_s4 = sshll.u32 %s5304_s2, 4  ;;  %s466_s25 = int_to_ptr.vmem [resolvable:$true] %s465_s25  ;;  %s549_s4 = int_to_ptr.hbm [resolvable:$true] %s548_s4 }
  0x66   : > { %s6186_s30 = scalar_lea.sflag [#allocation12], %s5211_s29  ;;  %s6188_s24 = int_to_ptr.vmem [resolvable:$true] %s6181_s22 }
  0x67   : > { %s420_s7 = scalar_lea.hbm %s6180_s10, %s3457_s6  ;;  %s6184_s6 = scalar_lea.sflag [#allocation9], %s5211_s29 }
  0x68   : > { %s422_s8 = sshll.u32 %s420_s7, 4  ;;  %s4134_s7 = sshll.u32 %s5076_s26, 6  ;;  %s423_s8 = int_to_ptr.hbm [resolvable:$true] %s422_s8 }
  0x69   : > { %4436 = dma.hbm_to_vmem [thread:$0]  (!%p5228_p4), %s423_s8, 64, %s425_s23, %s6184_s6  }
  0x6a   : > { %s462_s10 = scalar_lea.hbm %s6185_s0, %s4134_s7  ;;  %s6187_s8 = scalar_lea.sflag [#allocation15], %s5211_s29 }
  0x6b   : > { %s463_s28 = sshll.u32 %s462_s10, 4  ;;  %s542_s20 = scalar_lea.vmem [#allocation19], %s5273_s16  ;;  %s464_s28 = int_to_ptr.hbm [resolvable:$true] %s463_s28 }
  0x6c   : > { %4442 = dma.hbm_to_vmem [thread:$0]  (!%p5228_p4), %s464_s28, 1024, %s466_s25, %s6186_s30, %s6183_s14, %s6183_s14, %s6182_s19  }
  0x6d   : > { %4448 = dma.hbm_to_vmem [thread:$0]  (!%p5289_p12), %s5313_s15, 1024, %s6188_s24, %s6187_s8, %s6183_s14, %s6183_s14, %s6182_s19  }
  0x6e   : > { %s550_s27 = sshll.u32 %s542_s20, 4  ;;  %s6189_s9 = scalar_lea.sflag [#allocation18], %s5211_s29  ;;  %s551_s27 = int_to_ptr.vmem [resolvable:$true] %s550_s27 }
  0x6f   : > { %4454 = dma.hbm_to_vmem [thread:$0]  (!%p5289_p12), %s549_s4, 64, %s551_s27, %s6189_s9  }
  0x70   : > { %559 = sbr.rel (%p5362_p6) target bundleno = 1698 (0x6a2), region = 60 }
  0x75   : > { %5011 = dma.done.wait (%p95_p1), [#allocation6], 1024  }
  0x76   : > { %5013 = vsyncadd (%p95_p1), [#allocation6], 4294966272  ;;  %s566_s19 = sand.u32 1, %s5324_s3   ;;  %s5418_s22 = sand.u32 1, %s5056_s21  }
  0x77   : > { %s3474_s16 = sshll.u32 %s5418_s22, 8  ;;  %s567_s12 = scalar_lea.sflag [#allocation9], %s566_s19 }
  0x78   : > { %s5421_s29 = scalar_lea.vmem [#allocation8], %s3474_s16  ;;  %p6190_p4 = scmp.ne.s32.totalorder %s6170_s13, 0 }
  0x7a   : > { %5015 = dma.done.wait (%p6190_p4), %s567_s12, 4160  }
  0x7b   : > { %5017 = vsyncadd (%p6190_p4), %s567_s12, 4294963136  ;;  %s3475_s2 = sshll.u32 %s5418_s22, 2  ;;  %s4401_s15 = smul.u32 192, %s5418_s22 }
  0x7c   : > { %s5429_s4 = scalar_lea.vmem [#allocation10], %s3475_s2  ;;  %s587_s3 = scalar_lea.sflag [#allocation12], %s566_s19 }
  0x7d   : > { %s5431_s28 = scalar_lea.vmem [#allocation11], %s4401_s15 }
  0x7e   : > { %5019 = dma.done.wait (%p6190_p4), %s587_s3, 4096  }
  0x7f   : > { %5021 = vsyncadd (%p6190_p4), %s587_s3, 4294963200  ;;  %s3476_s17 = sshll.u32 %s5418_s22, 6  ;;  %s608_s5 = sand.u32 1, %s5044_s18  }
  0x80   : > { %s5439_s23 = sshll.u32 %s608_s5, 2  ;;  %s5441_s6 = scalar_lea.vmem [#allocation13], %s3476_s17 }
  0x81   : > { %s607_s7 = scalar_lea.sflag [#allocation15], %s566_s19  ;;  %s610_s11 = scalar_lea.vmem [#allocation14], %s5439_s23 }
  0x82   : > { %5023 = dma.done.wait (%p5343_p8), %s607_s7, 1088  }
  0x83   : > { %5025 = vsyncadd (%p5343_p8), %s607_s7, 4294966208  ;;  %s3478_s13 = sshll.u32 %s608_s5, 6  ;;  %s627_s0 = scalar_lea.sflag [#allocation18], %s566_s19 }
  0x84   : > { %s5448_s1 = scalar_lea.vmem [#allocation16], %s3478_s13  ;;  %s5450_s10 = scalar_lea.vmem [#allocation17], %s3478_s13 }
  0x85   : > { %5027 = dma.done.wait (%p5343_p8), %s627_s0, 1088  }
  0x86   : > { %5029 = vsyncadd (%p5343_p8), %s627_s0, 4294966208  ;;  %s3481_s25 = sshll.u32 %s5418_s22, 3  ;;  %s640_s30 = scalar_lea.vmem [#allocation19], %s5439_s23 }
  0x87   : > { %s5458_s8 = scalar_lea.vmem [#allocation20], %s3481_s25  ;;  %s5460_s24 = scalar_lea.vmem [#allocation21], %s3481_s25 }
  0x88   : > { %s6192_s20 = sld [smem:[#allocation33_spill]] }
  0x8e   : > { %p3483_p12 = scmp.ne.s32.totalorder %s6192_s20, 0 }
  0x90   : > { %724 = sbr.rel (%p3483_p12) target bundleno = 442 (0x1ba), region = 100 }
  0x95   : > { %v3630_v0 = vld [vmem:[%s5421_s29 + $0xe0] sm:$0xf]  ;;  %v4175_v1 = vld [vmem:[%s5421_s29 + $0xec] sm:$0xf0]  ;;  %v4173_v2 = vld [vmem:[%s5421_s29 + $0xe4] sm:$0xf] }
  0x96   : > { %v3631_v3 = vor.u32 %v4175_v1, %v3630_v0  ;;  %v3632_v4 = vld [vmem:[%s5421_s29 + $0xf0] sm:$0xf0]  ;;  %v3638_v5 = vld [vmem:[%s5421_s29 + $0xe8] sm:$0xf]  ;;  %v4176_v6 = vld [vmem:[%s5421_s29 + $0xf4] sm:$0xf0] }
  0x97   : > { %v3635_v7 = vor.u32 %v4173_v2, %v3632_v4  ;;  %v3639_v8 = vor.u32 %v4176_v6, %v3638_v5  ;;  %v4174_v9 = vld [vmem:[%s5421_s29 + $0xec] sm:$0xf]  ;;  %v3640_v10 = vld [vmem:[%s5421_s29 + $0xf8] sm:$0xf0]  ;;  %v3614_v11 = vld [vmem:[%s5421_s29 + $0xc0] sm:$0xf] }
  0x98   : > { %991 = vmatpush.bf16.msra.mxu0 %v3631_v3  ;;  %v3643_v12 = vor.u32 %v4174_v9, %v3640_v10  ;;  %v4171_v13 = vld [vmem:[%s5421_s29 + $0xcc] sm:$0xf0]  ;;  %v4169_v14 = vld [vmem:[%s5421_s29 + $0xc4] sm:$0xf]  ;;  %v3616_v15 = vld [vmem:[%s5421_s29 + $0xd0] sm:$0xf0] }
  0x99   : > { %1040 = vmatpush.bf16.msra.mxu1 %v3635_v7  ;;  %1089 = vmatpush.bf16.msra.mxu2 %v3639_v8  ;;  %v3615_v16 = vor.u32 %v4171_v13, %v3614_v11  ;;  %v3619_v17 = vor.u32 %v4169_v14, %v3616_v15  ;;  %v3622_v18 = vld [vmem:[%s5421_s29 + $0xc8] sm:$0xf]  ;;  %v4172_v19 = vld [vmem:[%s5421_s29 + $0xd4] sm:$0xf0]  ;;  %v4170_v20 = vld [vmem:[%s5421_s29 + $0xcc] sm:$0xf] }
  0x9a   : > { %1138 = vmatpush.bf16.msra.mxu3 %v3643_v12  ;;  %v3623_v21 = vor.u32 %v4172_v19, %v3622_v18  ;;  %v3624_v22 = vld [vmem:[%s5421_s29 + $0xd8] sm:$0xf0]  ;;  %v3598_v23 = vld [vmem:[%s5421_s29 + $0xa0] sm:$0xf]  ;;  %v4167_v24 = vld [vmem:[%s5421_s29 + $0xac] sm:$0xf0] }
  0x9b   : > { %v3627_v25 = vor.u32 %v4170_v20, %v3624_v22  ;;  %v4165_v26 = vld [vmem:[%s5421_s29 + $0xa4] sm:$0xf]  ;;  %v3600_v27 = vld [vmem:[%s5421_s29 + $0xb0] sm:$0xf0]  ;;  %v3606_v28 = vld [vmem:[%s5421_s29 + $0xa8] sm:$0xf]  ;;  %v3599_v29 = vor.u32 %v4167_v24, %v3598_v23 }
  0x9c   : > { %992 = vmatpush.bf16.msra.mxu0 %v3615_v16  ;;  %v4168_v30 = vld [vmem:[%s5421_s29 + $0xb4] sm:$0xf0]  ;;  %v4166_v31 = vld [vmem:[%s5421_s29 + $0xac] sm:$0xf]  ;;  %v3608_v32 = vld [vmem:[%s5421_s29 + $0xb8] sm:$0xf0]  ;;  %v3603_v33 = vor.u32 %v4165_v26, %v3600_v27 }
  0x9d   : > { %1041 = vmatpush.bf16.msra.mxu1 %v3619_v17  ;;  %1090 = vmatpush.bf16.msra.mxu2 %v3623_v21  ;;  %v3607_v34 = vor.u32 %v4168_v30, %v3606_v28  ;;  %v3582_v35 = vld [vmem:[%s5421_s29 + $0x80] sm:$0xf]  ;;  %v4163_v36 = vld [vmem:[%s5421_s29 + $0x8c] sm:$0xf0]  ;;  %v4161_v37 = vld [vmem:[%s5421_s29 + $0x84] sm:$0xf]  ;;  %v3611_v38 = vor.u32 %v4166_v31, %v3608_v32 }
  0x9e   : > { %1139 = vmatpush.bf16.msra.mxu3 %v3627_v25  ;;  %v3584_v39 = vld [vmem:[%s5421_s29 + $0x90] sm:$0xf0]  ;;  %v3590_v40 = vld [vmem:[%s5421_s29 + $0x88] sm:$0xf]  ;;  %v4164_v41 = vld [vmem:[%s5421_s29 + $0x94] sm:$0xf0]  ;;  %v3583_v44 = vor.u32 %v4163_v36, %v3582_v35 }
  0x9f   : > { %v4162_v42 = vld [vmem:[%s5421_s29 + $0x8c] sm:$0xf]  ;;  %v3592_v43 = vld [vmem:[%s5421_s29 + $0x98] sm:$0xf0]  ;;  %v3587_v45 = vor.u32 %v4161_v37, %v3584_v39  ;;  %v3591_v46 = vor.u32 %v4164_v41, %v3590_v40  ;;  %v3566_v47 = vld [vmem:[%s5421_s29 + $0x60] sm:$0xf] }
  0xa0   : > { %993 = vmatpush.bf16.msra.mxu0 %v3599_v29  ;;  %v4159_v48 = vld [vmem:[%s5421_s29 + $0x6c] sm:$0xf0]  ;;  %v4157_v49 = vld [vmem:[%s5421_s29 + $0x64] sm:$0xf]  ;;  %v3595_v50 = vor.u32 %v4162_v42, %v3592_v43  ;;  %v3568_v51 = vld [vmem:[%s5421_s29 + $0x70] sm:$0xf0] }
  0xa1   : > { %1042 = vmatpush.bf16.msra.mxu1 %v3603_v33  ;;  %1091 = vmatpush.bf16.msra.mxu2 %v3607_v34  ;;  %v3574_v52 = vld [vmem:[%s5421_s29 + $0x68] sm:$0xf]  ;;  %v4160_v53 = vld [vmem:[%s5421_s29 + $0x74] sm:$0xf0]  ;;  %v4158_v54 = vld [vmem:[%s5421_s29 + $0x6c] sm:$0xf]  ;;  %v3567_v56 = vor.u32 %v4159_v48, %v3566_v47  ;;  %v3571_v57 = vor.u32 %v4157_v49, %v3568_v51 }
  0xa2   : > { %1140 = vmatpush.bf16.msra.mxu3 %v3611_v38  ;;  %v3576_v55 = vld [vmem:[%s5421_s29 + $0x78] sm:$0xf0]  ;;  %v3575_v58 = vor.u32 %v4160_v53, %v3574_v52  ;;  %v3550_v59 = vld [vmem:[%s5421_s29 + $0x40] sm:$0xf]  ;;  %v4155_v60 = vld [vmem:[%s5421_s29 + $0x4c] sm:$0xf0] }
  0xa3   : > { %v4153_v61 = vld [vmem:[%s5421_s29 + $0x44] sm:$0xf]  ;;  %v3579_v62 = vor.u32 %v4158_v54, %v3576_v55  ;;  %v3552_v63 = vld [vmem:[%s5421_s29 + $0x50] sm:$0xf0]  ;;  %v3558_v0 = vld [vmem:[%s5421_s29 + $0x48] sm:$0xf]  ;;  %v3551_v4 = vor.u32 %v4155_v60, %v3550_v59 }
  0xa4   : > { %994 = vmatpush.bf16.msra.mxu0 %v3583_v44  ;;  %v4156_v1 = vld [vmem:[%s5421_s29 + $0x54] sm:$0xf0]  ;;  %v4154_v2 = vld [vmem:[%s5421_s29 + $0x4c] sm:$0xf]  ;;  %v3560_v3 = vld [vmem:[%s5421_s29 + $0x58] sm:$0xf0]  ;;  %v3555_v5 = vor.u32 %v4153_v61, %v3552_v63 }
  0xa5   : > { %1043 = vmatpush.bf16.msra.mxu1 %v3587_v45  ;;  %1092 = vmatpush.bf16.msra.mxu2 %v3591_v46  ;;  %v3559_v6 = vor.u32 %v4156_v1, %v3558_v0  ;;  %v3534_v7 = vld [vmem:[%s5421_s29 + $0x20] sm:$0xf]  ;;  %v4151_v8 = vld [vmem:[%s5421_s29 + $0x2c] sm:$0xf0]  ;;  %v4149_v9 = vld [vmem:[%s5421_s29 + $0x24] sm:$0xf]  ;;  %v3563_v10 = vor.u32 %v4154_v2, %v3560_v3 }
  0xa6   : > { %1141 = vmatpush.bf16.msra.mxu3 %v3595_v50  ;;  %v3536_v11 = vld [vmem:[%s5421_s29 + $0x30] sm:$0xf0]  ;;  %v3542_v12 = vld [vmem:[%s5421_s29 + $0x28] sm:$0xf]  ;;  %v4152_v13 = vld [vmem:[%s5421_s29 + $0x34] sm:$0xf0]  ;;  %v3535_v16 = vor.u32 %v4151_v8, %v3534_v7 }
  0xa7   : > { %v4150_v14 = vld [vmem:[%s5421_s29 + $0x2c] sm:$0xf]  ;;  %v3544_v15 = vld [vmem:[%s5421_s29 + $0x38] sm:$0xf0]  ;;  %v3539_v17 = vor.u32 %v4149_v9, %v3536_v11  ;;  %v3543_v18 = vor.u32 %v4152_v13, %v3542_v12  ;;  %v3518_v19 = vld [vmem:[%s5421_s29] sm:$0xf] }
  0xa8   : > { %995 = vmatpush.bf16.msra.mxu0 %v3567_v56  ;;  %v4147_v20 = vld [vmem:[%s5421_s29 + $0xc] sm:$0xf0]  ;;  %v4145_v21 = vld [vmem:[%s5421_s29 + $0x4] sm:$0xf]  ;;  %v3547_v22 = vor.u32 %v4150_v14, %v3544_v15  ;;  %v3520_v23 = vld [vmem:[%s5421_s29 + $0x10] sm:$0xf0] }
  0xa9   : > { %1044 = vmatpush.bf16.msra.mxu1 %v3571_v57  ;;  %1093 = vmatpush.bf16.msra.mxu2 %v3575_v58  ;;  %v3526_v24 = vld [vmem:[%s5421_s29 + $0x8] sm:$0xf]  ;;  %v4148_v25 = vld [vmem:[%s5421_s29 + $0x14] sm:$0xf0]  ;;  %v4146_v26 = vld [vmem:[%s5421_s29 + $0xc] sm:$0xf]  ;;  %v3519_v28 = vor.u32 %v4147_v20, %v3518_v19  ;;  %v3523_v29 = vor.u32 %v4145_v21, %v3520_v23 }
  0xaa   : > { %1142 = vmatpush.bf16.msra.mxu3 %v3579_v62  ;;  %v3528_v27 = vld [vmem:[%s5421_s29 + $0x18] sm:$0xf0]  ;;  %v3527_v30 = vor.u32 %v4148_v25, %v3526_v24  ;;  %v4137_v32 = vld [vmem:[#allocation5] sm:$0xff]  ;;  %v4138_v33 = vld [vmem:[#allocation5 + $0x8] sm:$0xff] }
  0xab   : > { %v3531_v31 = vor.u32 %v4146_v26, %v3528_v27  ;;  %v4139_v34 = vld [vmem:[#allocation5 + $0x10] sm:$0xff]  ;;  %v4140_v35 = vld [vmem:[#allocation5 + $0x18] sm:$0xff]  ;;  %v4141_v36 = vld [vmem:[#allocation5 + $0x20] sm:$0xff] }
  0xac   : > { %996 = vmatpush.bf16.msra.mxu0 %v3551_v4  ;;  %v4142_v37 = vld [vmem:[#allocation5 + $0x28] sm:$0xff]  ;;  %v4143_v38 = vld [vmem:[#allocation5 + $0x30] sm:$0xff]  ;;  %v4144_v39 = vld [vmem:[#allocation5 + $0x38] sm:$0xff] }
  0xad   : > { %1045 = vmatpush.bf16.msra.mxu1 %v3555_v5  ;;  %1094 = vmatpush.bf16.msra.mxu2 %v3559_v6  ;;  %v773_v40 = vld [vmem:[%s5429_s4] sm:$0xf] }
  0xae   : > { %1143 = vmatpush.bf16.msra.mxu3 %v3563_v10  ;;  %v5528_v41 = vperm.slane %v773_v40, 0  ;;  %v5530_v42 = vperm.slane %v773_v40, 1  ;;  %v5534_v48 = vperm.slane %v773_v40, 2  ;;  %v5536_v49 = vperm.slane %v773_v40, 3 }
  0xb0   : > { %997 = vmatpush.bf16.msra.mxu0 %v3535_v16 }
  0xb1   : > { %1046 = vmatpush.bf16.msra.mxu1 %v3539_v17  ;;  %1095 = vmatpush.bf16.msra.mxu2 %v3543_v18 }
  0xb2   : > { %1144 = vmatpush.bf16.msra.mxu3 %v3547_v22 }
  0xb4   : > { %998 = vmatpush.bf16.msra.mxu0 %v3519_v28 }
  0xb5   : > { %1047 = vmatpush.bf16.msra.mxu1 %v3523_v29  ;;  %1096 = vmatpush.bf16.msra.mxu2 %v3527_v30 }
  0xb6   : > { %1145 = vmatpush.bf16.msra.mxu3 %v3531_v31 }
  0xb7   : > { %999 = vmatmul.bf16.vlgmr.msra.gmra.mxu0 %v4137_v32 }
  0xb8   : > { %1048 = vmatmul.bf16.vlgmr.msra.gmra.mxu1 %v4137_v32  ;;  %1097 = vmatmul.bf16.vlgmr.msra.gmra.mxu2 %v4137_v32 }
  0xb9   : > { %1146 = vmatmul.bf16.vlgmr.msra.gmra.mxu3 %v4137_v32 }
  0xc7   : > { %1004 = vmatmul.bf16.gmra.mxu0 %v4138_v33 }
  0xc8   : > { %1053 = vmatmul.bf16.gmra.mxu1 %v4138_v33  ;;  %1102 = vmatmul.bf16.gmra.mxu2 %v4138_v33 }
  0xc9   : > { %1151 = vmatmul.bf16.gmra.mxu3 %v4138_v33 }
  0xd7   : > { %1009 = vmatmul.bf16.gmra.mxu0 %v4139_v34 }
  0xd8   : > { %1058 = vmatmul.bf16.gmra.mxu1 %v4139_v34  ;;  %1107 = vmatmul.bf16.gmra.mxu2 %v4139_v34 }
  0xd9   : > { %1156 = vmatmul.bf16.gmra.mxu3 %v4139_v34 }
  0xe7   : > { %1014 = vmatmul.bf16.gmra.mxu0 %v4140_v35 }
  0xe8   : > { %1063 = vmatmul.bf16.gmra.mxu1 %v4140_v35  ;;  %1112 = vmatmul.bf16.gmra.mxu2 %v4140_v35 }
  0xe9   : > { %1161 = vmatmul.bf16.gmra.mxu3 %v4140_v35 }
  0xf7   : > { %1019 = vmatmul.bf16.gmra.mxu0 %v4141_v36 }
  0xf8   : > { %1068 = vmatmul.bf16.gmra.mxu1 %v4141_v36  ;;  %1117 = vmatmul.bf16.gmra.mxu2 %v4141_v36 }
  0xf9   : > { %1166 = vmatmul.bf16.gmra.mxu3 %v4141_v36 }
 0x107   : > { %1024 = vmatmul.bf16.gmra.mxu0 %v4142_v37 }
 0x108   : > { %1073 = vmatmul.bf16.gmra.mxu1 %v4142_v37  ;;  %1122 = vmatmul.bf16.gmra.mxu2 %v4142_v37 }
 0x109   : > { %1171 = vmatmul.bf16.gmra.mxu3 %v4142_v37 }
 0x117   : > { %1029 = vmatmul.bf16.gmra.mxu0 %v4143_v38 }
 0x118   : > { %1078 = vmatmul.bf16.gmra.mxu1 %v4143_v38  ;;  %1127 = vmatmul.bf16.gmra.mxu2 %v4143_v38 }
 0x119   : > { %1176 = vmatmul.bf16.gmra.mxu3 %v4143_v38 }
 0x127   : > { %1034 = vmatmul.bf16.gmra.mxu0 %v4144_v39 }
 0x128   : > { %1083 = vmatmul.bf16.gmra.mxu1 %v4144_v39  ;;  %1132 = vmatmul.bf16.gmra.mxu2 %v4144_v39 }
 0x129   : > { %1181 = vmatmul.bf16.gmra.mxu3 %v4144_v39 }
 0x134   : > { %v1000_v43 = vpop.f32.mrf.mxu0 }
 0x135   : > { %v1001_v44 = vadd.f32 %v1000_v43, %v5528_v41  ;;  %v1049_v45 = vpop.f32.mrf.mxu1 }
 0x136   : > { %v1050_v46 = vadd.f32 %v1049_v45, %v5530_v42 }
 0x138   : > { %v1187_v47 = vpack.c.bf16 %v1050_v46, %v1001_v44 }
 0x13a   : > { %1219 = vst [vmem:[#allocation2] sm:$0xff] %v1187_v47 }
 0x13b   : > { %v1098_v50 = vpop.f32.mrf.mxu2 }
 0x13c   : > { %v1099_v51 = vadd.f32 %v1098_v50, %v5534_v48  ;;  %v1147_v52 = vpop.f32.mrf.mxu3  ;;  %v1002_v53 = vpop.f32.mrf.mxu0 }
 0x13d   : > { %v1148_v54 = vadd.f32 %v1147_v52, %v5536_v49  ;;  %v1003_v55 = vadd.f32 %v1002_v53, %v5528_v41  ;;  %v1051_v56 = vpop.f32.mrf.mxu1 }
 0x13e   : > { %v1052_v57 = vadd.f32 %v1051_v56, %v5530_v42 }
 0x13f   : > { %v1188_v58 = vpack.c.bf16 %v1148_v54, %v1099_v51 }
 0x140   : > { %v1189_v59 = vpack.c.bf16 %v1052_v57, %v1003_v55 }
 0x141   : > { %1220 = vst [vmem:[#allocation2 + $0x8] sm:$0xff] %v1188_v58 }
 0x142   : > { %1221 = vst [vmem:[#allocation2 + $0x10] sm:$0xff] %v1189_v59 }
 0x143   : > { %v1100_v60 = vpop.f32.mrf.mxu2 }
 0x144   : > { %v1101_v61 = vadd.f32 %v1100_v60, %v5534_v48  ;;  %v1149_v62 = vpop.f32.mrf.mxu3  ;;  %v1005_v63 = vpop.f32.mrf.mxu0 }
 0x145   : > { %v1150_v0 = vadd.f32 %v1149_v62, %v5536_v49  ;;  %v1006_v1 = vadd.f32 %v1005_v63, %v5528_v41  ;;  %v1054_v2 = vpop.f32.mrf.mxu1 }
 0x146   : > { %v1055_v3 = vadd.f32 %v1054_v2, %v5530_v42 }
 0x147   : > { %v1190_v4 = vpack.c.bf16 %v1150_v0, %v1101_v61 }
 0x148   : > { %v1191_v5 = vpack.c.bf16 %v1055_v3, %v1006_v1 }
 0x149   : > { %1222 = vst [vmem:[#allocation2 + $0x18] sm:$0xff] %v1190_v4 }
 0x14a   : > { %1223 = vst [vmem:[#allocation2 + $0x20] sm:$0xff] %v1191_v5 }
 0x14b   : > { %v1103_v6 = vpop.f32.mrf.mxu2 }
 0x14c   : > { %v1104_v7 = vadd.f32 %v1103_v6, %v5534_v48  ;;  %v1152_v8 = vpop.f32.mrf.mxu3  ;;  %v1007_v9 = vpop.f32.mrf.mxu0 }
 0x14d   : > { %v1153_v10 = vadd.f32 %v1152_v8, %v5536_v49  ;;  %v1008_v11 = vadd.f32 %v1007_v9, %v5528_v41  ;;  %v1056_v12 = vpop.f32.mrf.mxu1 }
 0x14e   : > { %v1057_v13 = vadd.f32 %v1056_v12, %v5530_v42 }
 0x14f   : > { %v1192_v14 = vpack.c.bf16 %v1153_v10, %v1104_v7 }
 0x150   : > { %v1193_v15 = vpack.c.bf16 %v1057_v13, %v1008_v11 }
 0x151   : > { %1224 = vst [vmem:[#allocation2 + $0x28] sm:$0xff] %v1192_v14 }
 0x152   : > { %1225 = vst [vmem:[#allocation2 + $0x30] sm:$0xff] %v1193_v15 }
 0x153   : > { %v1105_v16 = vpop.f32.mrf.mxu2 }
 0x154   : > { %v1106_v17 = vadd.f32 %v1105_v16, %v5534_v48  ;;  %v1154_v18 = vpop.f32.mrf.mxu3  ;;  %v1010_v19 = vpop.f32.mrf.mxu0 }
 0x155   : > { %v1155_v20 = vadd.f32 %v1154_v18, %v5536_v49  ;;  %v1011_v21 = vadd.f32 %v1010_v19, %v5528_v41  ;;  %v1059_v22 = vpop.f32.mrf.mxu1 }
 0x156   : > { %v1060_v23 = vadd.f32 %v1059_v22, %v5530_v42 }
 0x157   : > { %v1194_v24 = vpack.c.bf16 %v1155_v20, %v1106_v17 }
 0x158   : > { %v1195_v25 = vpack.c.bf16 %v1060_v23, %v1011_v21 }
 0x159   : > { %1226 = vst [vmem:[#allocation2 + $0x38] sm:$0xff] %v1194_v24 }
 0x15a   : > { %1227 = vst [vmem:[#allocation2 + $0x40] sm:$0xff] %v1195_v25 }
 0x15b   : > { %v1108_v26 = vpop.f32.mrf.mxu2 }
 0x15c   : > { %v1109_v27 = vadd.f32 %v1108_v26, %v5534_v48  ;;  %v1157_v28 = vpop.f32.mrf.mxu3  ;;  %v1012_v29 = vpop.f32.mrf.mxu0 }
 0x15d   : > { %v1158_v30 = vadd.f32 %v1157_v28, %v5536_v49  ;;  %v1013_v31 = vadd.f32 %v1012_v29, %v5528_v41  ;;  %v1061_v32 = vpop.f32.mrf.mxu1 }
 0x15e   : > { %v1062_v33 = vadd.f32 %v1061_v32, %v5530_v42 }
 0x15f   : > { %v1196_v34 = vpack.c.bf16 %v1158_v30, %v1109_v27 }
 0x160   : > { %v1197_v35 = vpack.c.bf16 %v1062_v33, %v1013_v31 }
 0x161   : > { %1228 = vst [vmem:[#allocation2 + $0x48] sm:$0xff] %v1196_v34 }
 0x162   : > { %1229 = vst [vmem:[#allocation2 + $0x50] sm:$0xff] %v1197_v35 }
 0x163   : > { %v1110_v36 = vpop.f32.mrf.mxu2 }
 0x164   : > { %v1111_v37 = vadd.f32 %v1110_v36, %v5534_v48  ;;  %v1159_v38 = vpop.f32.mrf.mxu3  ;;  %v1015_v39 = vpop.f32.mrf.mxu0 }
 0x165   : > { %v1160_v40 = vadd.f32 %v1159_v38, %v5536_v49  ;;  %v1016_v43 = vadd.f32 %v1015_v39, %v5528_v41  ;;  %v1064_v44 = vpop.f32.mrf.mxu1 }
 0x166   : > { %v1065_v45 = vadd.f32 %v1064_v44, %v5530_v42 }
 0x167   : > { %v1198_v46 = vpack.c.bf16 %v1160_v40, %v1111_v37 }
 0x168   : > { %v1199_v47 = vpack.c.bf16 %v1065_v45, %v1016_v43 }
 0x169   : > { %1230 = vst [vmem:[#allocation2 + $0x58] sm:$0xff] %v1198_v46 }
 0x16a   : > { %1231 = vst [vmem:[#allocation2 + $0x60] sm:$0xff] %v1199_v47 }
 0x16b   : > { %v1113_v50 = vpop.f32.mrf.mxu2 }
 0x16c   : > { %v1114_v51 = vadd.f32 %v1113_v50, %v5534_v48  ;;  %v1162_v52 = vpop.f32.mrf.mxu3  ;;  %v1017_v53 = vpop.f32.mrf.mxu0 }
 0x16d   : > { %v1163_v54 = vadd.f32 %v1162_v52, %v5536_v49  ;;  %v1018_v55 = vadd.f32 %v1017_v53, %v5528_v41  ;;  %v1066_v56 = vpop.f32.mrf.mxu1 }
 0x16e   : > { %v1067_v57 = vadd.f32 %v1066_v56, %v5530_v42 }
 0x16f   : > { %v1200_v58 = vpack.c.bf16 %v1163_v54, %v1114_v51  ;;  %v5089_v51 = vmov 0  }
 0x170   : > { %v1201_v59 = vpack.c.bf16 %v1067_v57, %v1018_v55  ;;  %1251 = vst [vmem:[#allocation3] sm:$0xf] %v5089_v51 }
 0x171   : > { %1232 = vst [vmem:[#allocation2 + $0x68] sm:$0xff] %v1200_v58 }
 0x172   : > { %1233 = vst [vmem:[#allocation2 + $0x70] sm:$0xff] %v1201_v59 }
 0x173   : > { %v1115_v60 = vpop.f32.mrf.mxu2  ;;  %1252 = vst [vmem:[#allocation3 + $0x4] sm:$0xf] %v5089_v51 }
 0x174   : > { %v1116_v61 = vadd.f32 %v1115_v60, %v5534_v48  ;;  %v1164_v62 = vpop.f32.mrf.mxu3  ;;  %v1020_v63 = vpop.f32.mrf.mxu0  ;;  %1253 = vst [vmem:[#allocation3 + $0x8] sm:$0xf] %v5089_v51 }
 0x175   : > { %v1165_v0 = vadd.f32 %v1164_v62, %v5536_v49  ;;  %v1021_v1 = vadd.f32 %v1020_v63, %v5528_v41  ;;  %v1069_v2 = vpop.f32.mrf.mxu1  ;;  %1254 = vst [vmem:[#allocation3 + $0xc] sm:$0xf] %v5089_v51 }
 0x176   : > { %v1070_v3 = vadd.f32 %v1069_v2, %v5530_v42  ;;  %1255 = vst [vmem:[#allocation3 + $0x10] sm:$0xf] %v5089_v51 }
 0x177   : > { %v1202_v4 = vpack.c.bf16 %v1165_v0, %v1116_v61  ;;  %1256 = vst [vmem:[#allocation3 + $0x14] sm:$0xf] %v5089_v51 }
 0x178   : > { %v1203_v5 = vpack.c.bf16 %v1070_v3, %v1021_v1  ;;  %1257 = vst [vmem:[#allocation3 + $0x18] sm:$0xf] %v5089_v51 }
 0x179   : > { %1234 = vst [vmem:[#allocation2 + $0x78] sm:$0xff] %v1202_v4 }
 0x17a   : > { %1235 = vst [vmem:[#allocation2 + $0x80] sm:$0xff] %v1203_v5 }
 0x17b   : > { %v1118_v6 = vpop.f32.mrf.mxu2  ;;  %1258 = vst [vmem:[#allocation3 + $0x1c] sm:$0xf] %v5089_v51 }
 0x17c   : > { %v1119_v7 = vadd.f32 %v1118_v6, %v5534_v48  ;;  %v1167_v8 = vpop.f32.mrf.mxu3  ;;  %v1022_v9 = vpop.f32.mrf.mxu0  ;;  %1259 = vst [vmem:[#allocation3 + $0x20] sm:$0xf] %v5089_v51 }
 0x17d   : > { %v1168_v10 = vadd.f32 %v1167_v8, %v5536_v49  ;;  %v1023_v11 = vadd.f32 %v1022_v9, %v5528_v41  ;;  %v1071_v12 = vpop.f32.mrf.mxu1  ;;  %1260 = vst [vmem:[#allocation3 + $0x24] sm:$0xf] %v5089_v51 }
 0x17e   : > { %v1072_v13 = vadd.f32 %v1071_v12, %v5530_v42  ;;  %1261 = vst [vmem:[#allocation3 + $0x28] sm:$0xf] %v5089_v51 }
 0x17f   : > { %v1204_v14 = vpack.c.bf16 %v1168_v10, %v1119_v7  ;;  %1262 = vst [vmem:[#allocation3 + $0x2c] sm:$0xf] %v5089_v51 }
 0x180   : > { %v1205_v15 = vpack.c.bf16 %v1072_v13, %v1023_v11  ;;  %1263 = vst [vmem:[#allocation3 + $0x30] sm:$0xf] %v5089_v51 }
 0x181   : > { %1236 = vst [vmem:[#allocation2 + $0x88] sm:$0xff] %v1204_v14 }
 0x182   : > { %1237 = vst [vmem:[#allocation2 + $0x90] sm:$0xff] %v1205_v15 }
 0x183   : > { %v1120_v16 = vpop.f32.mrf.mxu2  ;;  %1264 = vst [vmem:[#allocation3 + $0x34] sm:$0xf] %v5089_v51 }
 0x184   : > { %v1121_v17 = vadd.f32 %v1120_v16, %v5534_v48  ;;  %v1169_v18 = vpop.f32.mrf.mxu3  ;;  %v1025_v19 = vpop.f32.mrf.mxu0  ;;  %1265 = vst [vmem:[#allocation3 + $0x38] sm:$0xf] %v5089_v51 }
 0x185   : > { %v1170_v20 = vadd.f32 %v1169_v18, %v5536_v49  ;;  %v1026_v21 = vadd.f32 %v1025_v19, %v5528_v41  ;;  %v1074_v22 = vpop.f32.mrf.mxu1  ;;  %1266 = vst [vmem:[#allocation3 + $0x3c] sm:$0xf] %v5089_v51 }
 0x186   : > { %v1075_v23 = vadd.f32 %v1074_v22, %v5530_v42  ;;  %1267 = vst [vmem:[#allocation4] sm:$0xf] %v5089_v51 }
 0x187   : > { %v1206_v24 = vpack.c.bf16 %v1170_v20, %v1121_v17  ;;  %1268 = vst [vmem:[#allocation4 + $0x4] sm:$0xf] %v5089_v51 }
 0x188   : > { %v1207_v25 = vpack.c.bf16 %v1075_v23, %v1026_v21  ;;  %1269 = vst [vmem:[#allocation4 + $0x8] sm:$0xf] %v5089_v51 }
 0x189   : > { %1238 = vst [vmem:[#allocation2 + $0x98] sm:$0xff] %v1206_v24 }
 0x18a   : > { %1239 = vst [vmem:[#allocation2 + $0xa0] sm:$0xff] %v1207_v25 }
 0x18b   : > { %v1123_v26 = vpop.f32.mrf.mxu2  ;;  %1270 = vst [vmem:[#allocation4 + $0xc] sm:$0xf] %v5089_v51 }
 0x18c   : > { %v1124_v27 = vadd.f32 %v1123_v26, %v5534_v48  ;;  %v1172_v28 = vpop.f32.mrf.mxu3  ;;  %v1027_v29 = vpop.f32.mrf.mxu0  ;;  %1271 = vst [vmem:[#allocation4 + $0x10] sm:$0xf] %v5089_v51 }
 0x18d   : > { %v1173_v30 = vadd.f32 %v1172_v28, %v5536_v49  ;;  %v1028_v31 = vadd.f32 %v1027_v29, %v5528_v41  ;;  %v1076_v32 = vpop.f32.mrf.mxu1  ;;  %1272 = vst [vmem:[#allocation4 + $0x14] sm:$0xf] %v5089_v51 }
 0x18e   : > { %v1077_v33 = vadd.f32 %v1076_v32, %v5530_v42  ;;  %1273 = vst [vmem:[#allocation4 + $0x18] sm:$0xf] %v5089_v51 }
 0x18f   : > { %v1208_v34 = vpack.c.bf16 %v1173_v30, %v1124_v27  ;;  %1274 = vst [vmem:[#allocation4 + $0x1c] sm:$0xf] %v5089_v51 }
 0x190   : > { %v1209_v35 = vpack.c.bf16 %v1077_v33, %v1028_v31  ;;  %1275 = vst [vmem:[#allocation4 + $0x20] sm:$0xf] %v5089_v51 }
 0x191   : > { %1240 = vst [vmem:[#allocation2 + $0xa8] sm:$0xff] %v1208_v34 }
 0x192   : > { %1241 = vst [vmem:[#allocation2 + $0xb0] sm:$0xff] %v1209_v35 }
 0x193   : > { %v1125_v36 = vpop.f32.mrf.mxu2  ;;  %1276 = vst [vmem:[#allocation4 + $0x24] sm:$0xf] %v5089_v51 }
 0x194   : > { %v1126_v37 = vadd.f32 %v1125_v36, %v5534_v48  ;;  %v1174_v38 = vpop.f32.mrf.mxu3  ;;  %v1030_v39 = vpop.f32.mrf.mxu0  ;;  %1277 = vst [vmem:[#allocation4 + $0x28] sm:$0xf] %v5089_v51 }
 0x195   : > { %v1175_v40 = vadd.f32 %v1174_v38, %v5536_v49  ;;  %v1031_v43 = vadd.f32 %v1030_v39, %v5528_v41  ;;  %v1079_v44 = vpop.f32.mrf.mxu1  ;;  %1278 = vst [vmem:[#allocation4 + $0x2c] sm:$0xf] %v5089_v51 }
 0x196   : > { %v1080_v45 = vadd.f32 %v1079_v44, %v5530_v42  ;;  %1279 = vst [vmem:[#allocation4 + $0x30] sm:$0xf] %v5089_v51 }
 0x197   : > { %v1210_v46 = vpack.c.bf16 %v1175_v40, %v1126_v37  ;;  %1280 = vst [vmem:[#allocation4 + $0x34] sm:$0xf] %v5089_v51 }
 0x198   : > { %v1211_v47 = vpack.c.bf16 %v1080_v45, %v1031_v43  ;;  %1281 = vst [vmem:[#allocation4 + $0x38] sm:$0xf] %v5089_v51 }
 0x199   : > { %1242 = vst [vmem:[#allocation2 + $0xb8] sm:$0xff] %v1210_v46 }
 0x19a   : > { %1243 = vst [vmem:[#allocation2 + $0xc0] sm:$0xff] %v1211_v47 }
 0x19b   : > { %v1128_v50 = vpop.f32.mrf.mxu2  ;;  %1282 = vst [vmem:[#allocation4 + $0x3c] sm:$0xf] %v5089_v51 }
 0x19c   : > { %v1129_v52 = vadd.f32 %v1128_v50, %v5534_v48  ;;  %v1177_v53 = vpop.f32.mrf.mxu3  ;;  %v1032_v54 = vpop.f32.mrf.mxu0 }
 0x19d   : > { %v1178_v55 = vadd.f32 %v1177_v53, %v5536_v49  ;;  %v1033_v56 = vadd.f32 %v1032_v54, %v5528_v41  ;;  %v1081_v57 = vpop.f32.mrf.mxu1 }
 0x19e   : > { %v1082_v58 = vadd.f32 %v1081_v57, %v5530_v42 }
 0x19f   : > { %v1212_v59 = vpack.c.bf16 %v1178_v55, %v1129_v52 }
 0x1a0   : > { %v1213_v60 = vpack.c.bf16 %v1082_v58, %v1033_v56 }
 0x1a1   : > { %1244 = vst [vmem:[#allocation2 + $0xc8] sm:$0xff] %v1212_v59 }
 0x1a2   : > { %1245 = vst [vmem:[#allocation2 + $0xd0] sm:$0xff] %v1213_v60 }
 0x1a3   : > { %v1130_v61 = vpop.f32.mrf.mxu2 }
 0x1a4   : > { %v1131_v62 = vadd.f32 %v1130_v61, %v5534_v48  ;;  %v1179_v63 = vpop.f32.mrf.mxu3  ;;  %v1035_v0 = vpop.f32.mrf.mxu0 }
 0x1a5   : > { %v1180_v1 = vadd.f32 %v1179_v63, %v5536_v49  ;;  %v1036_v2 = vadd.f32 %v1035_v0, %v5528_v41  ;;  %v1084_v3 = vpop.f32.mrf.mxu1 }
 0x1a6   : > { %v1085_v4 = vadd.f32 %v1084_v3, %v5530_v42 }
 0x1a7   : > { %v1214_v5 = vpack.c.bf16 %v1180_v1, %v1131_v62 }
 0x1a8   : > { %v1215_v6 = vpack.c.bf16 %v1085_v4, %v1036_v2 }
 0x1a9   : > { %1246 = vst [vmem:[#allocation2 + $0xd8] sm:$0xff] %v1214_v5 }
 0x1aa   : > { %1247 = vst [vmem:[#allocation2 + $0xe0] sm:$0xff] %v1215_v6 }
 0x1ab   : > { %v1133_v7 = vpop.f32.mrf.mxu2 }
 0x1ac   : > { %v1134_v8 = vadd.f32 %v1133_v7, %v5534_v48  ;;  %v1182_v9 = vpop.f32.mrf.mxu3  ;;  %v1037_v10 = vpop.f32.mrf.mxu0 }
 0x1ad   : > { %v1183_v11 = vadd.f32 %v1182_v9, %v5536_v49  ;;  %v1038_v12 = vadd.f32 %v1037_v10, %v5528_v41  ;;  %v1086_v13 = vpop.f32.mrf.mxu1 }
 0x1ae   : > { %v1087_v14 = vadd.f32 %v1086_v13, %v5530_v42 }
 0x1af   : > { %v1216_v15 = vpack.c.bf16 %v1183_v11, %v1134_v8 }
 0x1b0   : > { %v1217_v16 = vpack.c.bf16 %v1087_v14, %v1038_v12 }
 0x1b1   : > { %1248 = vst [vmem:[#allocation2 + $0xe8] sm:$0xff] %v1216_v15 }
 0x1b2   : > { %1249 = vst [vmem:[#allocation2 + $0xf0] sm:$0xff] %v1217_v16 }
 0x1b3   : > { %v1135_v17 = vpop.f32.mrf.mxu2 }
 0x1b4   : > { %v1136_v41 = vadd.f32 %v1135_v17, %v5534_v48  ;;  %v1184_v18 = vpop.f32.mrf.mxu3 }
 0x1b5   : > { %v1185_v42 = vadd.f32 %v1184_v18, %v5536_v49 }
 0x1b7   : > { %v1218_v19 = vpack.c.bf16 %v1185_v42, %v1136_v41 }
 0x1b9   : > { %1250 = vst [vmem:[#allocation2 + $0xf8] sm:$0xff] %v1218_v19 }
 0x1ba PF: > { %v4232_v48 = vld [vmem:[#allocation3 + $0x38] sm:$0xff]  ;;  %v4231_v49 = vld [vmem:[#allocation3 + $0x30] sm:$0xff]  ;;  %v4230_v20 = vld [vmem:[#allocation3 + $0x28] sm:$0xff]  ;;  %s6214_s27 = sld [smem:[#allocation33_spill]] }
 0x1bb   : > { %1477 = vmatpush.bf16.msra.mxu0 %v4232_v48  ;;  %4383 = vmatpush.bf16.msra.mxu2 %v4232_v48  ;;  %v4229_v21 = vld [vmem:[#allocation3 + $0x20] sm:$0xff]  ;;  %v4228_v22 = vld [vmem:[#allocation3 + $0x18] sm:$0xff]  ;;  %v4227_v23 = vld [vmem:[#allocation3 + $0x10] sm:$0xff] }
 0x1bc   : > { %v4226_v24 = vld [vmem:[#allocation3 + $0x8] sm:$0xff]  ;;  %v4225_v25 = vld [vmem:[#allocation3] sm:$0xff]  ;;  %v4209_v26 = vld [vmem:[%s5448_s1] sm:$0xff] }
 0x1bd   : > { %v4213_v27 = vld [vmem:[%s5448_s1 + $0x20] sm:$0xff]  ;;  %v4240_v28 = vld [vmem:[#allocation4 + $0x38] sm:$0xff]  ;;  %v4238_v32 = vld [vmem:[#allocation4 + $0x28] sm:$0xff] }
 0x1be   : > { %4391 = vmatpush.bf16.msra.mxu3 %v4240_v28  ;;  %v4239_v29 = vld [vmem:[#allocation4 + $0x30] sm:$0xff]  ;;  %1574 = vmatpush.bf16.msra.mxu1 %v4240_v28  ;;  %v4210_v30 = vld [vmem:[%s5448_s1 + $0x8] sm:$0xff]  ;;  %v4237_v33 = vld [vmem:[#allocation4 + $0x20] sm:$0xff] }
 0x1bf   : > { %1478 = vmatpush.bf16.msra.mxu0 %v4231_v49  ;;  %4384 = vmatpush.bf16.msra.mxu2 %v4231_v49  ;;  %v4214_v31 = vld [vmem:[%s5448_s1 + $0x28] sm:$0xff]  ;;  %v4235_v35 = vld [vmem:[#allocation4 + $0x10] sm:$0xff]  ;;  %v4211_v36 = vld [vmem:[%s5448_s1 + $0x10] sm:$0xff] }
 0x1c0   : > { %v4236_v34 = vld [vmem:[#allocation4 + $0x18] sm:$0xff]  ;;  %v4215_v37 = vld [vmem:[%s5448_s1 + $0x30] sm:$0xff]  ;;  %v4234_v38 = vld [vmem:[#allocation4 + $0x8] sm:$0xff]  ;;  %p4062_p13 = scmp.ne.s32.totalorder %s6214_s27, 2 }
 0x1c1   : > { %v4233_v39 = vld [vmem:[#allocation4] sm:$0xff]  ;;  %v4247_v43 = vld [vmem:[%s5441_s6 + $0x30] sm:$0xff]  ;;  %v4212_v44 = vld [vmem:[%s5448_s1 + $0x18] sm:$0xff]  ;;  %s6215_s16 = sld [smem:[#allocation55_spill]] (!%p4062_p13) }
 0x1c2   : > { %4392 = vmatpush.bf16.msra.mxu3 %v4239_v29  ;;  %1575 = vmatpush.bf16.msra.mxu1 %v4239_v29  ;;  %v4248_v40 = vld [vmem:[%s5441_s6 + $0x38] sm:$0xff]  ;;  %v4216_v45 = vld [vmem:[%s5448_s1 + $0x38] sm:$0xff]  ;;  %v4246_v46 = vld [vmem:[%s5441_s6 + $0x28] sm:$0xff] }
 0x1c3   : > { %1479 = vmatpush.bf16.msra.mxu0 %v4230_v20  ;;  %4385 = vmatpush.bf16.msra.mxu2 %v4230_v20  ;;  %v4245_v47 = vld [vmem:[%s5441_s6 + $0x20] sm:$0xff]  ;;  %v4244_v50 = vld [vmem:[%s5441_s6 + $0x18] sm:$0xff]  ;;  %v4243_v51 = vld [vmem:[%s5441_s6 + $0x10] sm:$0xff] }
 0x1c4   : > { %v4242_v52 = vld [vmem:[%s5441_s6 + $0x8] sm:$0xff]  ;;  %v4241_v53 = vld [vmem:[%s5441_s6] sm:$0xff]  ;;  %v3832_v15 = vld [vmem:[#allocation2 + $0xf8] sm:$0xf0] }
 0x1c5   : > { %v4206_v14 = vld [vmem:[#allocation2 + $0xec] sm:$0xf]  ;;  %v3828_v41 = vld [vmem:[#allocation2 + $0xd8] sm:$0xf0]  ;;  %v1348_v18 = vld [vmem:[%s640_s30] sm:$0xf] }
 0x1c6   : > { %4393 = vmatpush.bf16.msra.mxu3 %v4238_v32  ;;  %1576 = vmatpush.bf16.msra.mxu1 %v4238_v32  ;;  %v3835_v16 = vor.u32 %v4206_v14, %v3832_v15  ;;  %v4202_v17 = vld [vmem:[#allocation2 + $0xcc] sm:$0xf]  ;;  %v3824_v48 = vld [vmem:[#allocation2 + $0xb8] sm:$0xf0]  ;;  %v3854_v15 = vld [vmem:[%s5431_s28] sm:$0xf] }
 0x1c7   : > { %1480 = vmatpush.bf16.msra.mxu0 %v4229_v21  ;;  %4386 = vmatpush.bf16.msra.mxu2 %v4229_v21  ;;  %v3831_v42 = vor.u32 %v4202_v17, %v3828_v41  ;;  %v4198_v19 = vld [vmem:[#allocation2 + $0xac] sm:$0xf]  ;;  %v3820_v21 = vld [vmem:[#allocation2 + $0x98] sm:$0xf0]  ;;  %v4034_v41 = vld [vmem:[#allocation2 + $0xe0] sm:$0xf] }
 0x1c8   : > { %v3827_v49 = vor.u32 %v4198_v19, %v3824_v48  ;;  %v4194_v20 = vld [vmem:[#allocation2 + $0x8c] sm:$0xf]  ;;  %v3904_v48 = vld [vmem:[%s5431_s28 + $0x6c] sm:$0xf0] }
 0x1c9   : > { %v4182_v29 = vld [vmem:[#allocation2 + $0x2c] sm:$0xf] }
 0x1ca   : > { %4394 = vmatpush.bf16.msra.mxu3 %v4237_v33  ;;  %1577 = vmatpush.bf16.msra.mxu1 %v4237_v33  ;;  %v4178_v32 = vld [vmem:[#allocation2 + $0xc] sm:$0xf]  ;;  %v3804_v33 = vld [vmem:[#allocation2 + $0x18] sm:$0xf0] }
 0x1cb   : > { %1481 = vmatpush.bf16.msra.mxu0 %v4228_v22  ;;  %4387 = vmatpush.bf16.msra.mxu2 %v4228_v22  ;;  %v3823_v22 = vor.u32 %v4194_v20, %v3820_v21  ;;  %v4261_v19 = vld [vmem:[%s5431_s28 + $0x64] sm:$0xf]  ;;  %v4022_v20 = vld [vmem:[#allocation2 + $0xc0] sm:$0xf]  ;;  %v4203_v21 = vld [vmem:[#allocation2 + $0xcc] sm:$0xf0] }
 0x1ce   : > { %4395 = vmatpush.bf16.msra.mxu3 %v4236_v34  ;;  %1578 = vmatpush.bf16.msra.mxu1 %v4236_v34  ;;  %v3807_v34 = vor.u32 %v4178_v32, %v3804_v33  ;;  %v4199_v32 = vld [vmem:[#allocation2 + $0xac] sm:$0xf0] }
 0x1cf   : > { %1482 = vmatpush.bf16.msra.mxu0 %v4227_v23  ;;  %4388 = vmatpush.bf16.msra.mxu2 %v4227_v23  ;;  %v4190_v23 = vld [vmem:[#allocation2 + $0x6c] sm:$0xf] }
 0x1d2   : > { %4396 = vmatpush.bf16.msra.mxu3 %v4235_v35  ;;  %1579 = vmatpush.bf16.msra.mxu1 %v4235_v35  ;;  %v4217_v35 = vld [vmem:[%s5450_s10] sm:$0xff] }
 0x1d3   : > { %1483 = vmatpush.bf16.msra.mxu0 %v4226_v24  ;;  %4389 = vmatpush.bf16.msra.mxu2 %v4226_v24  ;;  %v3816_v24 = vld [vmem:[#allocation2 + $0x78] sm:$0xf0] }
 0x1d6   : > { %4397 = vmatpush.bf16.msra.mxu3 %v4234_v38  ;;  %1580 = vmatpush.bf16.msra.mxu1 %v4234_v38  ;;  %v4218_v38 = vld [vmem:[%s5450_s10 + $0x8] sm:$0xff] }
 0x1d7   : > { %1484 = vmatpush.bf16.msra.mxu0 %v4225_v25  ;;  %4390 = vmatpush.bf16.msra.mxu2 %v4225_v25  ;;  %v3819_v25 = vor.u32 %v4190_v23, %v3816_v24  ;;  %v4023_v24 = vor.u32 %v4203_v21, %v4022_v20 }
 0x1da   : > { %1485 = vmatmul.bf16.vlgmr.msra.gmra.mxu0 %v4209_v26  ;;  %1505 = vmatmul.bf16.vlgmr.msra.gmra.mxu2 %v4213_v27 }
 0x1db   : > { %4398 = vmatpush.bf16.msra.mxu3 %v4233_v39  ;;  %1581 = vmatpush.bf16.msra.mxu1 %v4233_v39 }
 0x1de   : > { %1602 = vmatmul.bf16.vlgmr.msra.gmra.mxu3 %v4213_v27  ;;  %1582 = vmatmul.bf16.vlgmr.msra.gmra.mxu1 %v4209_v26  ;;  %v4186_v26 = vld [vmem:[#allocation2 + $0x4c] sm:$0xf]  ;;  %v3812_v27 = vld [vmem:[#allocation2 + $0x58] sm:$0xf0] }
 0x1df   : > { %1708 = vmatpush.bf16.msrb.mxu3 %v4248_v40  ;;  %v3815_v28 = vor.u32 %v4186_v26, %v3812_v27  ;;  %v3938_v40 = vld [vmem:[%s5431_s28 + $0xa8] sm:$0xf] }
 0x1e0   : > { %v4221_v27 = vld [vmem:[%s5450_s10 + $0x20] sm:$0xff] }
 0x1e3   : > { %1709 = vmatpush.bf16.msrb.mxu3 %v4247_v43  ;;  %v4271_v43 = vld [vmem:[%s5431_s28 + $0xb0] sm:$0xf0] }
 0x1e7   : > { %1710 = vmatpush.bf16.msrb.mxu3 %v4246_v46  ;;  %v4219_v46 = vld [vmem:[%s5450_s10 + $0x10] sm:$0xff] }
 0x1ea   : > { %1490 = vmatmul.bf16.gmra.mxu0 %v4210_v30  ;;  %1510 = vmatmul.bf16.gmra.mxu2 %v4214_v31 }
 0x1eb   : > { %1711 = vmatpush.bf16.msrb.mxu3 %v4245_v47  ;;  %v3926_v47 = vld [vmem:[%s5431_s28 + $0x90] sm:$0xf] }
 0x1ee   : > { %1607 = vmatmul.bf16.gmra.mxu3 %v4214_v31  ;;  %1587 = vmatmul.bf16.gmra.mxu1 %v4210_v30  ;;  %v3808_v30 = vld [vmem:[#allocation2 + $0x38] sm:$0xf0] }
 0x1ef   : > { %1712 = vmatpush.bf16.msrb.mxu3 %v4244_v50  ;;  %v3811_v31 = vor.u32 %v4182_v29, %v3808_v30  ;;  %v4268_v50 = vld [vmem:[%s5431_s28 + $0x98] sm:$0xf0]  ;;  %v4036_v29 = vld [vmem:[#allocation2 + $0xf0] sm:$0xf0] }
 0x1f3   : > { %1713 = vmatpush.bf16.msrb.mxu3 %v4243_v51  ;;  %v3927_v51 = vor.u32 %v4268_v50, %v3926_v47  ;;  %v4195_v47 = vld [vmem:[#allocation2 + $0x8c] sm:$0xf0] }
 0x1f7   : > { %1714 = vmatpush.bf16.msrb.mxu3 %v4242_v52  ;;  %v3914_v52 = vld [vmem:[%s5431_s28 + $0x78] sm:$0xf] }
 0x1fa   : > { %1495 = vmatmul.bf16.gmra.mxu0 %v4211_v36  ;;  %1515 = vmatmul.bf16.gmra.mxu2 %v4215_v37 }
 0x1fb   : > { %1715 = vmatpush.bf16.msrb.mxu3 %v4241_v53  ;;  %v4265_v53 = vld [vmem:[%s5431_s28 + $0x80] sm:$0xf0] }
 0x1fe   : > { %1612 = vmatmul.bf16.gmra.mxu3 %v4215_v37  ;;  %1592 = vmatmul.bf16.gmra.mxu1 %v4211_v36 }
 0x20a   : > { %1500 = vmatmul.bf16.gmra.mxu0 %v4212_v44  ;;  %1520 = vmatmul.bf16.gmra.mxu2 %v4216_v45 }
 0x20e   : > { %1617 = vmatmul.bf16.gmra.mxu3 %v4216_v45  ;;  %1597 = vmatmul.bf16.gmra.mxu1 %v4212_v44  ;;  %v3939_v44 = vor.u32 %v4271_v43, %v3938_v40  ;;  %v4201_v40 = vld [vmem:[#allocation2 + $0xc4] sm:$0xf]  ;;  %v4024_v43 = vld [vmem:[#allocation2 + $0xd0] sm:$0xf0] }
 0x210   : > { %2404 = vmatpush.bf16.msrb.mxu1 %v3939_v44  ;;  %v4027_v44 = vor.u32 %v4201_v40, %v4024_v43 }
 0x214   : > { %2405 = vmatpush.bf16.msrb.mxu1 %v3927_v51 }
 0x257   : > { %v1486_v54 = vpop.f32.mrf.mxu0 }
 0x25d   : > { %v1506_v55 = vpop.f32.mrf.mxu2 }
 0x25f   : > { %v1488_v56 = vpop.f32.mrf.mxu0 }
 0x260   : > { %v1623_v57 = vpack.c.bf16 %v1488_v56, %v1486_v54  ;;  %v3915_v54 = vor.u32 %v4265_v53, %v3914_v52  ;;  %v3902_v56 = vld [vmem:[%s5431_s28 + $0x60] sm:$0xf]  ;;  %v4252_v52 = vld [vmem:[%s5431_s28 + $0x1c] sm:$0xf]  ;;  %v3868_v53 = vld [vmem:[%s5431_s28 + $0x24] sm:$0xf0] }
 0x261   : > { %v5651_v36 = vpop.f32.mrf.mxu3 }
 0x262   : > { %1716 = vmatmul.bf16.vlgmr.msrb.gmra.mxu3 %v1623_v57  ;;  %2406 = vmatpush.bf16.msrb.mxu1 %v3915_v54  ;;  %v3871_v54 = vor.u32 %v4252_v52, %v3868_v53 }
 0x265   : > { %v1508_v58 = vpop.f32.mrf.mxu2 }
 0x266   : > { %v1627_v13 = vpack.c.bf16 %v1508_v58, %v1506_v55 }
 0x267   : > { %v1491_v59 = vpop.f32.mrf.mxu0 }
 0x269   : > { %v5653_v37 = vpop.f32.mrf.mxu3 }
 0x26d   : > { %v1511_v60 = vpop.f32.mrf.mxu2 }
 0x26f   : > { %v1493_v61 = vpop.f32.mrf.mxu0 }
 0x270   : > { %v1624_v62 = vpack.c.bf16 %v1493_v61, %v1491_v59  ;;  %v3890_v59 = vld [vmem:[%s5431_s28 + $0x48] sm:$0xf]  ;;  %v4270_v61 = vld [vmem:[%s5431_s28 + $0xac] sm:$0xf] }
 0x271   : > { %v5656_v39 = vpop.f32.mrf.mxu3 }
 0x272   : > { %1721 = vmatmul.bf16.gmra.mxu3 %v1624_v62 }
 0x275   : > { %v1513_v63 = vpop.f32.mrf.mxu2 }
 0x276   : > { %v1628_v12 = vpack.c.bf16 %v1513_v63, %v1511_v60  ;;  %v4259_v60 = vld [vmem:[%s5431_s28 + $0x50] sm:$0xf0]  ;;  %v3940_v63 = vld [vmem:[%s5431_s28 + $0xb4] sm:$0xf0] }
 0x277   : > { %v1496_v0 = vpop.f32.mrf.mxu0 }
 0x279   : > { %v5660_v45 = vpop.f32.mrf.mxu3 }
 0x27d   : > { %v1516_v1 = vpop.f32.mrf.mxu2 }
 0x27f   : > { %v1498_v2 = vpop.f32.mrf.mxu0 }
 0x280   : > { %v1625_v3 = vpack.c.bf16 %v1498_v2, %v1496_v0  ;;  %v3943_v0 = vor.u32 %v4270_v61, %v3940_v63  ;;  %v3878_v2 = vld [vmem:[%s5431_s28 + $0x30] sm:$0xf] }
 0x281   : > { %v5667_v55 = vpop.f32.mrf.mxu3  ;;  %v3856_v63 = vld [vmem:[%s5431_s28 + $0xc] sm:$0xf0] }
 0x282   : > { %1726 = vmatmul.bf16.gmra.mxu3 %v1625_v3 }
 0x283   : > { %2417 = vmatpush.bf16.msra.mxu3 %v3943_v0 }
 0x285   : > { %v1518_v4 = vpop.f32.mrf.mxu2 }
 0x286   : > { %v1629_v11 = vpack.c.bf16 %v1518_v4, %v1516_v1  ;;  %v4220_v1 = vld [vmem:[%s5450_s10 + $0x18] sm:$0xff] }
 0x287   : > { %v1501_v5 = vpop.f32.mrf.mxu0 }
 0x28d   : > { %v1521_v6 = vpop.f32.mrf.mxu2 }
 0x28f   : > { %v1503_v7 = vpop.f32.mrf.mxu0 }
 0x290   : > { %v1626_v8 = vpack.c.bf16 %v1503_v7, %v1501_v5  ;;  %v5678_v5 = vpop.f32.mrf.mxu3  ;;  %v3928_v7 = vld [vmem:[%s5431_s28 + $0x9c] sm:$0xf0] }
 0x292   : > { %1731 = vmatmul.bf16.gmra.mxu3 %v1626_v8 }
 0x295   : > { %v1523_v9 = vpop.f32.mrf.mxu2 }
 0x296   : > { %v1630_v10 = vpack.c.bf16 %v1523_v9, %v1521_v6  ;;  %v4267_v6 = vld [vmem:[%s5431_s28 + $0x94] sm:$0xf]  ;;  %v3866_v9 = vld [vmem:[%s5431_s28 + $0x18] sm:$0xf] }
 0x298   : > { %1631 = vmatpush.bf16.msrb.mxu2 %v1630_v10  ;;  %v5691_v23 = vpop.f32.mrf.mxu3 }
 0x29c   : > { %1632 = vmatpush.bf16.msrb.mxu2 %v1629_v11 }
 0x2a0   : > { %1633 = vmatpush.bf16.msrb.mxu2 %v1628_v12  ;;  %v5697_v50 = vpop.f32.mrf.mxu3 }
 0x2a2   : > { %1736 = vmatmul.bf16.gmra.mxu3 %v1627_v13 }
 0x2a4   : > { %1634 = vmatpush.bf16.msrb.mxu2 %v1627_v13  ;;  %v3916_v13 = vld [vmem:[%s5431_s28 + $0x84] sm:$0xf0] }
 0x2a8   : > { %1635 = vmatpush.bf16.msrb.mxu2 %v1626_v8  ;;  %v3931_v8 = vor.u32 %v4267_v6, %v3928_v7  ;;  %v4187_v6 = vld [vmem:[#allocation2 + $0x4c] sm:$0xf0] }
 0x2aa   : > { %2418 = vmatpush.bf16.msra.mxu3 %v3931_v8  ;;  %v4222_v8 = vld [vmem:[%s5450_s10 + $0x28] sm:$0xff] }
 0x2ac   : > { %1636 = vmatpush.bf16.msrb.mxu2 %v1625_v3  ;;  %v4256_v3 = vld [vmem:[%s5431_s28 + $0x38] sm:$0xf0] }
 0x2ad   : > { %v3879_v4 = vor.u32 %v4256_v3, %v3878_v2  ;;  %v4000_v2 = vld [vmem:[#allocation2 + $0x90] sm:$0xf0]  ;;  %v3974_v3 = vld [vmem:[#allocation2 + $0x40] sm:$0xf] }
 0x2ae   : > { %v3975_v7 = vor.u32 %v4187_v6, %v3974_v3 }
 0x2b0   : > { %1637 = vmatpush.bf16.msrb.mxu2 %v1624_v62  ;;  %v3891_v62 = vor.u32 %v4259_v60, %v3890_v59  ;;  %v3986_v59 = vld [vmem:[#allocation2 + $0x60] sm:$0xf]  ;;  %v4191_v60 = vld [vmem:[#allocation2 + $0x6c] sm:$0xf0] }
 0x2b1   : > { %v3987_v61 = vor.u32 %v4191_v60, %v3986_v59 }
 0x2b2   : > { %1741 = vmatmul.bf16.gmra.mxu3 %v1628_v12 }
 0x2b4   : > { %1638 = vmatpush.bf16.msrb.mxu2 %v1623_v57  ;;  %v4262_v57 = vld [vmem:[%s5431_s28 + $0x68] sm:$0xf0] }
 0x2b5   : > { %v3903_v58 = vor.u32 %v4262_v57, %v3902_v56  ;;  %v4197_v56 = vld [vmem:[#allocation2 + $0xa4] sm:$0xf]  ;;  %v4012_v57 = vld [vmem:[#allocation2 + $0xb0] sm:$0xf0] }
 0x2b7   : > { %1639 = vmatmul.bf16.vlgmr.msrb.gmra.mxu2 %v1348_v18  ;;  %2407 = vmatpush.bf16.msrb.mxu1 %v3903_v58  ;;  %v4207_v18 = vld [vmem:[#allocation2 + $0xec] sm:$0xf0]  ;;  %v4015_v58 = vor.u32 %v4197_v56, %v4012_v57 }
 0x2b8   : > { %1853 = vmatpush.bf16.msra.mxu2 %v3835_v16  ;;  %v4250_v16 = vld [vmem:[%s5431_s28 + $0x8] sm:$0xf0] }
 0x2b9   : > { %v3855_v17 = vor.u32 %v4250_v16, %v3854_v15  ;;  %v4185_v16 = vld [vmem:[#allocation2 + $0x44] sm:$0xf] }
 0x2bb   : > { %2408 = vmatpush.bf16.msrb.mxu1 %v3891_v62  ;;  %v4249_v62 = vld [vmem:[%s5431_s28 + $0x4] sm:$0xf] }
 0x2bc   : > { %1854 = vmatpush.bf16.msra.mxu2 %v3831_v42  ;;  %v4035_v42 = vor.u32 %v4207_v18, %v4034_v41  ;;  %v3859_v0 = vor.u32 %v4249_v62, %v3856_v63  ;;  %v3950_v41 = vld [vmem:[#allocation2] sm:$0xf] }
 0x2bf   : > { %2409 = vmatpush.bf16.msrb.mxu1 %v3879_v4 }
 0x2c0   : > { %1855 = vmatpush.bf16.msra.mxu2 %v3827_v49  ;;  %v3907_v49 = vor.u32 %v4261_v19, %v3904_v48  ;;  %v4181_v48 = vld [vmem:[#allocation2 + $0x24] sm:$0xf] }
 0x2c2   : > { %1746 = vmatmul.bf16.gmra.mxu3 %v1629_v11  ;;  %v4264_v11 = vld [vmem:[%s5431_s28 + $0x7c] sm:$0xf] }
 0x2c3   : > { %v3919_v14 = vor.u32 %v4264_v11, %v3916_v13  ;;  %v3988_v11 = vld [vmem:[#allocation2 + $0x70] sm:$0xf0]  ;;  %v3962_v13 = vld [vmem:[#allocation2 + $0x20] sm:$0xf] }
 0x2c4   : > { %1856 = vmatpush.bf16.msra.mxu2 %v3823_v22  ;;  %v4258_v22 = vld [vmem:[%s5431_s28 + $0x4c] sm:$0xf] }
 0x2c5   : > { %2419 = vmatpush.bf16.msra.mxu3 %v3919_v14  ;;  %v4183_v14 = vld [vmem:[#allocation2 + $0x2c] sm:$0xf0] }
 0x2c6   : > { %v3963_v15 = vor.u32 %v4183_v14, %v3962_v13 }
 0x2c8   : > { %1857 = vmatpush.bf16.msra.mxu2 %v3819_v25  ;;  %v3892_v25 = vld [vmem:[%s5431_s28 + $0x54] sm:$0xf0] }
 0x2c9   : > { %2420 = vmatpush.bf16.msra.mxu3 %v3907_v49  ;;  %v3895_v26 = vor.u32 %v4258_v22, %v3892_v25  ;;  %v3964_v49 = vld [vmem:[#allocation2 + $0x30] sm:$0xf0]  ;;  %v5706_v22 = vld [vmem:[%s610_s11] sm:$0xf] }
 0x2ca   : > { %v3967_v20 = vor.u32 %v4181_v48, %v3964_v49  ;;  %v3952_v25 = vld [vmem:[#allocation2 + $0x10] sm:$0xf0]  ;;  %2638 = vxpose.xlu0.c.b16.start.end [1/1] (short) %v5706_v22, 128 }
 0x2cc   : > { %1858 = vmatpush.bf16.msra.mxu2 %v3815_v28  ;;  %v4205_v28 = vld [vmem:[#allocation2 + $0xe4] sm:$0xf] }
 0x2cd   : > { %2421 = vmatpush.bf16.msra.mxu3 %v3895_v26  ;;  %v4039_v30 = vor.u32 %v4205_v28, %v4036_v29 }
 0x2d0   : > { %1859 = vmatpush.bf16.msra.mxu2 %v3811_v31  ;;  %v4010_v31 = vld [vmem:[#allocation2 + $0xa0] sm:$0xf] }
 0x2d1   : > { %v4011_v33 = vor.u32 %v4199_v32, %v4010_v31  ;;  %v4224_v32 = vld [vmem:[%s5450_s10 + $0x38] sm:$0xff] }
 0x2d2   : > { %1751 = vmatmul.bf16.gmra.mxu3 %v1630_v10  ;;  %v4253_v10 = vld [vmem:[%s5431_s28 + $0x20] sm:$0xf0] }
 0x2d3   : > { %v3867_v12 = vor.u32 %v4253_v10, %v3866_v9  ;;  %v4189_v10 = vld [vmem:[#allocation2 + $0x64] sm:$0xf] }
 0x2d4   : > { %1860 = vmatpush.bf16.msra.mxu2 %v3807_v34  ;;  %v4255_v34 = vld [vmem:[%s5431_s28 + $0x34] sm:$0xf] }
 0x2d5   : > { %2410 = vmatpush.bf16.msrb.mxu1 %v3867_v12  ;;  %v3991_v12 = vor.u32 %v4189_v10, %v3988_v11 }
 0x2d7   : > { %1861 = vmatmul.bf16.vlgmr.msra.gmra.mxu2 %v4217_v35  ;;  %v3880_v35 = vld [vmem:[%s5431_s28 + $0x3c] sm:$0xf0] }
 0x2d8   : > { %2568 = vmatpush.bf16.msrb.mxu2 %v4039_v30 }
 0x2d9   : > { %2411 = vmatpush.bf16.msrb.mxu1 %v3855_v17  ;;  %v3976_v17 = vld [vmem:[#allocation2 + $0x50] sm:$0xf0] }
 0x2da   : > { %v3979_v18 = vor.u32 %v4185_v16, %v3976_v17 }
 0x2dc   : > { %2569 = vmatpush.bf16.msrb.mxu2 %v4027_v44 }
 0x2dd   : > { %2555 = vmatpush.bf16.msra.mxu1 %v4035_v42  ;;  %v4179_v42 = vld [vmem:[#allocation2 + $0xc] sm:$0xf0] }
 0x2de   : > { %v3951_v19 = vor.u32 %v4179_v42, %v3950_v41 }
 0x2e0   : > { %2570 = vmatpush.bf16.msrb.mxu2 %v4015_v58 }
 0x2e1   : > { %2556 = vmatpush.bf16.msra.mxu1 %v4023_v24  ;;  %v4177_v24 = vld [vmem:[#allocation2 + $0x4] sm:$0xf] }
 0x2e2   : > { %v3955_v26 = vor.u32 %v4177_v24, %v3952_v25 }
 0x2e5   : > { %2557 = vmatpush.bf16.msra.mxu1 %v4011_v33  ;;  %v1717_v9 = vpop.f32.mrf.mxu3 }
 0x2e7   : > { %1866 = vmatmul.bf16.gmra.mxu2 %v4218_v38  ;;  %v3883_v38 = vor.u32 %v4255_v34, %v3880_v35 }
 0x2e9   : > { %2422 = vmatpush.bf16.msra.mxu3 %v3883_v38 }
 0x2ed   : > { %2423 = vmatpush.bf16.msra.mxu3 %v3871_v54  ;;  %v1719_v21 = vpop.f32.mrf.mxu3  ;;  %v1583_v54 = vpop.f32.mrf.mxu1 }
 0x2f1   : > { %2424 = vmatpush.bf16.msra.mxu3 %v3859_v0 }
 0x2f5   : > { %v1722_v28 = vpop.f32.mrf.mxu3  ;;  %v1585_v3 = vpop.f32.mrf.mxu1 }
 0x2f7   : > { %1871 = vmatmul.bf16.gmra.mxu2 %v4219_v46  ;;  %v3998_v46 = vld [vmem:[#allocation2 + $0x80] sm:$0xf] }
 0x2f8   : > { %v3999_v51 = vor.u32 %v4195_v47, %v3998_v46 }
 0x2fa   : > { %2558 = vmatpush.bf16.msra.mxu1 %v3999_v51 }
 0x2fd   : > { %v1724_v31 = vpop.f32.mrf.mxu3 }
 0x2fe   : > { %2559 = vmatpush.bf16.msra.mxu1 %v3987_v61 }
 0x302   : > { %2560 = vmatpush.bf16.msra.mxu1 %v3975_v7 }
 0x305   : > { %v1727_v34 = vpop.f32.mrf.mxu3 }
 0x306   : > { %2561 = vmatpush.bf16.msra.mxu1 %v3963_v15 }
 0x307   : > { %1876 = vmatmul.bf16.gmra.mxu2 %v4220_v1  ;;  %v4193_v1 = vld [vmem:[#allocation2 + $0x84] sm:$0xf] }
 0x308   : > { %v4003_v4 = vor.u32 %v4193_v1, %v4000_v2 }
 0x30a   : > { %2571 = vmatpush.bf16.msrb.mxu2 %v4003_v4  ;;  %2562 = vmatpush.bf16.msra.mxu1 %v3951_v19 }
 0x30d   : > { %v5716_v35 = vpop.f32.mrf.mxu3 }
 0x30e   : > { %2572 = vmatpush.bf16.msrb.mxu2 %v3991_v12 }
 0x312   : > { %2573 = vmatpush.bf16.msrb.mxu2 %v3979_v18 }
 0x315   : > { %v5719_v44 = vpop.f32.mrf.mxu3 }
 0x316   : > { %2574 = vmatpush.bf16.msrb.mxu2 %v3967_v20 }
 0x317   : > { %1881 = vmatmul.bf16.gmra.mxu2 %v4221_v27  ;;  %v4223_v27 = vld [vmem:[%s5450_s10 + $0x30] sm:$0xff] }
 0x31a   : > { %2575 = vmatpush.bf16.msrb.mxu2 %v3955_v26 }
 0x31d   : > { %v5721_v57 = vpop.f32.mrf.mxu3 }
 0x327   : > { %1886 = vmatmul.bf16.gmra.mxu2 %v4222_v8 }
 0x337   : > { %1891 = vmatmul.bf16.gmra.mxu2 %v4223_v27 }
 0x33a   : > { %v1640_v29 = vpop.f32.mrf.mxu2 }
 0x33b   : > { %v5710_v30 = vpack.c.bf16 %v1640_v29, %v1640_v29 }
 0x33d   : > { %2412 = vmatmul.bf16.vlgmr.msrb.gmra.mxu1 %v5710_v30  ;;  %2425 = vmatmul.bf16.vlgmr.msra.gmra.mxu3 %v5710_v30 }
 0x342   : > { %v1642_v33 = vpop.f32.mrf.mxu2 }
 0x347   : > { %1896 = vmatmul.bf16.gmra.mxu2 %v4224_v32 }
 0x34d   : > { %2563 = vmatmul.bf16.vlgmr.msra.gmra.mxu1 %v5706_v22 }
 0x357   : > { %2576 = vmatmul.bf16.vlgmr.msrb.gmra.mxu2 %v5706_v22 }
 0x35a   : > { %v1862_v38 = vpop.f32.mrf.mxu2 }
 0x35b   : > { %v1863_v40 = vadd.f32 %v1862_v38, %v1717_v9  ;;  %v5723_v9 = vpop.f32.mrf.mxu3 }
 0x35d   : > { %v3836_v43 = vmul.f32 -1.442695, %v1863_v40 }
 0x35f   : > { %4563 = vpow2.f32 %v3836_v43 }
 0x362   : > { %v1864_v46 = vpop.f32.mrf.mxu2 }
 0x363   : > { %v1865_v47 = vadd.f32 %v1864_v46, %v1719_v21  ;;  %v1588_v21 = vpop.f32.mrf.mxu1 }
 0x365   : > { %v4564_v51 = vpop.eup %4563  ;;  %v3837_v52 = vmul.f32 -1.442695, %v1865_v47 }
 0x366   : > { %v1950_v53 = vadd.f32 1.0, %v4564_v51 }
 0x367   : > { %4565 = vpow2.f32 %v3837_v52 }
 0x368   : > { %4567 = vrcp.f32 %v1950_v53  ;;  %v1977_v2 = vand.u32 2147483648, %v1950_v53  ;;  %v1975_v7 = vand.u32 2147483647, %v1950_v53  ;;  %vm1971_vm1 = vweird.f32 %v1950_v53 }
 0x36a   : > { %v1867_v56 = vpop.f32.mrf.mxu2  ;;  %v1978_v14 = vor.u32 1.1754944e-38, %v1977_v2  ;;  %vm1976_vm3 = vcmp.eq.f32.partialorder %v1975_v7, 8.507059e+37 }
 0x36b   : > { %v1868_v58 = vadd.f32 %v1867_v56, %v1722_v28 }
 0x36d   : > { %v4566_v59 = vpop.eup %4565  ;;  %v3838_v60 = vmul.f32 -1.442695, %v1868_v58 }
 0x36e   : > { %v4568_v61 = vpop.eup %4567  ;;  %v1951_v62 = vadd.f32 1.0, %v4566_v59 }
 0x36f   : > { %4569 = vpow2.f32 %v3838_v60  ;;  %v1967_v63 = vmul.f32 %v4568_v61, %v1950_v53  ;;  %vm1972_vm0 = vweird.f32 %v4568_v61 }
 0x370   : > { %4571 = vrcp.f32 %v1951_v62  ;;  %vm1973_vm2 = vmor %vm1971_vm1, %vm1972_vm0  ;;  %v1992_v19 = vand.u32 2147483648, %v1951_v62  ;;  %v1990_v20 = vand.u32 2147483647, %v1951_v62  ;;  %vm1986_vm5 = vweird.f32 %v1951_v62 }
 0x371   : > { %v1968_v0 = vsub.f32 1.0, %v1967_v63 }
 0x372   : > { %v1869_v1 = vpop.f32.mrf.mxu2  ;;  %v1993_v29 = vor.u32 1.1754944e-38, %v1992_v19  ;;  %vm1991_vm7 = vcmp.eq.f32.partialorder %v1990_v20, 8.507059e+37 }
 0x373   : > { %v1870_v4 = vadd.f32 %v1869_v1, %v1724_v31  ;;  %v1969_v6 = vmul.f32 %v4568_v61, %v1968_v0  ;;  %v5727_v31 = vpop.f32.mrf.mxu3 }
 0x375   : > { %v4570_v8 = vpop.eup %4569  ;;  %v3839_v10 = vmul.f32 -1.442695, %v1870_v4  ;;  %v1970_v11 = vadd.f32 %v4568_v61, %v1969_v6 }
 0x376   : > { %v4572_v12 = vpop.eup %4571  ;;  %v1952_v13 = vadd.f32 1.0, %v4570_v8 }
 0x377   : > { %4573 = vpow2.f32 %v3839_v10  ;;  %v1974_v15 = vsel %vm1973_vm2, %v4568_v61, %v1970_v11  ;;  %v1982_v16 = vmul.f32 %v4572_v12, %v1951_v62  ;;  %vm1987_vm4 = vweird.f32 %v4572_v12  ;;  %v1590_v62 = vpop.f32.mrf.mxu1 }
 0x378   : > { %4575 = vrcp.f32 %v1952_v13  ;;  %v1979_v17 = vsel %vm1976_vm3, %v1978_v14, %v1974_v15  ;;  %vm1988_vm6 = vmor %vm1986_vm5, %vm1987_vm4  ;;  %v2005_v46 = vand.u32 2147483647, %v1952_v13  ;;  %v2007_v47 = vand.u32 2147483648, %v1952_v13 }
 0x379   : > { %v5725_v41 = vmul.f32 %v1979_v17, %v1583_v54  ;;  %v1983_v18 = vsub.f32 1.0, %v1982_v16  ;;  %vm2001_vm9 = vweird.f32 %v1952_v13 }
 0x37a   : > { %v1872_v42 = vpop.f32.mrf.mxu2  ;;  %v2008_v61 = vor.u32 1.1754944e-38, %v2007_v47  ;;  %vm2006_vm11 = vcmp.eq.f32.partialorder %v2005_v46, 8.507059e+37 }
 0x37b   : > { %v1873_v48 = vadd.f32 %v1872_v42, %v1727_v34  ;;  %v1984_v49 = vmul.f32 %v4572_v12, %v1983_v18  ;;  %v5734_v1 = vpop.f32.mrf.mxu3 }
 0x37d   : > { %v4574_v24 = vpop.eup %4573  ;;  %v3840_v25 = vmul.f32 -1.442695, %v1873_v48  ;;  %v1985_v26 = vadd.f32 %v4572_v12, %v1984_v49 }
 0x37e   : > { %v4576_v27 = vpop.eup %4575  ;;  %v1953_v28 = vadd.f32 1.0, %v4574_v24 }
 0x37f   : > { %4577 = vpow2.f32 %v3840_v25  ;;  %v1989_v32 = vsel %vm1988_vm6, %v4572_v12, %v1985_v26  ;;  %v1997_v33 = vmul.f32 %v4576_v27, %v1952_v13  ;;  %vm2002_vm8 = vweird.f32 %v4576_v27  ;;  %v1593_v19 = vpop.f32.mrf.mxu1 }
 0x380   : > { %4579 = vrcp.f32 %v1953_v28  ;;  %v1994_v34 = vsel %vm1991_vm7, %v1993_v29, %v1989_v32  ;;  %vm2003_vm10 = vmor %vm2001_vm9, %vm2002_vm8  ;;  %v2022_v6 = vand.u32 2147483648, %v1953_v28  ;;  %v2020_v10 = vand.u32 2147483647, %v1953_v28 }
 0x381   : > { %v5729_v38 = vmul.f32 %v1994_v34, %v1585_v3  ;;  %v1998_v40 = vsub.f32 1.0, %v1997_v33  ;;  %vm2016_vm13 = vweird.f32 %v1953_v28 }
 0x382   : > { %v1874_v43 = vpop.f32.mrf.mxu2  ;;  %v2023_v16 = vor.u32 1.1754944e-38, %v2022_v6  ;;  %vm2021_vm15 = vcmp.eq.f32.partialorder %v2020_v10, 8.507059e+37 }
 0x383   : > { %v1875_v51 = vadd.f32 %v1874_v43, %v5716_v35  ;;  %v1999_v52 = vmul.f32 %v4576_v27, %v1998_v40  ;;  %v5741_v24 = vpop.f32.mrf.mxu3 }
 0x385   : > { %v4578_v54 = vpop.eup %4577  ;;  %v3841_v56 = vmul.f32 -1.442695, %v1875_v51  ;;  %v2000_v58 = vadd.f32 %v4576_v27, %v1999_v52 }
 0x386   : > { %v4580_v59 = vpop.eup %4579  ;;  %v1954_v60 = vadd.f32 1.0, %v4578_v54 }
 0x387   : > { %4581 = vpow2.f32 %v3841_v56  ;;  %v2004_v63 = vsel %vm2003_vm10, %v4576_v27, %v2000_v58  ;;  %v2012_v0 = vmul.f32 %v4580_v59, %v1953_v28  ;;  %vm2017_vm12 = vweird.f32 %v4580_v59  ;;  %v1595_v54 = vpop.f32.mrf.mxu1 }
 0x388   : > { %4583 = vrcp.f32 %v1954_v60  ;;  %v2009_v35 = vsel %vm2006_vm11, %v2008_v61, %v2004_v63  ;;  %vm2018_vm14 = vmor %vm2016_vm13, %vm2017_vm12  ;;  %v2035_v20 = vand.u32 2147483647, %v1954_v60  ;;  %vm2031_vm1 = vweird.f32 %v1954_v60 }
 0x389   : > { %v5736_v2 = vmul.f32 %v2009_v35, %v1588_v21  ;;  %v2013_v3 = vsub.f32 1.0, %v2012_v0  ;;  %v2037_v21 = vand.u32 2147483648, %v1954_v60 }
 0x38a   : > { %v1877_v4 = vpop.f32.mrf.mxu2  ;;  %vm2036_vm3 = vcmp.eq.f32.partialorder %v2035_v20, 8.507059e+37 }
 0x38b   : > { %v1878_v7 = vadd.f32 %v1877_v4, %v5719_v44  ;;  %v2014_v8 = vmul.f32 %v4580_v59, %v2013_v3  ;;  %v2038_v40 = vor.u32 1.1754944e-38, %v2037_v21  ;;  %v1747_v61 = vpop.f32.mrf.mxu3 }
 0x38d   : > { %v4582_v11 = vpop.eup %4581  ;;  %v3842_v12 = vmul.f32 -1.442695, %v1878_v7  ;;  %v2015_v13 = vadd.f32 %v4580_v59, %v2014_v8 }
 0x38e   : > { %v4584_v14 = vpop.eup %4583  ;;  %v1955_v15 = vadd.f32 1.0, %v4582_v11 }
 0x38f   : > { %4585 = vpow2.f32 %v3842_v12  ;;  %v2019_v17 = vsel %vm2018_vm14, %v4580_v59, %v2015_v13  ;;  %v2027_v18 = vmul.f32 %v4584_v14, %v1954_v60  ;;  %vm2032_vm0 = vweird.f32 %v4584_v14 }
 0x390   : > { %4587 = vrcp.f32 %v1955_v15  ;;  %v2024_v42 = vsel %vm2021_vm15, %v2023_v16, %v2019_v17  ;;  %vm2033_vm2 = vmor %vm2031_vm1, %vm2032_vm0  ;;  %v2052_v56 = vand.u32 2147483648, %v1955_v15  ;;  %v2050_v59 = vand.u32 2147483647, %v1955_v15 }
 0x391   : > { %v5739_v48 = vmul.f32 %v2024_v42, %v1590_v62  ;;  %v2028_v44 = vsub.f32 1.0, %v2027_v18  ;;  %vm2046_vm5 = vweird.f32 %v1955_v15 }
 0x392   : > { %v1879_v49 = vpop.f32.mrf.mxu2  ;;  %v2053_v35 = vor.u32 1.1754944e-38, %v2052_v56  ;;  %vm2051_vm7 = vcmp.eq.f32.partialorder %v2050_v59, 8.507059e+37 }
 0x393   : > { %v1880_v25 = vadd.f32 %v1879_v49, %v5721_v57  ;;  %v2029_v26 = vmul.f32 %v4584_v14, %v2028_v44  ;;  %v1749_v42 = vpop.f32.mrf.mxu3 }
 0x395   : > { %v4586_v28 = vpop.eup %4585  ;;  %v3843_v29 = vmul.f32 -1.442695, %v1880_v25  ;;  %v2030_v32 = vadd.f32 %v4584_v14, %v2029_v26 }
 0x396   : > { %v4588_v33 = vpop.eup %4587  ;;  %v1956_v34 = vadd.f32 1.0, %v4586_v28 }
 0x397   : > { %4589 = vpow2.f32 %v3843_v29  ;;  %v2034_v43 = vsel %vm2033_vm2, %v4584_v14, %v2030_v32  ;;  %v2042_v46 = vmul.f32 %v4588_v33, %v1955_v15  ;;  %vm2047_vm4 = vweird.f32 %v4588_v33  ;;  %v1598_v15 = vpop.f32.mrf.mxu1 }
 0x398   : > { %4591 = vrcp.f32 %v1956_v34  ;;  %v2039_v47 = vsel %vm2036_vm3, %v2038_v40, %v2034_v43  ;;  %vm2048_vm6 = vmor %vm2046_vm5, %vm2047_vm4  ;;  %v2067_v11 = vand.u32 2147483648, %v1956_v34  ;;  %v2065_v13 = vand.u32 2147483647, %v1956_v34 }
 0x399   : > { %v5746_v57 = vmul.f32 %v2039_v47, %v1593_v19  ;;  %v2043_v51 = vsub.f32 1.0, %v2042_v46  ;;  %vm2061_vm9 = vweird.f32 %v1956_v34 }
 0x39a   : > { %v1882_v52 = vpop.f32.mrf.mxu2  ;;  %v2068_v18 = vor.u32 1.1754944e-38, %v2067_v11  ;;  %vm2066_vm11 = vcmp.eq.f32.partialorder %v2065_v13, 8.507059e+37 }
 0x39b   : > { %v2044_v58 = vmul.f32 %v4588_v33, %v2043_v51  ;;  %v1752_v46 = vpop.f32.mrf.mxu3  ;;  %v1883_v59 = vadd.f32 %v1882_v52, %v5723_v9 }
 0x39d   : > { %v4590_v60 = vpop.eup %4589  ;;  %v2045_v62 = vadd.f32 %v4588_v33, %v2044_v58 }
 0x39e   : > { %v4592_v63 = vpop.eup %4591  ;;  %v1957_v0 = vadd.f32 1.0, %v4590_v60 }
 0x39f   : > { %v2049_v3 = vsel %vm2048_vm6, %v4588_v33, %v2045_v62  ;;  %v2057_v4 = vmul.f32 %v4592_v63, %v1956_v34  ;;  %vm2062_vm8 = vweird.f32 %v4592_v63  ;;  %v1600_v33 = vpop.f32.mrf.mxu1 }
 0x3a0   : > { %4593 = vrcp.f32 %v1957_v0  ;;  %v2054_v6 = vsel %vm2051_vm7, %v2053_v35, %v2049_v3  ;;  %vm2063_vm10 = vmor %vm2061_vm9, %vm2062_vm8  ;;  %v2082_v26 = vand.u32 2147483648, %v1957_v0  ;;  %v2080_v29 = vand.u32 2147483647, %v1957_v0 }
 0x3a1   : > { %v5748_v7 = vmul.f32 %v2054_v6, %v1595_v54  ;;  %v2058_v8 = vsub.f32 1.0, %v2057_v4  ;;  %vm2076_vm13 = vweird.f32 %v1957_v0  ;;  %v3844_v35 = vmul.f32 -1.442695, %v1883_v59 }
 0x3a2   : > { %v1884_v10 = vpop.f32.mrf.mxu2  ;;  %v2083_v34 = vor.u32 1.1754944e-38, %v2082_v26  ;;  %vm2081_vm15 = vcmp.eq.f32.partialorder %v2080_v29, 8.507059e+37 }
 0x3a3   : > { %v2059_v12 = vmul.f32 %v4592_v63, %v2058_v8  ;;  %v1754_v58 = vpop.f32.mrf.mxu3  ;;  %v1885_v60 = vadd.f32 %v1884_v10, %v5727_v31  ;;  %4595 = vpow2.f32 %v3844_v35 }
 0x3a5   : > { %v2060_v16 = vadd.f32 %v4592_v63, %v2059_v12  ;;  %v3845_v3 = vmul.f32 -1.442695, %v1885_v60 }
 0x3a6   : > { %v4594_v17 = vpop.eup %4593 }
 0x3a7   : > { %v2064_v19 = vsel %vm2063_vm10, %v4592_v63, %v2060_v16  ;;  %v2072_v44 = vmul.f32 %v4594_v17, %v1957_v0  ;;  %vm2077_vm12 = vweird.f32 %v4594_v17  ;;  %4597 = vpow2.f32 %v3845_v3 }
 0x3a8   : > { %v2069_v49 = vsel %vm2066_vm11, %v2068_v18, %v2064_v19  ;;  %vm2078_vm14 = vmor %vm2076_vm13, %vm2077_vm12 }
 0x3a9   : > { %v5752_v20 = vmul.f32 %v2069_v49, %v1598_v15  ;;  %v2073_v21 = vsub.f32 1.0, %v2072_v44  ;;  %v4596_v31 = vpop.eup %4595 }
 0x3aa   : > { %v1887_v25 = vpop.f32.mrf.mxu2  ;;  %v5762_v18 = vadd.f32 1.0, %v4596_v31 }
 0x3ab   : > { %v2074_v28 = vmul.f32 %v4594_v17, %v2073_v21  ;;  %v1888_v62 = vadd.f32 %v1887_v25, %v5734_v1 }
 0x3ad   : > { %v2075_v32 = vadd.f32 %v4594_v17, %v2074_v28  ;;  %v3846_v6 = vmul.f32 -1.442695, %v1888_v62  ;;  %v4598_v1 = vpop.eup %4597 }
 0x3af   : > { %v2079_v40 = vsel %vm2078_vm14, %v4594_v17, %v2075_v32  ;;  %4599 = vpow2.f32 %v3846_v6 }
 0x3b0   : > { %v2084_v43 = vsel %vm2081_vm15, %v2083_v34, %v2079_v40 }
 0x3b1   : > { %v5754_v47 = vmul.f32 %v2084_v43, %v1600_v33 }
 0x3b2   : > { %v1889_v51 = vpop.f32.mrf.mxu2 }
 0x3b3   : > { %v1890_v0 = vadd.f32 %v1889_v51, %v5741_v24 }
 0x3b5   : > { %v3847_v8 = vmul.f32 -1.442695, %v1890_v0  ;;  %v4600_v10 = vpop.eup %4599 }
 0x3b6   : > { %v5766_v25 = vadd.f32 1.0, %v4600_v10 }
 0x3b7   : > { %4601 = vpow2.f32 %v3847_v8 }
 0x3b8   : > { %vm2121_vm8 = vweird.f32 %v5766_v25 }
 0x3ba   : > { %v1892_v56 = vpop.f32.mrf.mxu2  ;;  %v2413_v63 = vpop.f32.mrf.mxu1 }
 0x3bb   : > { %v1893_v4 = vadd.f32 %v1892_v56, %v1747_v61 }
 0x3bd   : > { %v3848_v15 = vmul.f32 -1.442695, %v1893_v4  ;;  %v4602_v17 = vpop.eup %4601 }
 0x3be   : > { %v5770_v28 = vadd.f32 1.0, %v4602_v17 }
 0x3c0   : > { %v2426_v13 = vpop.f32.mrf.mxu3  ;;  %vm2136_vm5 = vweird.f32 %v5770_v28 }
 0x3c2   : > { %v1894_v11 = vpop.f32.mrf.mxu2  ;;  %v2415_v52 = vpop.f32.mrf.mxu1 }
 0x3c3   : > { %v1895_v12 = vadd.f32 %v1894_v11, %v1749_v42  ;;  %v5764_v42 = vadd.f32 1.0, %v4598_v1 }
 0x3c5   : > { %v3849_v9 = vmul.f32 -1.442695, %v1895_v12  ;;  %vm2106_vm14 = vweird.f32 %v5764_v42 }
 0x3c7   : > { %4603 = vpow2.f32 %v3849_v9 }
 0x3c8   : > { %4605 = vpow2.f32 %v3848_v15  ;;  %v2428_v61 = vpop.f32.mrf.mxu3 }
 0x3c9   : > { %v2110_v61 = vand.u32 2147483647, %v5764_v42 }
 0x3ca   : > { %v1897_v24 = vpop.f32.mrf.mxu2  ;;  %v2564_v49 = vpop.f32.mrf.mxu1 }
 0x3cb   : > { %v1898_v16 = vadd.f32 %v1897_v24, %v1752_v46  ;;  %v5768_v26 = vadd.f32 %v2564_v49, %v2413_v63  ;;  %v4208_v49 = vld [vmem:[#allocation2 + $0xf4] sm:$0xf0] }
 0x3cd   : > { %v4604_v19 = vpop.eup %4603  ;;  %v3850_v44 = vmul.f32 -1.442695, %v1898_v16 }
 0x3ce   : > { %v4606_v21 = vpop.eup %4605  ;;  %v5773_v29 = vadd.f32 1.0, %v4604_v19 }
 0x3cf   : > { %4607 = vpow2.f32 %v3850_v44  ;;  %v5776_v32 = vadd.f32 1.0, %v4606_v21  ;;  %v4042_v44 = vld [vmem:[#allocation2 + $0xe8] sm:$0xf] }
 0x3d0   : > { %4609 = vrcp.f32 %v5762_v18  ;;  %vm2166_vm11 = vweird.f32 %v5773_v29 }
 0x3d1   : > { %4611 = vrcp.f32 %v5764_v42  ;;  %vm2151_vm0 = vweird.f32 %v5776_v32 }
 0x3d2   : > { %4613 = vrcp.f32 %v5766_v25  ;;  %v1899_v33 = vpop.f32.mrf.mxu2  ;;  %v2566_v46 = vpop.f32.mrf.mxu1 }
 0x3d3   : > { %4615 = vrcp.f32 %v5770_v28  ;;  %v1900_v34 = vadd.f32 %v1899_v33, %v1754_v58  ;;  %v2127_v46 = vand.u32 2147483648, %v5766_v25 }
 0x3d4   : > { %4617 = vrcp.f32 %v5773_v29 }
 0x3d5   : > { %v4608_v40 = vpop.eup %4607  ;;  %4619 = vrcp.f32 %v5776_v32  ;;  %v3851_v43 = vmul.f32 -1.442695, %v1900_v34  ;;  %v2125_v34 = vand.u32 2147483647, %v5766_v25 }
 0x3d6   : > { %v5782_v51 = vpop.eup %4609  ;;  %v5784_v56 = vadd.f32 1.0, %v4608_v40 }
 0x3d7   : > { %v5786_v59 = vpop.eup %4611  ;;  %4621 = vpow2.f32 %v3851_v43  ;;  %v2087_v3 = vmul.f32 %v5782_v51, %v5762_v18  ;;  %v4043_v43 = vor.u32 %v4208_v49, %v4042_v44 }
 0x3d8   : > { %v5788_v60 = vpop.eup %4613  ;;  %4623 = vrcp.f32 %v5784_v56  ;;  %v2102_v4 = vmul.f32 %v5786_v59, %v5764_v42  ;;  %vm2181_vm6 = vweird.f32 %v5784_v56  ;;  %v2185_v44 = vand.u32 2147483647, %v5784_v56 }
 0x3d9   : > { %v5791_v62 = vpop.eup %4615  ;;  %v2117_v11 = vmul.f32 %v5788_v60, %v5766_v25  ;;  %v2088_v31 = vsub.f32 1.0, %v2087_v3  ;;  %v2142_v3 = vand.u32 2147483648, %v5770_v28  ;;  %2581 = vmatpush.bf16.msrb.mxu3 %v4043_v43  ;;  %vm2122_vm4 = vweird.f32 %v5788_v60  ;;  %v4196_v43 = vld [vmem:[#allocation2 + $0x94] sm:$0xf0] }
 0x3da   : > { %v5793_v58 = vpop.eup %4617  ;;  %v2577_v63 = vpop.f32.mrf.mxu2  ;;  %v2132_v9 = vmul.f32 %v5791_v62, %v5770_v28  ;;  %v2103_v1 = vsub.f32 1.0, %v2102_v4  ;;  %vm2137_vm1 = vweird.f32 %v5791_v62  ;;  %vm2107_vm9 = vweird.f32 %v5786_v59 }
 0x3db   : > { %v5795_v0 = vpop.eup %4619  ;;  %v5797_v35 = vadd.f32 %v2577_v63, %v2426_v13  ;;  %v2162_v8 = vmul.f32 %v5793_v58, %v5773_v29  ;;  %v2118_v16 = vsub.f32 1.0, %v2117_v11  ;;  %v5822_v40 = vmul.f32 %v5782_v51, %v2088_v31  ;;  %v4030_v31 = vld [vmem:[#allocation2 + $0xc8] sm:$0xf] }
 0x3dc   : > { %v2147_v13 = vmul.f32 %v5795_v0, %v5776_v32  ;;  %v2133_v19 = vsub.f32 1.0, %v2132_v9  ;;  %v2140_v63 = vand.u32 2147483647, %v5770_v28  ;;  %v5828_v4 = vmul.f32 %v5786_v59, %v2103_v1  ;;  %v4204_v1 = vld [vmem:[#allocation2 + $0xd4] sm:$0xf0] }
 0x3dd   : > { %v4622_v6 = vpop.eup %4621  ;;  %v2163_v10 = vsub.f32 1.0, %v2162_v8  ;;  %v2119_v8 = vmul.f32 %v5788_v60, %v2118_v16  ;;  %vm2152_vm2 = vweird.f32 %v5795_v0  ;;  %v2155_v9 = vand.u32 2147483647, %v5776_v32 }
 0x3de   : > { %v5807_v12 = vpop.eup %4623  ;;  %v5809_v15 = vadd.f32 1.0, %v4622_v6  ;;  %v2148_v17 = vsub.f32 1.0, %v2147_v13  ;;  %v4031_v16 = vor.u32 %v4204_v1, %v4030_v31  ;;  %vm2167_vm7 = vweird.f32 %v5793_v58  ;;  %vm5884_vm13 = vmor %vm2151_vm0, %vm2152_vm2 }
 0x3df   : > { %v2177_v52 = vmul.f32 %v5807_v12, %v5784_v56  ;;  %v2164_v6 = vmul.f32 %v5793_v58, %v2163_v10  ;;  %vm2182_vm3 = vweird.f32 %v5807_v12  ;;  %v2172_v1 = vand.u32 2147483648, %v5773_v29  ;;  %vm5870_vm15 = vmor %vm2166_vm11, %vm2167_vm7 }
 0x3e0   : > { %4625 = vrcp.f32 %v5809_v15  ;;  %v2149_v13 = vmul.f32 %v5795_v0, %v2148_v17  ;;  %v2187_v17 = vand.u32 2147483648, %v5784_v56  ;;  %2582 = vmatpush.bf16.msrb.mxu3 %v4031_v16  ;;  %vm5854_vm10 = vmor %vm2181_vm6, %vm2182_vm3  ;;  %v2202_v31 = vand.u32 2147483648, %v5809_v15 }
 0x3e1   : > { %v2178_v24 = vsub.f32 1.0, %v2177_v52  ;;  %v2134_v52 = vmul.f32 %v5791_v62, %v2133_v19  ;;  %v2170_v19 = vand.u32 2147483647, %v5773_v29  ;;  %vm2186_vm6 = vcmp.eq.f32.partialorder %v2185_v44, 8.507059e+37  ;;  %vm5903_vm2 = vmor %vm2136_vm5, %vm2137_vm1 }
 0x3e2   : > { %v2579_v21 = vpop.f32.mrf.mxu2  ;;  %v2150_v56 = vadd.f32 %v5795_v0, %v2149_v13  ;;  %v2188_v14 = vor.u32 1.1754944e-38, %v2187_v17  ;;  %v2157_v13 = vand.u32 2147483648, %v5776_v32  ;;  %vm2091_vm7 = vweird.f32 %v5762_v18  ;;  %vm5920_vm1 = vmor %vm2121_vm8, %vm2122_vm4 }
 0x3e3   : > { %v2179_v33 = vmul.f32 %v5807_v12, %v2178_v24  ;;  %v2200_v21 = vand.u32 2147483647, %v5809_v15  ;;  %vm5874_vm3 = vcmp.eq.f32.partialorder %v2170_v19, 8.507059e+37  ;;  %v2120_v44 = vadd.f32 %v5788_v60, %v2119_v8  ;;  %vm5942_vm5 = vmor %vm2106_vm14, %vm2107_vm9 }
 0x3e4   : > { %v2105_v8 = vadd.f32 %v5786_v59, %v5828_v4  ;;  %v2112_v32 = vand.u32 2147483648, %v5764_v42  ;;  %v3994_v4 = vld [vmem:[#allocation2 + $0x68] sm:$0xf]  ;;  %vm2141_vm4 = vcmp.eq.f32.partialorder %v2140_v63, 8.507059e+37  ;;  %vm2126_vm8 = vcmp.eq.f32.partialorder %v2125_v34, 8.507059e+37 }
 0x3e5   : > { %v2180_v24 = vadd.f32 %v5807_v12, %v2179_v33  ;;  %v2165_v33 = vadd.f32 %v5793_v58, %v2164_v6  ;;  %v4018_v6 = vld [vmem:[#allocation2 + $0xa8] sm:$0xf]  ;;  %vm2201_vm0 = vcmp.eq.f32.partialorder %v2200_v21, 8.507059e+37  ;;  %vm2111_vm14 = vcmp.eq.f32.partialorder %v2110_v61, 8.507059e+37 }
 0x3e6   : > { %v4626_v11 = vpop.eup %4625  ;;  %v3958_v61 = vld [vmem:[#allocation2 + $0x8] sm:$0xf] }
 0x3e7   : > { %v2192_v10 = vmul.f32 %v4626_v11, %v5809_v15  ;;  %v2184_v16 = vsel %vm5854_vm10, %v5807_v12, %v2180_v24  ;;  %vm2197_vm12 = vweird.f32 %v4626_v11  ;;  %v2135_v12 = vadd.f32 %v5791_v62, %v2134_v52 }
 0x3e8   : > { %vm2196_vm10 = vweird.f32 %v5809_v15  ;;  %v2169_v19 = vsel %vm5870_vm15, %v5793_v58, %v2165_v33  ;;  %v2189_v52 = vsel %vm2186_vm6, %v2188_v14, %v2184_v16  ;;  %v2173_v15 = vor.u32 1.1754944e-38, %v2172_v1  ;;  %v4192_v1 = vld [vmem:[#allocation2 + $0x74] sm:$0xf0]  ;;  %v3934_v14 = vld [vmem:[%s5431_s28 + $0x98] sm:$0xf] }
 0x3e9   : > { %v2193_v49 = vsub.f32 1.0, %v2192_v10  ;;  %v4200_v10 = vld [vmem:[#allocation2 + $0xb4] sm:$0xf0]  ;;  %vm2198_vm11 = vmor %vm2196_vm10, %vm2197_vm12  ;;  %v2158_v33 = vor.u32 1.1754944e-38, %v2157_v13  ;;  %vm2156_vm12 = vcmp.eq.f32.partialorder %v2155_v9, 8.507059e+37  ;;  %v2139_v54 = vsel %vm5903_vm2, %v5791_v62, %v2135_v12 }
 0x3ea   : > { %v4019_v27 = vor.u32 %v4200_v10, %v4018_v6  ;;  %v2154_v10 = vsel %vm5884_vm13, %v5795_v0, %v2150_v56  ;;  %v2124_v56 = vsel %vm5920_vm1, %v5788_v60, %v2120_v44  ;;  %v3995_v13 = vor.u32 %v4192_v1, %v3994_v4  ;;  %v3970_v44 = vld [vmem:[#allocation2 + $0x28] sm:$0xf] }
 0x3eb   : > { %v2194_v53 = vmul.f32 %v4626_v11, %v2193_v49  ;;  %v4006_v49 = vld [vmem:[#allocation2 + $0x88] sm:$0xf]  ;;  %v2159_v21 = vsel %vm2156_vm12, %v2158_v33, %v2154_v10  ;;  %v2095_v60 = vand.u32 2147483647, %v5762_v18  ;;  %vm6207_vm13 = vweird.f32 %v5782_v51 }
 0x3ec   : > { %2583 = vmatpush.bf16.msrb.mxu3 %v4019_v27  ;;  %v4007_v29 = vor.u32 %v4196_v43, %v4006_v49  ;;  %v2174_v27 = vsel %vm5874_vm3, %v2173_v15, %v2169_v19  ;;  %v2218_v28 = vmul.f32 %v2159_v21, %v5667_v55  ;;  %vm5957_vm9 = vmor %vm2091_vm7, %vm6207_vm13  ;;  %v3982_v55 = vld [vmem:[#allocation2 + $0x48] sm:$0xf]  ;;  %v6212_v33 = vpack.c.bf16 %v5739_v48, %v5736_v2  ;;  %v3910_v48 = vld [vmem:[%s5431_s28 + $0x68] sm:$0xf] }
 0x3ed   : > { %v2195_v24 = vadd.f32 %v4626_v11, %v2194_v53  ;;  %v2203_v53 = vor.u32 1.1754944e-38, %v2202_v31  ;;  %v2219_v9 = vmul.f32 %v2174_v27, %v5678_v5  ;;  %vm2096_vm15 = vcmp.eq.f32.partialorder %v2095_v60, 8.507059e+37  ;;  %v3886_v21 = vld [vmem:[%s5431_s28 + $0x38] sm:$0xf]  ;;  %v4257_v31 = vld [vmem:[%s5431_s28 + $0x40] sm:$0xf0] }
 0x3ee   : > { %vm2654_vm1 = vcmask 64512  }
 0x3ef   : > { %v2199_v6 = vsel %vm2198_vm11, %v4626_v11, %v2195_v24  ;;  %v2220_v11 = vmul.f32 %v2189_v52, %v5691_v23  ;;  %v2143_v23 = vor.u32 1.1754944e-38, %v2142_v3  ;;  %v2128_v3 = vor.u32 1.1754944e-38, %v2127_v46 }
 0x3f0   : > { %v2204_v58 = vsel %vm2201_vm0, %v2203_v53, %v2199_v6  ;;  %2584 = vmatpush.bf16.msrb.mxu3 %v4007_v29  ;;  %v2109_v46 = vsel %vm5942_vm5, %v5786_v59, %v2105_v8  ;;  %v2113_v24 = vor.u32 1.1754944e-38, %v2112_v32  ;;  %v2228_v25 = vpack.c.bf16 %v2219_v9, %v2218_v28  ;;  %v4188_v59 = vld [vmem:[#allocation2 + $0x54] sm:$0xf0]  ;;  %v4639_v8 = vld [vmem:[%s640_s30] sm:$0xf] }
 0x3f1   : > { %v2221_v0 = vmul.f32 %v2204_v58, %v5697_v50  ;;  %v2090_v50 = vadd.f32 %v5782_v51, %v5822_v40  ;;  %v2144_v16 = vsel %vm2141_vm4, %v2143_v23, %v2139_v54  ;;  %v2097_v40 = vand.u32 2147483648, %v5762_v18  ;;  %v3946_v29 = vld [vmem:[%s5431_s28 + $0xb0] sm:$0xf]  ;;  %v4272_v58 = vld [vmem:[%s5431_s28 + $0xb8] sm:$0xf0] }
 0x3f2   : > { %v2129_v63 = vsel %vm2126_vm8, %v2128_v3, %v2124_v56  ;;  %v2217_v34 = vmul.f32 %v2144_v16, %v5660_v45  ;;  %v2114_v18 = vsel %vm2111_vm14, %v2113_v24, %v2109_v46  ;;  %v3983_v52 = vor.u32 %v4188_v59, %v3982_v55  ;;  %v4254_v32 = vld [vmem:[%s5431_s28 + $0x28] sm:$0xf0]  ;;  %v4251_v9 = vld [vmem:[%s5431_s28 + $0x10] sm:$0xf0] }
 0x3f3   : > { %v2229_v62 = vpack.c.bf16 %v2221_v0, %v2220_v11  ;;  %v2094_v17 = vsel %vm5957_vm9, %v5782_v51, %v2090_v50  ;;  %v2098_v19 = vor.u32 1.1754944e-38, %v2097_v40  ;;  %v2216_v53 = vmul.f32 %v2129_v63, %v5656_v39  ;;  %v4184_v51 = vld [vmem:[#allocation2 + $0x34] sm:$0xf0]  ;;  %v4263_v11 = vld [vmem:[%s5431_s28 + $0x70] sm:$0xf0] }
 0x3f4   : > { %2585 = vmatpush.bf16.msrb.mxu3 %v3995_v13  ;;  %v2215_v45 = vmul.f32 %v2114_v18, %v5653_v37  ;;  %v3971_v43 = vor.u32 %v4184_v51, %v3970_v44  ;;  %v4180_v39 = vld [vmem:[#allocation2 + $0x14] sm:$0xf0]  ;;  %v6210_v37 = vpack.c.bf16 %v5754_v47, %v5752_v20  ;;  %v3947_v27 = vor.u32 %v4272_v58, %v3946_v29  ;;  %v4269_v20 = vld [vmem:[%s5431_s28 + $0xa0] sm:$0xf0]  ;;  %v4266_v47 = vld [vmem:[%s5431_s28 + $0x88] sm:$0xf0] }
 0x3f5   : > { %2230 = vmatpush.bf16.msrb.mxu0 %v2229_v62  ;;  %v2099_v15 = vsel %vm2096_vm15, %v2098_v19, %v2094_v17  ;;  %v2227_v49 = vpack.c.bf16 %v2217_v34, %v2216_v53  ;;  %v3959_v10 = vor.u32 %v4180_v39, %v3958_v61  ;;  %v4260_v0 = vld [vmem:[%s5431_s28 + $0x58] sm:$0xf0]  ;;  %v3887_v23 = vor.u32 %v4257_v31, %v3886_v21  ;;  %v3874_v50 = vld [vmem:[%s5431_s28 + $0x20] sm:$0xf]  ;;  %v3862_v62 = vld [vmem:[%s5431_s28 + $0x8] sm:$0xf] }
 0x3f6   : > { %v2214_v42 = vmul.f32 %v2099_v15, %v5651_v36  ;;  %v6211_v36 = vpack.c.bf16 %v5748_v7, %v5746_v57  ;;  %v3935_v57 = vor.u32 %v4269_v20, %v3934_v14  ;;  %v3922_v7 = vld [vmem:[%s5431_s28 + $0x80] sm:$0xf]  ;;  %v3875_v4 = vor.u32 %v4254_v32, %v3874_v50 }
 0x3f7   : > { %v3923_v2 = vor.u32 %v4266_v47, %v3922_v7  ;;  %v3863_v56 = vor.u32 %v4251_v9, %v3862_v62  ;;  %v4044_v3 = vmul.f32 -1.442695, %v5768_v26  ;;  %v4045_v13 = vmul.f32 -1.442695, %v5797_v35 }
 0x3f8   : > { %2586 = vmatpush.bf16.msrb.mxu3 %v3983_v52  ;;  %v2226_v6 = vpack.c.bf16 %v2215_v45, %v2214_v42  ;;  %vm2679_vm11 = vcmask 1043456  }
 0x3f9   : > { %2231 = vmatpush.bf16.msrb.mxu0 %v2228_v25  ;;  %4627 = vpow2.f32 %v4044_v3 }
 0x3fa   : > { %4629 = vpow2.f32 %v4045_v13 }
 0x3fc   : > { %2587 = vmatpush.bf16.msrb.mxu3 %v3971_v43 }
 0x3fd   : > { %2232 = vmatpush.bf16.msrb.mxu0 %v2227_v49 }
 0x3ff   : > { %v4628_v5 = vpop.eup %4627 }
 0x400   : > { %2588 = vmatpush.bf16.msrb.mxu3 %v3959_v10  ;;  %v2597_v28 = vadd.f32 1.0, %v4628_v5  ;;  %v4630_v46 = vpop.eup %4629 }
 0x401   : > { %2233 = vmatpush.bf16.msrb.mxu0 %v2226_v6  ;;  %v2616_v12 = vadd.f32 1.0, %v4630_v46 }
 0x402   : > { %4631 = vrcp.f32 %v2597_v28  ;;  %v2609_v19 = vand.u32 2147483648, %v2597_v28  ;;  %vm2603_vm6 = vweird.f32 %v2597_v28  ;;  %v2607_v35 = vand.u32 2147483647, %v2597_v28 }
 0x403   : > { %2589 = vmatmul.bf16.vlgmr.msrb.gmra.mxu3 %v5706_v22  ;;  %v6213_v22 = vpack.c.bf16 %v5729_v38, %v5725_v41  ;;  %v3911_v41 = vor.u32 %v4263_v11, %v3910_v48  ;;  %v3898_v38 = vld [vmem:[%s5431_s28 + $0x50] sm:$0xf]  ;;  %4633 = vrcp.f32 %v2616_v12  ;;  %v2628_v6 = vand.u32 2147483648, %v2616_v12 }
 0x404   : > { %v3899_v54 = vor.u32 %v4260_v0, %v3898_v38  ;;  %v2610_v53 = vor.u32 1.1754944e-38, %v2609_v19  ;;  %vm2608_vm7 = vcmp.eq.f32.partialorder %v2607_v35, 8.507059e+37  ;;  %vm2622_vm2 = vweird.f32 %v2616_v12  ;;  %v1365_v38 = vld [vmem:[#allocation4] sm:$0xff]  }
 0x405   : > { %2234 = vmatpush.bf16.msrb.mxu0 %v6210_v37  ;;  %v2626_v39 = vand.u32 2147483647, %v2616_v12  ;;  %v2629_v29 = vor.u32 1.1754944e-38, %v2628_v6  ;;  %v2897_v0 = vunpack.c.l.bf16 %v1365_v38  ;;  %v2898_v50 = vunpack.c.h.bf16 %v1365_v38 }
 0x407   : > { %vm2627_vm4 = vcmp.eq.f32.partialorder %v2626_v39, 8.507059e+37  ;;  %v1369_v39 = vld [vmem:[#allocation4 + $0x10] sm:$0xff]  }
 0x408   : > { %v4632_v63 = vpop.eup %4631 }
 0x409   : > { %2235 = vmatpush.bf16.msrb.mxu0 %v6211_v36  ;;  %v2599_v24 = vmul.f32 %v4632_v63, %v2597_v28  ;;  %vm2604_vm3 = vweird.f32 %v4632_v63  ;;  %v2646_v36 = vpop.trf.xlu0 }
 0x40a   : > { %vm2605_vm10 = vmor %vm2603_vm6, %vm2604_vm3 }
 0x40b   : > { %v2600_v55 = vsub.f32 1.0, %v2599_v24 }
 0x40d   : > { %2236 = vmatpush.bf16.msrb.mxu0 %v6212_v33  ;;  %v2601_v25 = vmul.f32 %v4632_v63, %v2600_v55 }
 0x40f   : > { %v2602_v59 = vadd.f32 %v4632_v63, %v2601_v25 }
 0x411   : > { %2237 = vmatpush.bf16.msrb.mxu0 %v6213_v22  ;;  %v2606_v52 = vsel %vm2605_vm10, %v4632_v63, %v2602_v59  ;;  %v2647_v22 = vpop.trf.xlu0  ;;  %v1367_v63 = vld [vmem:[#allocation4 + $0x8] sm:$0xff]  }
 0x412   : > { %v2611_v49 = vsel %vm2608_vm7, %v2610_v53, %v2606_v52  ;;  %v2899_v55 = vunpack.c.l.bf16 %v1367_v63  ;;  %v2900_v59 = vunpack.c.h.bf16 %v1367_v63  ;;  %v1351_v53 = vld [vmem:[#allocation3 + $0x8] sm:$0xff]  }
 0x414   : > { %2238 = vmatmul.bf16.vlgmr.msrb.gmra.mxu0 %v4639_v8 }
 0x415   : > { %2430 = vmatpush.bf16.msra.mxu0 %v3947_v27 }
 0x419   : > { %2431 = vmatpush.bf16.msra.mxu0 %v3935_v57  ;;  %v2648_v57 = vpop.trf.xlu0 }
 0x41d   : > { %2432 = vmatpush.bf16.msra.mxu0 %v3923_v2 }
 0x421   : > { %2433 = vmatpush.bf16.msra.mxu0 %v3911_v41  ;;  %v2649_v7 = vpop.trf.xlu0 }
 0x425   : > { %2434 = vmatpush.bf16.msra.mxu0 %v3899_v54 }
 0x429   : > { %2435 = vmatpush.bf16.msra.mxu0 %v3887_v23  ;;  %v2650_v47 = vpop.trf.xlu0 }
 0x42d   : > { %2436 = vmatpush.bf16.msra.mxu0 %v3875_v4 }
 0x431   : > { %2437 = vmatpush.bf16.msra.mxu0 %v3863_v56  ;;  %v2651_v8 = vpop.trf.xlu0  ;;  %v1349_v56 = vld [vmem:[#allocation3] sm:$0xff]  }
 0x432   : > { %v2802_v28 = vunpack.c.h.bf16 %v1349_v56 }
 0x434   : > { %2438 = vmatmul.bf16.vlgmr.msra.gmra.mxu0 %v5710_v30  ;;  %v4634_v30 = vpop.eup %4633 }
 0x435   : > { %v2618_v26 = vmul.f32 %v4634_v30, %v2616_v12  ;;  %vm2623_vm0 = vweird.f32 %v4634_v30 }
 0x436   : > { %vm2624_vm12 = vmor %vm2622_vm2, %vm2623_vm0 }
 0x437   : > { %v2619_v18 = vsub.f32 1.0, %v2618_v26 }
 0x439   : > { %v2620_v45 = vmul.f32 %v4634_v30, %v2619_v18  ;;  %v2652_v2 = vpop.trf.xlu0 }
 0x43b   : > { %v2621_v42 = vadd.f32 %v4634_v30, %v2620_v45  ;;  %v2803_v45 = vunpack.c.l.bf16 %v1351_v53 }
 0x43d   : > { %v2625_v37 = vsel %vm2624_vm12, %v4634_v30, %v2621_v42  ;;  %v2804_v42 = vunpack.c.h.bf16 %v1351_v53 }
 0x43e   : > { %v2630_v33 = vsel %vm2627_vm4, %v2629_v29, %v2625_v37 }
 0x441   : > { %v2653_v48 = vpop.trf.xlu0 }
 0x486   : > { %v2590_v1 = vpop.f32.mrf.mxu3 }
 0x48e   : > { %v2592_v16 = vpop.f32.mrf.mxu3 }
 0x491   : > { %v2239_v40 = vpop.f32.mrf.mxu0 }
 0x499   : > { %v2241_v60 = vpop.f32.mrf.mxu0 }
 0x4b1   : > { %v2439_v34 = vpop.f32.mrf.mxu0 }
 0x4b2   : > { %v2591_v17 = vadd.f32 %v2590_v1, %v2439_v34 }
 0x4b4   : > { %4635 = vtanh.f32 %v2591_v17 }
 0x4b9   : > { %v2441_v15 = vpop.f32.mrf.mxu0 }
 0x4ba   : > { %v4636_v44 = vpop.eup %4635 }
 0x4bb   : > { %v2633_v51 = vmul.f32 %v4636_v44, %v2611_v49 }
 0x4bd   : > { %v2634_v43 = vadd.f32 %v2633_v51, %v2239_v40  ;;  %v2801_v40 = vunpack.c.l.bf16 %v1349_v56 }
 0x4bf   : > { %4637 = vtanh.f32 %v2634_v43  ;;  %v2732_v61 = vpack.c.bf16 %v2634_v43, %v2634_v43 }
 0x4c1   : > { %v2734_v10 = vsel %vm2679_vm11, %v2732_v61, 0 }
 0x4c2   : > { %2743 = vmatpush.bf16.msrb.mxu1 %v2734_v10 }
 0x4c5   : > { %v4638_v58 = vpop.eup %4637  ;;  %4054 = vmatmul.msk.bf16.vlgmr.msrb.gmra.mxu1 %vm2654_vm1, %v2646_v36 }
 0x4c6   : > { %v2636_v27 = vmul.f32 %v4638_v58, %v2630_v33 }
 0x4c8   : > { %v2637_v14 = vpack.c.bf16 %v2636_v27, %v2636_v27 }
 0x4ca   : > { %v2681_v20 = vsel %vm2679_vm11, %v2637_v14, 0 }
 0x4cb   : > { %2690 = vmatpush.bf16.msrb.mxu0 %v2681_v20  ;;  %v2902_v20 = vunpack.c.h.bf16 %v1369_v39 }
 0x4ce   : > { %4046 = vmatmul.msk.bf16.vlgmr.msrb.gmra.mxu0 %vm2654_vm1, %v2646_v36  ;;  %v2901_v36 = vunpack.c.l.bf16 %v1369_v39 }
 0x4d5   : > { %4055 = vmatmul.msk.bf16.gmra.mxu1 %vm2654_vm1, %v2647_v22 }
 0x4de   : > { %4047 = vmatmul.msk.bf16.gmra.mxu0 %vm2654_vm1, %v2647_v22 }
 0x4e5   : > { %4056 = vmatmul.msk.bf16.gmra.mxu1 %vm2654_vm1, %v2648_v57 }
 0x4ee   : > { %4048 = vmatmul.msk.bf16.gmra.mxu0 %vm2654_vm1, %v2648_v57 }
 0x4f5   : > { %4057 = vmatmul.msk.bf16.gmra.mxu1 %vm2654_vm1, %v2649_v7 }
 0x4fe   : > { %4049 = vmatmul.msk.bf16.gmra.mxu0 %vm2654_vm1, %v2649_v7 }
 0x505   : > { %4058 = vmatmul.msk.bf16.gmra.mxu1 %vm2654_vm1, %v2650_v47 }
 0x50e   : > { %4050 = vmatmul.msk.bf16.gmra.mxu0 %vm2654_vm1, %v2650_v47 }
 0x515   : > { %4059 = vmatmul.msk.bf16.gmra.mxu1 %vm2654_vm1, %v2651_v8 }
 0x51e   : > { %4051 = vmatmul.msk.bf16.gmra.mxu0 %vm2654_vm1, %v2651_v8  ;;  %v1353_v8 = vld [vmem:[#allocation3 + $0x10] sm:$0xff]  }
 0x525   : > { %4060 = vmatmul.msk.bf16.gmra.mxu1 %vm2654_vm1, %v2652_v2 }
 0x52e   : > { %4052 = vmatmul.msk.bf16.gmra.mxu0 %vm2654_vm1, %v2652_v2 }
 0x535   : > { %4061 = vmatmul.msk.bf16.gmra.mxu1 %vm2654_vm1, %v2653_v48 }
 0x53e   : > { %4053 = vmatmul.msk.bf16.gmra.mxu0 %vm2654_vm1, %v2653_v48 }
 0x542   : > { %v2745_v11 = vpop.f32.mrf.mxu1 }
 0x543   : > { %v2881_v41 = vpack.c.bf16 %v2745_v11, %v2745_v11 }
 0x545   : > { %v2913_v54 = vunpack.c.l.bf16 %v2881_v41  ;;  %v2805_v41 = vunpack.c.l.bf16 %v1353_v8 }
 0x547   : > { %v2929_v32 = vadd.f32 %v2913_v54, %v2897_v0  ;;  %v2806_v54 = vunpack.c.h.bf16 %v1353_v8 }
 0x54a   : > { %v2747_v21 = vpop.f32.mrf.mxu1 }
 0x54b   : > { %v2692_v31 = vpop.f32.mrf.mxu0  ;;  %v2882_v23 = vpack.c.bf16 %v2747_v21, %v2747_v21 }
 0x54c   : > { %v2785_v9 = vpack.c.bf16 %v2692_v31, %v2692_v31 }
 0x54d   : > { %v2914_v4 = vunpack.c.l.bf16 %v2882_v23  ;;  %v1371_v23 = vld [vmem:[#allocation4 + $0x18] sm:$0xff]  }
 0x54e   : > { %v2817_v5 = vunpack.c.l.bf16 %v2785_v9 }
 0x54f   : > { %v2930_v62 = vadd.f32 %v2914_v4, %v2898_v50  ;;  %v2903_v4 = vunpack.c.l.bf16 %v1371_v23 }
 0x550   : > { %v2833_v12 = vadd.f32 %v2817_v5, %v2801_v40 }
 0x551   : > { %v4332_v1 = vpack.c.bf16 %v2930_v62, %v2929_v32 }
 0x552   : > { %v2750_v3 = vpop.f32.mrf.mxu1 }
 0x553   : > { %v2694_v16 = vpop.f32.mrf.mxu0  ;;  %4333 = vst [vmem:[#allocation4] sm:$0xff] %v4332_v1   ;;  %v2883_v60 = vpack.c.bf16 %v2750_v3, %v2750_v3 }
 0x554   : > { %v2786_v13 = vpack.c.bf16 %v2694_v16, %v2694_v16  ;;  %v2904_v16 = vunpack.c.h.bf16 %v1371_v23 }
 0x555   : > { %v2915_v30 = vunpack.c.l.bf16 %v2883_v60  ;;  %v1355_v60 = vld [vmem:[#allocation3 + $0x18] sm:$0xff]  }
 0x556   : > { %v2818_v46 = vunpack.c.l.bf16 %v2786_v13 }
 0x557   : > { %v2931_v19 = vadd.f32 %v2915_v30, %v2899_v55 }
 0x558   : > { %v2834_v24 = vadd.f32 %v2818_v46, %v2802_v28 }
 0x55a   : > { %v4292_v25 = vpack.c.bf16 %v2834_v24, %v2833_v12  ;;  %v2752_v34 = vpop.f32.mrf.mxu1  ;;  %v2807_v24 = vunpack.c.l.bf16 %v1355_v60 }
 0x55b   : > { %v2697_v26 = vpop.f32.mrf.mxu0  ;;  %v2884_v17 = vpack.c.bf16 %v2752_v34, %v2752_v34 }
 0x55c   : > { %4293 = vst [vmem:[#allocation3] sm:$0xff] %v4292_v25   ;;  %v2787_v52 = vpack.c.bf16 %v2697_v26, %v2697_v26  ;;  %v2808_v25 = vunpack.c.h.bf16 %v1355_v60 }
 0x55d   : > { %v2916_v35 = vunpack.c.l.bf16 %v2884_v17  ;;  %v1373_v17 = vld [vmem:[#allocation4 + $0x20] sm:$0xff]  }
 0x55e   : > { %v2819_v51 = vunpack.c.l.bf16 %v2787_v52 }
 0x55f   : > { %v2932_v18 = vadd.f32 %v2916_v35, %v2900_v59  ;;  %v2905_v35 = vunpack.c.l.bf16 %v1373_v17 }
 0x560   : > { %v2835_v10 = vadd.f32 %v2819_v51, %v2803_v45 }
 0x561   : > { %v4337_v15 = vpack.c.bf16 %v2932_v18, %v2931_v19 }
 0x562   : > { %v2755_v44 = vpop.f32.mrf.mxu1 }
 0x563   : > { %v2699_v49 = vpop.f32.mrf.mxu0  ;;  %4376 = vst [vmem:[#allocation4 + $0x8] sm:$0xff] %v4337_v15   ;;  %v2885_v61 = vpack.c.bf16 %v2755_v44, %v2755_v44 }
 0x564   : > { %v2788_v43 = vpack.c.bf16 %v2699_v49, %v2699_v49  ;;  %v2906_v49 = vunpack.c.h.bf16 %v1373_v17 }
 0x565   : > { %v2917_v29 = vunpack.c.l.bf16 %v2885_v61  ;;  %v1357_v61 = vld [vmem:[#allocation3 + $0x20] sm:$0xff]  }
 0x566   : > { %v2820_v6 = vunpack.c.l.bf16 %v2788_v43 }
 0x567   : > { %v2933_v22 = vadd.f32 %v2917_v29, %v2901_v36 }
 0x568   : > { %v2836_v37 = vadd.f32 %v2820_v6, %v2804_v42 }
 0x56a   : > { %v4297_v58 = vpack.c.bf16 %v2836_v37, %v2835_v10  ;;  %v2757_v33 = vpop.f32.mrf.mxu1  ;;  %v2809_v37 = vunpack.c.l.bf16 %v1357_v61 }
 0x56b   : > { %v2702_v27 = vpop.f32.mrf.mxu0  ;;  %v2886_v14 = vpack.c.bf16 %v2757_v33, %v2757_v33 }
 0x56c   : > { %4369 = vst [vmem:[#allocation3 + $0x8] sm:$0xff] %v4297_v58   ;;  %v2789_v47 = vpack.c.bf16 %v2702_v27, %v2702_v27  ;;  %v2810_v58 = vunpack.c.h.bf16 %v1357_v61 }
 0x56d   : > { %v2918_v57 = vunpack.c.l.bf16 %v2886_v14  ;;  %v1375_v14 = vld [vmem:[#allocation4 + $0x28] sm:$0xff]  }
 0x56e   : > { %v2821_v38 = vunpack.c.l.bf16 %v2789_v47 }
 0x56f   : > { %v2934_v7 = vadd.f32 %v2918_v57, %v2902_v20  ;;  %v2907_v57 = vunpack.c.l.bf16 %v1375_v14 }
 0x570   : > { %v2837_v50 = vadd.f32 %v2821_v38, %v2805_v41 }
 0x571   : > { %v4342_v2 = vpack.c.bf16 %v2934_v7, %v2933_v22 }
 0x572   : > { %v2760_v48 = vpop.f32.mrf.mxu1 }
 0x573   : > { %v2704_v11 = vpop.f32.mrf.mxu0  ;;  %4377 = vst [vmem:[#allocation4 + $0x10] sm:$0xff] %v4342_v2   ;;  %v2887_v21 = vpack.c.bf16 %v2760_v48, %v2760_v48 }
 0x574   : > { %v2790_v0 = vpack.c.bf16 %v2704_v11, %v2704_v11  ;;  %v2908_v11 = vunpack.c.h.bf16 %v1375_v14 }
 0x575   : > { %v2919_v62 = vunpack.c.l.bf16 %v2887_v21  ;;  %v1359_v21 = vld [vmem:[#allocation3 + $0x28] sm:$0xff]  }
 0x576   : > { %v2822_v31 = vunpack.c.l.bf16 %v2790_v0 }
 0x577   : > { %v2935_v40 = vadd.f32 %v2919_v62, %v2903_v4 }
 0x578   : > { %v2838_v32 = vadd.f32 %v2822_v31, %v2806_v54 }
 0x57a   : > { %v4302_v9 = vpack.c.bf16 %v2838_v32, %v2837_v50  ;;  %v2762_v56 = vpop.f32.mrf.mxu1  ;;  %v2811_v32 = vunpack.c.l.bf16 %v1359_v21 }
 0x57b   : > { %v2707_v1 = vpop.f32.mrf.mxu0  ;;  %v2888_v3 = vpack.c.bf16 %v2762_v56, %v2762_v56 }
 0x57c   : > { %4370 = vst [vmem:[#allocation3 + $0x10] sm:$0xff] %v4302_v9   ;;  %v2791_v28 = vpack.c.bf16 %v2707_v1, %v2707_v1  ;;  %v2812_v9 = vunpack.c.h.bf16 %v1359_v21 }
 0x57d   : > { %v2920_v5 = vunpack.c.l.bf16 %v2888_v3  ;;  %v1377_v3 = vld [vmem:[#allocation4 + $0x30] sm:$0xff]  }
 0x57e   : > { %v2823_v55 = vunpack.c.l.bf16 %v2791_v28 }
 0x57f   : > { %v2936_v13 = vadd.f32 %v2920_v5, %v2904_v16  ;;  %v2909_v5 = vunpack.c.l.bf16 %v1377_v3 }
 0x580   : > { %v2839_v59 = vadd.f32 %v2823_v55, %v2807_v24 }
 0x581   : > { %v4347_v46 = vpack.c.bf16 %v2936_v13, %v2935_v40 }
 0x582   : > { %v2765_v63 = vpop.f32.mrf.mxu1 }
 0x583   : > { %v2709_v12 = vpop.f32.mrf.mxu0  ;;  %4378 = vst [vmem:[#allocation4 + $0x18] sm:$0xff] %v4347_v46   ;;  %v2889_v34 = vpack.c.bf16 %v2765_v63, %v2765_v63 }
 0x584   : > { %v2792_v30 = vpack.c.bf16 %v2709_v12, %v2709_v12  ;;  %v2910_v12 = vunpack.c.h.bf16 %v1377_v3 }
 0x585   : > { %v2921_v18 = vunpack.c.l.bf16 %v2889_v34  ;;  %v1361_v34 = vld [vmem:[#allocation3 + $0x30] sm:$0xff]  }
 0x586   : > { %v2824_v26 = vunpack.c.l.bf16 %v2792_v30 }
 0x587   : > { %v2937_v45 = vadd.f32 %v2921_v18, %v2905_v35 }
 0x588   : > { %v2840_v19 = vadd.f32 %v2824_v26, %v2808_v25 }
 0x58a   : > { %v4307_v52 = vpack.c.bf16 %v2840_v19, %v2839_v59  ;;  %v2767_v53 = vpop.f32.mrf.mxu1  ;;  %v2813_v19 = vunpack.c.l.bf16 %v1361_v34 }
 0x58b   : > { %v2712_v15 = vpop.f32.mrf.mxu0  ;;  %v2890_v44 = vpack.c.bf16 %v2767_v53, %v2767_v53 }
 0x58c   : > { %4371 = vst [vmem:[#allocation3 + $0x18] sm:$0xff] %v4307_v52   ;;  %v2793_v42 = vpack.c.bf16 %v2712_v15, %v2712_v15  ;;  %v2814_v52 = vunpack.c.h.bf16 %v1361_v34 }
 0x58d   : > { %v2922_v51 = vunpack.c.l.bf16 %v2890_v44  ;;  %v1379_v44 = vld [vmem:[#allocation4 + $0x38] sm:$0xff]  }
 0x58e   : > { %v2825_v36 = vunpack.c.l.bf16 %v2793_v42 }
 0x58f   : > { %v2938_v43 = vadd.f32 %v2922_v51, %v2906_v49  ;;  %v2911_v51 = vunpack.c.l.bf16 %v1379_v44 }
 0x590   : > { %v2841_v20 = vadd.f32 %v2825_v36, %v2809_v37 }
 0x591   : > { %v4352_v6 = vpack.c.bf16 %v2938_v43, %v2937_v45 }
 0x592   : > { %v2770_v39 = vpop.f32.mrf.mxu1 }
 0x593   : > { %v2714_v10 = vpop.f32.mrf.mxu0  ;;  %4379 = vst [vmem:[#allocation4 + $0x20] sm:$0xff] %v4352_v6   ;;  %v2891_v33 = vpack.c.bf16 %v2770_v39, %v2770_v39 }
 0x594   : > { %v2794_v29 = vpack.c.bf16 %v2714_v10, %v2714_v10  ;;  %v2912_v10 = vunpack.c.h.bf16 %v1379_v44 }
 0x595   : > { %v2923_v7 = vunpack.c.l.bf16 %v2891_v33  ;;  %v1363_v33 = vld [vmem:[#allocation3 + $0x38] sm:$0xff]  }
 0x596   : > { %v2826_v27 = vunpack.c.l.bf16 %v2794_v29 }
 0x597   : > { %v2939_v41 = vadd.f32 %v2923_v7, %v2907_v57  ;;  %v2816_v7 = vunpack.c.h.bf16 %v1363_v33 }
 0x598   : > { %v2842_v22 = vadd.f32 %v2826_v27, %v2810_v58 }
 0x59a   : > { %v4312_v47 = vpack.c.bf16 %v2842_v22, %v2841_v20  ;;  %v2772_v8 = vpop.f32.mrf.mxu1  ;;  %v2815_v20 = vunpack.c.l.bf16 %v1363_v33 }
 0x59b   : > { %v2717_v2 = vpop.f32.mrf.mxu0  ;;  %v2892_v48 = vpack.c.bf16 %v2772_v8, %v2772_v8 }
 0x59c   : > { %4372 = vst [vmem:[#allocation3 + $0x20] sm:$0xff] %v4312_v47   ;;  %v2795_v54 = vpack.c.bf16 %v2717_v2, %v2717_v2 }
 0x59d   : > { %v2924_v38 = vunpack.c.l.bf16 %v2892_v48 }
 0x59e   : > { %v2827_v4 = vunpack.c.l.bf16 %v2795_v54 }
 0x59f   : > { %v2940_v0 = vadd.f32 %v2924_v38, %v2908_v11 }
 0x5a0   : > { %v2843_v16 = vadd.f32 %v2827_v4, %v2811_v32 }
 0x5a1   : > { %v4357_v31 = vpack.c.bf16 %v2940_v0, %v2939_v41 }
 0x5a2   : > { %v2775_v23 = vpop.f32.mrf.mxu1 }
 0x5a3   : > { %v2719_v50 = vpop.f32.mrf.mxu0  ;;  %4380 = vst [vmem:[#allocation4 + $0x28] sm:$0xff] %v4357_v31   ;;  %v2893_v56 = vpack.c.bf16 %v2775_v23, %v2775_v23 }
 0x5a4   : > { %v2796_v62 = vpack.c.bf16 %v2719_v50, %v2719_v50 }
 0x5a5   : > { %v2925_v13 = vunpack.c.l.bf16 %v2893_v56 }
 0x5a6   : > { %v2828_v1 = vunpack.c.l.bf16 %v2796_v62 }
 0x5a7   : > { %v2941_v24 = vadd.f32 %v2925_v13, %v2909_v5 }
 0x5a8   : > { %v2844_v40 = vadd.f32 %v2828_v1, %v2812_v9 }
 0x5aa   : > { %v4317_v28 = vpack.c.bf16 %v2844_v40, %v2843_v16  ;;  %v2777_v60 = vpop.f32.mrf.mxu1 }
 0x5ab   : > { %v2722_v46 = vpop.f32.mrf.mxu0  ;;  %v2894_v63 = vpack.c.bf16 %v2777_v60, %v2777_v60 }
 0x5ac   : > { %4373 = vst [vmem:[#allocation3 + $0x28] sm:$0xff] %v4317_v28   ;;  %v2797_v25 = vpack.c.bf16 %v2722_v46, %v2722_v46 }
 0x5ad   : > { %v2926_v55 = vunpack.c.l.bf16 %v2894_v63 }
 0x5ae   : > { %v2829_v35 = vunpack.c.l.bf16 %v2797_v25 }
 0x5af   : > { %v2942_v30 = vadd.f32 %v2926_v55, %v2910_v12 }
 0x5b0   : > { %v2845_v49 = vadd.f32 %v2829_v35, %v2813_v19 }
 0x5b1   : > { %v4362_v26 = vpack.c.bf16 %v2942_v30, %v2941_v24 }
 0x5b2   : > { %v2780_v17 = vpop.f32.mrf.mxu1 }
 0x5b3   : > { %v2724_v59 = vpop.f32.mrf.mxu0  ;;  %4381 = vst [vmem:[#allocation4 + $0x30] sm:$0xff] %v4362_v26   ;;  %v2895_v53 = vpack.c.bf16 %v2780_v17, %v2780_v17 }
 0x5b4   : > { %v2798_v18 = vpack.c.bf16 %v2724_v59, %v2724_v59 }
 0x5b5   : > { %v2927_v43 = vunpack.c.l.bf16 %v2895_v53 }
 0x5b6   : > { %v2830_v15 = vunpack.c.l.bf16 %v2798_v18 }
 0x5b7   : > { %v2943_v37 = vadd.f32 %v2927_v43, %v2911_v51 }
 0x5b8   : > { %v2846_v45 = vadd.f32 %v2830_v15, %v2814_v52 }
 0x5ba   : > { %v4322_v42 = vpack.c.bf16 %v2846_v45, %v2845_v49  ;;  %v2782_v61 = vpop.f32.mrf.mxu1 }
 0x5bb   : > { %v2727_v6 = vpop.f32.mrf.mxu0  ;;  %v2896_v39 = vpack.c.bf16 %v2782_v61, %v2782_v61 }
 0x5bc   : > { %4374 = vst [vmem:[#allocation3 + $0x30] sm:$0xff] %v4322_v42   ;;  %v2799_v58 = vpack.c.bf16 %v2727_v6, %v2727_v6 }
 0x5bd   : > { %v2928_v36 = vunpack.c.l.bf16 %v2896_v39 }
 0x5be   : > { %v2831_v22 = vunpack.c.l.bf16 %v2799_v58 }
 0x5bf   : > { %v2944_v29 = vadd.f32 %v2928_v36, %v2912_v10 }
 0x5c0   : > { %v2847_v8 = vadd.f32 %v2831_v22, %v2815_v20 }
 0x5c1   : > { %v4367_v27 = vpack.c.bf16 %v2944_v29, %v2943_v37 }
 0x5c3   : > { %v2729_v14 = vpop.f32.mrf.mxu0  ;;  %4382 = vst [vmem:[#allocation4 + $0x38] sm:$0xff] %v4367_v27  }
 0x5c4   : > { %v2800_v57 = vpack.c.bf16 %v2729_v14, %v2729_v14 }
 0x5c6   : > { %v2832_v47 = vunpack.c.l.bf16 %v2800_v57 }
 0x5c8   : > { %v2848_v2 = vadd.f32 %v2832_v47, %v2816_v7  ;;  %2980 = sbr.rel (%p4062_p13) target bundleno = 1657 (0x679), region = 104 }
 0x5ca   : > { %v4327_v48 = vpack.c.bf16 %v2848_v2, %v2847_v8 }
 0x5cc   : > { %4375 = vst [vmem:[#allocation3 + $0x38] sm:$0xff] %v4327_v48  }
 0x5cd   : > { %v4288_v41 = vld [vmem:[#allocation4 + $0x38] sm:$0xff]  ;;  %v4279_v38 = vld [vmem:[#allocation3 + $0x30] sm:$0xff]  ;;  %v4278_v54 = vld [vmem:[#allocation3 + $0x28] sm:$0xff] }
 0x5ce   : > { %3124 = vmatpush.bf16.msra.mxu1 %v4288_v41  ;;  %v4287_v0 = vld [vmem:[#allocation4 + $0x30] sm:$0xff]  ;;  %v4286_v21 = vld [vmem:[#allocation4 + $0x28] sm:$0xff]  ;;  %v4277_v31 = vld [vmem:[#allocation3 + $0x20] sm:$0xff] }
 0x5cf   : > { %v4285_v23 = vld [vmem:[#allocation4 + $0x20] sm:$0xff]  ;;  %v4276_v50 = vld [vmem:[#allocation3 + $0x18] sm:$0xff]  ;;  %v4275_v4 = vld [vmem:[#allocation3 + $0x10] sm:$0xff] }
 0x5d0   : > { %v4284_v32 = vld [vmem:[#allocation4 + $0x18] sm:$0xff]  ;;  %v4283_v62 = vld [vmem:[#allocation4 + $0x10] sm:$0xff]  ;;  %v4274_v9 = vld [vmem:[#allocation3 + $0x8] sm:$0xff] }
 0x5d1   : > { %v4282_v56 = vld [vmem:[#allocation4 + $0x8] sm:$0xff]  ;;  %v4273_v1 = vld [vmem:[#allocation3] sm:$0xff] }
 0x5d2   : > { %3125 = vmatpush.bf16.msra.mxu1 %v4287_v0  ;;  %v4281_v3 = vld [vmem:[#allocation4] sm:$0xff] }
 0x5d3   : > { %v4280_v11 = vld [vmem:[#allocation3 + $0x38] sm:$0xff]  ;;  %v2981_v16 = vld [vmem:[%s6215_s16] sm:$0xf] }
 0x5d4   : > { %3046 = vmatpush.bf16.msra.mxu0 %v4280_v11 }
 0x5d6   : > { %3126 = vmatpush.bf16.msra.mxu1 %v4286_v21 }
 0x5d8   : > { %3047 = vmatpush.bf16.msra.mxu0 %v4279_v38 }
 0x5da   : > { %3127 = vmatpush.bf16.msra.mxu1 %v4285_v23 }
 0x5dc   : > { %3048 = vmatpush.bf16.msra.mxu0 %v4278_v54 }
 0x5de   : > { %3128 = vmatpush.bf16.msra.mxu1 %v4284_v32 }
 0x5e0   : > { %3049 = vmatpush.bf16.msra.mxu0 %v4277_v31 }
 0x5e2   : > { %3129 = vmatpush.bf16.msra.mxu1 %v4283_v62 }
 0x5e4   : > { %3050 = vmatpush.bf16.msra.mxu0 %v4276_v50 }
 0x5e6   : > { %3130 = vmatpush.bf16.msra.mxu1 %v4282_v56 }
 0x5e8   : > { %3051 = vmatpush.bf16.msra.mxu0 %v4275_v4 }
 0x5ea   : > { %3131 = vmatpush.bf16.msra.mxu1 %v4281_v3 }
 0x5ec   : > { %3052 = vmatpush.bf16.msra.mxu0 %v4274_v9 }
 0x5ed   : > { %3132 = vmatmul.bf16.vlgmr.msra.gmra.mxu1 %v2981_v16 }
 0x5f0   : > { %3053 = vmatpush.bf16.msra.mxu0 %v4273_v1 }
 0x5f3   : > { %3054 = vmatmul.bf16.vlgmr.msra.gmra.mxu0 %v2981_v16 }
 0x66a   : > { %v3133_v5 = vpop.f32.mrf.mxu1 }
 0x66b   : > { %3137 = vst [vmem:[%s5460_s24] sm:$0xff] %v3133_v5 }
 0x670   : > { %v3055_v40 = vpop.f32.mrf.mxu0 }
 0x671   : > { %3059 = vst [vmem:[%s5458_s8] sm:$0xff] %v3055_v40 }
 0x672   : > { %v3135_v28 = vpop.f32.mrf.mxu1 }
 0x678   : > { %v3057_v13 = vpop.f32.mrf.mxu0 }
 0x679 PF: > { %s6216_s12 = sld [smem:[#allocation34_spill]]  ;;  %s3156_s14 = sshll.u32 %s5458_s8, 4  ;;  %s3157_s14 = int_to_ptr.vmem [resolvable:$true] %s3156_s14 }
 0x67a   : > { %s6218_s3 = sld [smem:[#allocation56_spill]]  ;;  %s3139_s5 = scalar_lea.sflag [#allocation7], %s5418_s22 }
 0x67f   : > { %s4129_s2 = sshll.u32 %s6216_s12, 3 }
 0x680   : > { %s3154_s28 = scalar_lea.hbm %s6218_s3, %s4129_s2  ;;  %s4930_s13 = scalar_lea.hbm %s6218_s3, 16 }
 0x681   : > { %s3158_s17 = sshll.u32 %s3154_s28, 4  ;;  %s3159_s17 = int_to_ptr.hbm [resolvable:$true] %s3158_s17 }
 0x682   : > { %s4924_s23 = sshra.s32 %s3159_s17, 4  ;;  %s4925_s23 = int_to_ptr.hbm [resolvable:$true] %s4924_s23 }
 0x683   : > { %s4926_s6 = scalar_lea.hbm %s4925_s23, 8  ;;  %p4931_p5 = scmp.lt.s32.totalorder %s4925_s23, %s6218_s3 }
 0x684   : > { %p4927_p1 = scmp.ne.s32.totalorder %s4925_s23, %s4926_s6  ;;  %p4932_p6 = scmp.lt.s32.totalorder %s4930_s13, %s4926_s6 }
 0x686   : > { %p4928_p2 = pnand %p4927_p1, %p5350_p9  ;;  %p4933_p8 = por %p4932_p6, %p4931_p5 }
 0x688   : > { %p4929_p3 = pneg %p4928_p2 }
 0x68a   : > { %p4934_p11 = pnand %p4933_p8, %p4929_p3 }
 0x68c   : > { %4937 = shalt.err (!%p4934_p11)
}
 0x68d   : > { %4422 = dma.vmem_to_hbm [thread:$0]  (%p5350_p9), %s3157_s14, 128, %s3159_s17, %s3139_s5  }
 0x68e   : > { %s6219_s30 = sld [smem:[#allocation57_spill]]  ;;  %s3170_s20 = sshll.u32 %s5460_s24, 4  ;;  %s3171_s20 = int_to_ptr.vmem [resolvable:$true] %s3170_s20 }
 0x68f   : > { %s3144_s9 = scalar_lea.sflag [#allocation22], %s5418_s22 }
 0x694   : > { %s3168_s8 = scalar_lea.hbm %s6219_s30, %s4129_s2  ;;  %s4958_s4 = scalar_lea.hbm %s6219_s30, 16 }
 0x695   : > { %s3172_s27 = sshll.u32 %s3168_s8, 4  ;;  %s3173_s27 = int_to_ptr.hbm [resolvable:$true] %s3172_s27 }
 0x696   : > { %s4952_s19 = sshra.s32 %s3173_s27, 4  ;;  %s4953_s19 = int_to_ptr.hbm [resolvable:$true] %s4952_s19 }
 0x697   : > { %s4954_s16 = scalar_lea.hbm %s4953_s19, 8  ;;  %p4959_p12 = scmp.lt.s32.totalorder %s4953_s19, %s6219_s30 }
 0x698   : > { %p4955_p0 = scmp.ne.s32.totalorder %s4953_s19, %s4954_s16  ;;  %p4960_p13 = scmp.lt.s32.totalorder %s4958_s4, %s4954_s16 }
 0x69a   : > { %p4956_p7 = pnand %p4955_p0, %p5350_p9  ;;  %p4961_p1 = por %p4960_p13, %p4959_p12 }
 0x69c   : > { %p4957_p4 = pneg %p4956_p7 }
 0x69e   : > { %p4962_p2 = pnand %p4961_p1, %p4957_p4 }
 0x6a0   : > { %4965 = shalt.err (!%p4962_p2)
}
 0x6a1   : > { %4423 = dma.vmem_to_hbm [thread:$0]  (%p5350_p9), %s3171_s20, 128, %s3173_s27, %s3144_s9  }
 0x6a2 PF: > { %s6220_s22 = sld [smem:[#allocation36_spill]] }
 0x6a3   : > { %s6221_s24 = sld [smem:[#allocation31_spill]] }
 0x6a8   : > { %p4465_p3 = scmp.ge.s32.totalorder %s6220_s22, 2 }
 0x6a9   : > { %s3184_s17 = sand.u32 1, %s6221_s24  }
 0x6aa   : > { %p4456_p5 = pnand %p4465_p3, %p5354_p10  ;;  %s3185_s5 = scalar_lea.sflag [#allocation7], %s3184_s17 }
 0x6ac   : > { %p4457_p6 = pneg %p4456_p5 }
 0x6ae   : > { %5031 = dma.done.wait (%p4457_p6), %s3185_s5, 128  }
 0x6af   : > { %5033 = vsyncadd (%p4457_p6), %s3185_s5, 4294967168  ;;  %s3195_s23 = scalar_lea.sflag [#allocation22], %s3184_s17 }
 0x6b0   : > { %5035 = dma.done.wait (%p4457_p6), %s3195_s23, 128  }
 0x6b1   : > { %5037 = vsyncadd (%p4457_p6), %s3195_s23, 4294967168  ;;  %s41_s27 = sadd.s32 1, %s6220_s22   ;;  %s6223_s29 = sld [smem:[#allocation30_spill]] }
 0x6b2   : > { %p38_p8 = scmp.ge.s32.totalorder %s41_s27, 8   ;;  %s6224_s19 = sld [smem:[#allocation40_spill]] }
 0x6b3   : > { %s6225_s6 = sld [smem:[#allocation32_spill]]  ;;  %s6230_s17 = smov %s5044_s18 }
 0x6b4   : > { %s6226_s22 = sld [smem:[#allocation41_spill]]  ;;  %s6232_s20 = smov %s5056_s21 }
 0x6b5   : > { %s6227_s23 = sld [smem:[#allocation35_spill]]  ;;  %s6234_s24 = smov %s5076_s26 }
 0x6b6   : > { %s6228_s25 = sld [smem:[#allocation38_spill]] }
 0x6b7   : > { %s6229_s7 = sld [smem:[#allocation39_spill]]  ;;  %s6231_s18 = smov %s6223_s29 }
 0x6b9   : > { %s6233_s21 = smov %s6225_s6  ;;  %40 = sbr.rel (!%p38_p8) target bundleno = 31 (0x1f), region = 218 }
 0x6bd   : > { %s6235_s26 = smov %s6229_s7 }
 0x6be   :  { %3201 = vsyncpa [#allocation6], 1 }
 0x6bf   :  { %3203 = vsyncpa [#allocation6 + $0x1], 1 }
 0x6c0   :  { %3204 = vsyncpa [#allocation9], 1 }
 0x6c1   :  { %3206 = vsyncpa [#allocation9 + $0x1], 1 }
 0x6c2   :  { %3207 = vsyncpa [#allocation12], 1 }
 0x6c3   :  { %3209 = vsyncpa [#allocation12 + $0x1], 1 }
 0x6c4   :  { %3210 = vsyncpa [#allocation15], 1 }
 0x6c5   :  { %3212 = vsyncpa [#allocation15 + $0x1], 1 }
 0x6c6   :  { %3213 = vsyncpa [#allocation18], 1 }
 0x6c7   :  { %3215 = vsyncpa [#allocation18 + $0x1], 1 }
 0x6c8   :  { %3216 = vsyncpa [#allocation7], 1 }
 0x6c9   :  { %3218 = vsyncpa [#allocation7 + $0x1], 1 }
 0x6ca   :  { %3219 = vsyncpa [#allocation22], 1 }
 0x6cb   :  { %3221 = vsyncpa [#allocation22 + $0x1], 1 }

</bundles_post_ra>
